<compile_context>
chip_gen: v7x
topology: tpu7x:2x2x1
jax: 0.10.0
libtpu: 0.0.40
codegen_flags: <defaults>
</compile_context>

<pallas_src>
import jax
import jax.numpy as jnp
from jax.experimental import pallas as pl
from jax.experimental.pallas import tpu as pltpu


# ---------------------------------------------------------------------------
# Host/trace-time weight re-layout (tiny, runs once per call under jit)
# ---------------------------------------------------------------------------

def _toeplitz_bank(w, win, parity):
    """Block-Toeplitz conv bank for one output-column parity.

    w:   [KH, KW, Cin, Cout] conv weight
    win: input width (with padding already applied)
    Returns [KH, win*Cin, (OW//2)*Cout] where OW = win - KW + 1 and the output
    columns correspond to ow = 2*owp + parity.
    """
    KH, KW, Cin, Cout = w.shape
    ow = win - KW + 1
    owp = ow // 2
    wcol = jnp.arange(win)                       # input width index
    ocol = 2 * jnp.arange(owp) + parity          # selected output width index
    j = wcol[:, None] - ocol[None, :]            # kernel-column offset [win, owp]
    valid = (j >= 0) & (j < KW)
    jc = jnp.clip(j, 0, KW - 1)
    wg = w[:, jc, :, :]                          # [KH, win, owp, Cin, Cout]
    wg = jnp.where(valid[None, :, :, None, None], wg, 0.0)
    t = jnp.transpose(wg, (0, 1, 3, 2, 4))       # [KH, win, Cin, owp, Cout]
    return t.reshape(KH, win * Cin, owp * Cout)


def _merged_bank(w, win):
    """Even/odd banks merged into one 256-lane bank (even @0, odd @128)."""
    e = _toeplitz_bank(w, win, 0)                # [KH, K, Nh]
    o = _toeplitz_bank(w, win, 1)
    kh, k, nh = e.shape
    bank = jnp.zeros((kh, k, 256), e.dtype)
    bank = bank.at[:, :, :nh].set(e)
    bank = bank.at[:, :, 128:128 + nh].set(o)
    return bank                                  # [KH, K, 256]


# ---------------------------------------------------------------------------
# The fused kernel (one batch tile per grid step, weights resident in VMEM)
# ---------------------------------------------------------------------------

def _net_kernel(x_ref, t1_ref, b1_ref, t2_ref, b2_ref,
                w3_ref, b3_ref, w4_ref, b4_ref, w5_ref, b5_ref, o_ref):
    f32 = jnp.float32
    bf16 = jnp.bfloat16

    t1 = t1_ref[...]                             # [160, 256] bf16 (K-stacked bank)
    b1 = b1_ref[...]                             # [1, 84]
    b2 = b2_ref[...]                             # [1, 80]
    t2 = [t2_ref[i] for i in range(5)]           # 5 x [84, 256] bf16
    w3 = [w3_ref[i] for i in range(5)]           # 5 x [80, 120] bf16

    # ---- conv1 (5x5, pad=2) + 2x2 max-pool + ReLU --------------------------
    # Image rows are packed along lanes, so the 5-row input slab of conv
    # output row `oh` is one contiguous 160-lane slice -> a single matmul.
    def conv1_row(oh):
        slab = x_ref[:, oh * 32:(oh + 5) * 32]                     # [B, 160] bf16
        return jnp.dot(slab, t1, preferred_element_type=f32)       # [B, 256]

    p1 = []                                       # 14 pooled rows, each [B, 84]
    for ohp in range(14):
        c = jnp.maximum(conv1_row(2 * ohp), conv1_row(2 * ohp + 1))  # height pool
        c = jnp.maximum(c[:, :84], c[:, 128:212])                    # width pool
        p1.append(jnp.maximum(c + b1, 0.0).astype(bf16))             # bias + ReLU

    # ---- conv2 (5x5, valid) + 2x2 max-pool + ReLU ---------------------------
    def conv2_row(oh2):
        acc = jnp.dot(p1[oh2], t2[0], preferred_element_type=f32)
        for i in range(1, 5):
            acc = acc + jnp.dot(p1[oh2 + i], t2[i], preferred_element_type=f32)
        return acc                                                   # [B, 256]

    p2 = []                                       # 5 pooled rows, each [B, 80]
    for r in range(5):
        c = jnp.maximum(conv2_row(2 * r), conv2_row(2 * r + 1))
        c = jnp.maximum(c[:, :80], c[:, 128:208])
        p2.append(jnp.maximum(c + b2, 0.0).astype(bf16))

    # ---- conv3 == fully connected [400 -> 120] + ReLU -----------------------
    h = jnp.dot(p2[0], w3[0], preferred_element_type=f32)
    for r in range(1, 5):
        h = h + jnp.dot(p2[r], w3[r], preferred_element_type=f32)
    h = jnp.maximum(h + b3_ref[...], 0.0).astype(bf16)               # [B, 120]

    # ---- fc1 + ReLU, fc2 + log-softmax --------------------------------------
    h = jnp.dot(h, w4_ref[...], preferred_element_type=f32) + b4_ref[...]
    h = jnp.maximum(h, 0.0).astype(bf16)                              # [B, 84]
    z = jnp.dot(h, w5_ref[...], preferred_element_type=f32) + b5_ref[...]  # [B, 10]

    m = jnp.max(z, axis=-1, keepdims=True)
    lse = jnp.log(jnp.sum(jnp.exp(z - m), axis=-1, keepdims=True)) + m
    o_ref[...] = (z - lse).astype(o_ref.dtype)


# ---------------------------------------------------------------------------
# Forward pass wrapper (matches PyTorch Net.forward)
# ---------------------------------------------------------------------------

def _pick_b_tile(n):
    # Multiple of 8 (sublane-aligned 2-D blocks), capped at 128 (VMEM headroom
    # on v7x's 64 MiB), and chosen so the grid has >= 2 steps when possible
    # (v7x has 2 TensorCores; on v5e/v6e this is a no-op).
    if n <= 8:
        return 8
    half = int(pl.cdiv(n, 2))
    return int(min(128, 8 * pl.cdiv(half, 8)))


def net_forward(params, x_nchw, *, b_tile=None):
    # x_nchw: [N, 1, 28, 28] float32
    N = x_nchw.shape[0]
    x = x_nchw.astype(jnp.float32).reshape(N, 28, 28)      # Cin == 1
    x = jnp.pad(x, ((0, 0), (2, 2), (2, 2)))               # [N, 32, 32] (conv1 pad=2)
    x = x.reshape(N, 32 * 32).astype(jnp.bfloat16)         # rows packed into lanes

    if b_tile is None:
        b_tile = _pick_b_tile(N)
    n_pad = int(pl.cdiv(N, b_tile)) * b_tile
    if n_pad != N:
        x = jnp.pad(x, ((0, n_pad - N), (0, 0)))           # pad batch to B_TILE mult

    bf16 = jnp.bfloat16
    t1 = _merged_bank(params["conv1_w"], 32).reshape(160, 256).astype(bf16)
    t2 = _merged_bank(params["conv2_w"], 14).astype(bf16)          # [5, 84, 256]
    b1r = jnp.tile(params["conv1_b"], 14).reshape(1, 84)
    b2r = jnp.tile(params["conv2_b"], 5).reshape(1, 80)
    w3 = params["conv3_w"].reshape(5, 80, 120).astype(bf16)
    b3r = params["conv3_b"].reshape(1, 120)
    w4 = params["fc1_w"].astype(bf16)                              # [120, 84]
    b4r = params["fc1_b"].reshape(1, 84)
    w5 = params["fc2_w"].astype(bf16)                              # [84, 10]
    b5r = params["fc2_b"].reshape(1, 10)

    c2 = lambda n: (0, 0)
    c3 = lambda n: (0, 0, 0)

    out = pl.pallas_call(
        _net_kernel,
        out_shape=jax.ShapeDtypeStruct((n_pad, 10), jnp.float32),
        grid=(n_pad // b_tile,),
        in_specs=[
            pl.BlockSpec((b_tile, 32 * 32), lambda n: (n, 0)),  # batch tile of images
            pl.BlockSpec((160, 256), c2),                       # conv1 bank (K-stacked)
            pl.BlockSpec((1, 84), c2),                          # conv1 bias row
            pl.BlockSpec((5, 84, 256), c3),                     # conv2 bank
            pl.BlockSpec((1, 80), c2),                          # conv2 bias row
            pl.BlockSpec((5, 80, 120), c3),                     # conv3 as FC
            pl.BlockSpec((1, 120), c2),
            pl.BlockSpec((120, 84), c2),                        # fc1
            pl.BlockSpec((1, 84), c2),
            pl.BlockSpec((84, 10), c2),                         # fc2
            pl.BlockSpec((1, 10), c2),
        ],
        out_specs=pl.BlockSpec((b_tile, 10), lambda n: (n, 0)),
        compiler_params=pltpu.CompilerParams(
            dimension_semantics=("parallel",),
            vmem_limit_bytes=48 * 1024 * 1024),
    )(x, t1, b1r, t2, b2r, w3, b3r, w4, b4r, w5, b5r)
    return out[:N]


# ---------------------------------------------------------------------------
# Pure-JAX f32 reference (for correctness cross-check only)
# ---------------------------------------------------------------------------

def net_forward_ref(params, x_nchw):
    dn = ("NHWC", "HWIO", "NHWC")
    x = jnp.transpose(x_nchw, (0, 2, 3, 1))
    y = jax.lax.conv_general_dilated(x, params["conv1_w"], (1, 1),
                                     ((2, 2), (2, 2)), dimension_numbers=dn)
    y = y + params["conv1_b"]
    y = jax.nn.relu(jax.lax.reduce_window(y, -jnp.inf, jax.lax.max,
                                          (1, 2, 2, 1), (1, 2, 2, 1), "VALID"))
    y = jax.lax.conv_general_dilated(y, params["conv2_w"], (1, 1), "VALID",
                                     dimension_numbers=dn) + params["conv2_b"]
    y = jax.nn.relu(jax.lax.reduce_window(y, -jnp.inf, jax.lax.max,
                                          (1, 2, 2, 1), (1, 2, 2, 1), "VALID"))
    y = jax.lax.conv_general_dilated(y, params["conv3_w"], (1, 1), "VALID",
                                     dimension_numbers=dn) + params["conv3_b"]
    y = jax.nn.relu(y).reshape(x.shape[0], -1)                # [N, 120]
    y = jax.nn.relu(y @ params["fc1_w"] + params["fc1_b"])
    z = y @ params["fc2_w"] + params["fc2_b"]
    return jax.nn.log_softmax(z, axis=-1)


# ---------------------------------------------------------------------------
# Parameters (deterministic, PyTorch-default-style uniform init)
# ---------------------------------------------------------------------------

def init_params(key):
    keys = jax.random.split(key, 10)

    def u(k, shape, fan_in):
        bound = 1.0 / jnp.sqrt(jnp.float32(fan_in))
        return jax.random.uniform(k, shape, jnp.float32, -bound, bound)

    return {
        # conv weights stored as [KH, KW, Cin, Cout] (torch is [Cout, Cin, KH, KW])
        "conv1_w": u(keys[0], (5, 5, 1, 6), 5 * 5 * 1),
        "conv1_b": u(keys[1], (6,), 5 * 5 * 1),
        "conv2_w": u(keys[2], (5, 5, 6, 16), 5 * 5 * 6),
        "conv2_b": u(keys[3], (16,), 5 * 5 * 6),
        "conv3_w": u(keys[4], (5, 5, 16, 120), 5 * 5 * 16),
        "conv3_b": u(keys[5], (120,), 5 * 5 * 16),
        # linear weights stored as [in, out] (torch is [out, in])
        "fc1_w": u(keys[6], (120, 84), 120),
        "fc1_b": u(keys[7], (84,), 120),
        "fc2_w": u(keys[8], (84, 10), 84),
        "fc2_b": u(keys[9], (10,), 84),
    }


if __name__ == "__main__":
    key = jax.random.PRNGKey(0)
    pkey, xkey = jax.random.split(key)
    params = init_params(pkey)

    # MNIST-style input: batch=2, 1 channel, 28x28 (required so conv3 sees 5x5).
    x = jax.random.normal(xkey, (2, 1, 28, 28), dtype=jnp.float32)

    out = jax.jit(net_forward)(params, x)
    out = jax.block_until_ready(out)
    assert out.shape == (2, 10), out.shape

    # log-softmax sanity: exp(out) rows must sum to ~1
    row_sums = jnp.sum(jnp.exp(out), axis=-1)
    assert bool(jnp.all(jnp.abs(row_sums - 1.0) < 1e-4)), row_sums

    # cross-check against pure-JAX f32 reference (loose tol: kernel uses bf16 MXU)
    ref = jax.jit(net_forward_ref)(params, x)
    max_err = jnp.max(jnp.abs(out - ref))
    assert bool(max_err < 0.1), max_err

    print("KERNEL_OK")
</pallas_src>

<mosaic_0001>
module attributes {stable_mosaic.version = 11 : i64} {
  func.func @_net_kernel(%arg0: i32, %arg1: memref<8x1024xbf16, #tpu.memory_space<vmem>>, %arg2: memref<160x256xbf16, #tpu.memory_space<vmem>>, %arg3: memref<1x84xf32, #tpu.memory_space<vmem>>, %arg4: memref<5x84x256xbf16, #tpu.memory_space<vmem>>, %arg5: memref<1x80xf32, #tpu.memory_space<vmem>>, %arg6: memref<5x80x120xbf16, #tpu.memory_space<vmem>>, %arg7: memref<1x120xf32, #tpu.memory_space<vmem>>, %arg8: memref<120x84xbf16, #tpu.memory_space<vmem>>, %arg9: memref<1x84xf32, #tpu.memory_space<vmem>>, %arg10: memref<84x10xbf16, #tpu.memory_space<vmem>>, %arg11: memref<1x10xf32, #tpu.memory_space<vmem>>, %arg12: memref<8x10xf32, #tpu.memory_space<vmem>>) attributes {dimension_semantics = [#tpu.dimension_semantics<parallel>], iteration_bounds = array<i64: 1>, scalar_prefetch = 0 : i64, scratch_operands = 0 : i64, tpu.core_type = #tpu.core_type<tc>, window_params = [{transform_indices = @transform_0, window_bounds = array<i64: 8, 1024>}, {pipeline_mode = #tpu.pipeline_mode<synchronous>, transform_indices = @transform_1, window_bounds = array<i64: 160, 256>}, {pipeline_mode = #tpu.pipeline_mode<synchronous>, transform_indices = @transform_2, window_bounds = array<i64: 1, 84>}, {pipeline_mode = #tpu.pipeline_mode<synchronous>, transform_indices = @transform_3, window_bounds = array<i64: 5, 84, 256>}, {pipeline_mode = #tpu.pipeline_mode<synchronous>, transform_indices = @transform_4, window_bounds = array<i64: 1, 80>}, {pipeline_mode = #tpu.pipeline_mode<synchronous>, transform_indices = @transform_5, window_bounds = array<i64: 5, 80, 120>}, {pipeline_mode = #tpu.pipeline_mode<synchronous>, transform_indices = @transform_6, window_bounds = array<i64: 1, 120>}, {pipeline_mode = #tpu.pipeline_mode<synchronous>, transform_indices = @transform_7, window_bounds = array<i64: 120, 84>}, {pipeline_mode = #tpu.pipeline_mode<synchronous>, transform_indices = @transform_8, window_bounds = array<i64: 1, 84>}, {pipeline_mode = #tpu.pipeline_mode<synchronous>, transform_indices = @transform_9, window_bounds = array<i64: 84, 10>}, {pipeline_mode = #tpu.pipeline_mode<synchronous>, transform_indices = @transform_10, window_bounds = array<i64: 1, 10>}, {transform_indices = @transform_11, window_bounds = array<i64: 8, 10>}]} {
    %c0 = arith.constant 0 : index
    %c0_0 = arith.constant 0 : index
    %0 = vector.load %arg2[%c0, %c0_0] : memref<160x256xbf16, #tpu.memory_space<vmem>>, vector<160x256xbf16>
    %c0_1 = arith.constant 0 : index
    %c0_2 = arith.constant 0 : index
    %1 = vector.load %arg3[%c0_1, %c0_2] : memref<1x84xf32, #tpu.memory_space<vmem>>, vector<1x84xf32>
    %c0_3 = arith.constant 0 : index
    %c0_4 = arith.constant 0 : index
    %2 = vector.load %arg5[%c0_3, %c0_4] : memref<1x80xf32, #tpu.memory_space<vmem>>, vector<1x80xf32>
    %c0_5 = arith.constant 0 : index
    %c0_6 = arith.constant 0 : index
    %c0_7 = arith.constant 0 : index
    %3 = vector.load %arg4[%c0_5, %c0_6, %c0_7] : memref<5x84x256xbf16, #tpu.memory_space<vmem>>, vector<1x84x256xbf16>
    %4 = vector.shape_cast %3 : vector<1x84x256xbf16> to vector<84x256xbf16>
    %c1 = arith.constant 1 : index
    %c0_8 = arith.constant 0 : index
    %c0_9 = arith.constant 0 : index
    %5 = vector.load %arg4[%c1, %c0_8, %c0_9] : memref<5x84x256xbf16, #tpu.memory_space<vmem>>, vector<1x84x256xbf16>
    %6 = vector.shape_cast %5 : vector<1x84x256xbf16> to vector<84x256xbf16>
    %c2 = arith.constant 2 : index
    %c0_10 = arith.constant 0 : index
    %c0_11 = arith.constant 0 : index
    %7 = vector.load %arg4[%c2, %c0_10, %c0_11] : memref<5x84x256xbf16, #tpu.memory_space<vmem>>, vector<1x84x256xbf16>
    %8 = vector.shape_cast %7 : vector<1x84x256xbf16> to vector<84x256xbf16>
    %c3 = arith.constant 3 : index
    %c0_12 = arith.constant 0 : index
    %c0_13 = arith.constant 0 : index
    %9 = vector.load %arg4[%c3, %c0_12, %c0_13] : memref<5x84x256xbf16, #tpu.memory_space<vmem>>, vector<1x84x256xbf16>
    %10 = vector.shape_cast %9 : vector<1x84x256xbf16> to vector<84x256xbf16>
    %c4 = arith.constant 4 : index
    %c0_14 = arith.constant 0 : index
    %c0_15 = arith.constant 0 : index
    %11 = vector.load %arg4[%c4, %c0_14, %c0_15] : memref<5x84x256xbf16, #tpu.memory_space<vmem>>, vector<1x84x256xbf16>
    %12 = vector.shape_cast %11 : vector<1x84x256xbf16> to vector<84x256xbf16>
    %c0_16 = arith.constant 0 : index
    %c0_17 = arith.constant 0 : index
    %c0_18 = arith.constant 0 : index
    %13 = vector.load %arg6[%c0_16, %c0_17, %c0_18] : memref<5x80x120xbf16, #tpu.memory_space<vmem>>, vector<1x80x120xbf16>
    %14 = vector.shape_cast %13 : vector<1x80x120xbf16> to vector<80x120xbf16>
    %c1_19 = arith.constant 1 : index
    %c0_20 = arith.constant 0 : index
    %c0_21 = arith.constant 0 : index
    %15 = vector.load %arg6[%c1_19, %c0_20, %c0_21] : memref<5x80x120xbf16, #tpu.memory_space<vmem>>, vector<1x80x120xbf16>
    %16 = vector.shape_cast %15 : vector<1x80x120xbf16> to vector<80x120xbf16>
    %c2_22 = arith.constant 2 : index
    %c0_23 = arith.constant 0 : index
    %c0_24 = arith.constant 0 : index
    %17 = vector.load %arg6[%c2_22, %c0_23, %c0_24] : memref<5x80x120xbf16, #tpu.memory_space<vmem>>, vector<1x80x120xbf16>
    %18 = vector.shape_cast %17 : vector<1x80x120xbf16> to vector<80x120xbf16>
    %c3_25 = arith.constant 3 : index
    %c0_26 = arith.constant 0 : index
    %c0_27 = arith.constant 0 : index
    %19 = vector.load %arg6[%c3_25, %c0_26, %c0_27] : memref<5x80x120xbf16, #tpu.memory_space<vmem>>, vector<1x80x120xbf16>
    %20 = vector.shape_cast %19 : vector<1x80x120xbf16> to vector<80x120xbf16>
    %c4_28 = arith.constant 4 : index
    %c0_29 = arith.constant 0 : index
    %c0_30 = arith.constant 0 : index
    %21 = vector.load %arg6[%c4_28, %c0_29, %c0_30] : memref<5x80x120xbf16, #tpu.memory_space<vmem>>, vector<1x80x120xbf16>
    %22 = vector.shape_cast %21 : vector<1x80x120xbf16> to vector<80x120xbf16>
    %c0_31 = arith.constant 0 : index
    %c0_32 = arith.constant 0 : index
    %23 = vector.load %arg1[%c0_31, %c0_32] : memref<8x1024xbf16, #tpu.memory_space<vmem>>, vector<8x160xbf16>
    %cst = arith.constant dense<0.000000e+00> : vector<8x256xf32>
    %24 = tpu.matmul %23, %0, %cst {dimension_numbers = #tpu.dot_dimension_numbers<[1], [0], [0], [1], [0, 0, 1, 1], [], []>} : vector<8x160xbf16>, vector<160x256xbf16>, vector<8x256xf32> -> vector<8x256xf32>
    %c0_33 = arith.constant 0 : index
    %c32 = arith.constant 32 : index
    %25 = vector.load %arg1[%c0_33, %c32] : memref<8x1024xbf16, #tpu.memory_space<vmem>>, vector<8x160xbf16>
    %cst_34 = arith.constant dense<0.000000e+00> : vector<8x256xf32>
    %26 = tpu.matmul %25, %0, %cst_34 {dimension_numbers = #tpu.dot_dimension_numbers<[1], [0], [0], [1], [0, 0, 1, 1], [], []>} : vector<8x160xbf16>, vector<160x256xbf16>, vector<8x256xf32> -> vector<8x256xf32>
    %27 = arith.maximumf %24, %26 : vector<8x256xf32>
    %28 = vector.extract_strided_slice %27 {offsets = [0, 0], sizes = [8, 84], strides = [1, 1]} : vector<8x256xf32> to vector<8x84xf32>
    %29 = vector.extract_strided_slice %27 {offsets = [0, 128], sizes = [8, 84], strides = [1, 1]} : vector<8x256xf32> to vector<8x84xf32>
    %30 = arith.maximumf %28, %29 : vector<8x84xf32>
    %31 = vector.broadcast %1 : vector<1x84xf32> to vector<8x84xf32>
    %32 = arith.addf %30, %31 : vector<8x84xf32>
    %cst_35 = arith.constant 0.000000e+00 : f32
    %33 = vector.broadcast %cst_35 : f32 to vector<8x84xf32>
    %34 = arith.maximumf %32, %33 : vector<8x84xf32>
    %35 = arith.truncf %34 : vector<8x84xf32> to vector<8x84xbf16>
    %c0_36 = arith.constant 0 : index
    %c64 = arith.constant 64 : index
    %36 = vector.load %arg1[%c0_36, %c64] : memref<8x1024xbf16, #tpu.memory_space<vmem>>, vector<8x160xbf16>
    %cst_37 = arith.constant dense<0.000000e+00> : vector<8x256xf32>
    %37 = tpu.matmul %36, %0, %cst_37 {dimension_numbers = #tpu.dot_dimension_numbers<[1], [0], [0], [1], [0, 0, 1, 1], [], []>} : vector<8x160xbf16>, vector<160x256xbf16>, vector<8x256xf32> -> vector<8x256xf32>
    %c0_38 = arith.constant 0 : index
    %c96 = arith.constant 96 : index
    %38 = vector.load %arg1[%c0_38, %c96] : memref<8x1024xbf16, #tpu.memory_space<vmem>>, vector<8x160xbf16>
    %cst_39 = arith.constant dense<0.000000e+00> : vector<8x256xf32>
    %39 = tpu.matmul %38, %0, %cst_39 {dimension_numbers = #tpu.dot_dimension_numbers<[1], [0], [0], [1], [0, 0, 1, 1], [], []>} : vector<8x160xbf16>, vector<160x256xbf16>, vector<8x256xf32> -> vector<8x256xf32>
    %40 = arith.maximumf %37, %39 : vector<8x256xf32>
    %41 = vector.extract_strided_slice %40 {offsets = [0, 0], sizes = [8, 84], strides = [1, 1]} : vector<8x256xf32> to vector<8x84xf32>
    %42 = vector.extract_strided_slice %40 {offsets = [0, 128], sizes = [8, 84], strides = [1, 1]} : vector<8x256xf32> to vector<8x84xf32>
    %43 = arith.maximumf %41, %42 : vector<8x84xf32>
    %44 = vector.broadcast %1 : vector<1x84xf32> to vector<8x84xf32>
    %45 = arith.addf %43, %44 : vector<8x84xf32>
    %cst_40 = arith.constant 0.000000e+00 : f32
    %46 = vector.broadcast %cst_40 : f32 to vector<8x84xf32>
    %47 = arith.maximumf %45, %46 : vector<8x84xf32>
    %48 = arith.truncf %47 : vector<8x84xf32> to vector<8x84xbf16>
    %c0_41 = arith.constant 0 : index
    %c128 = arith.constant 128 : index
    %49 = vector.load %arg1[%c0_41, %c128] : memref<8x1024xbf16, #tpu.memory_space<vmem>>, vector<8x160xbf16>
    %cst_42 = arith.constant dense<0.000000e+00> : vector<8x256xf32>
    %50 = tpu.matmul %49, %0, %cst_42 {dimension_numbers = #tpu.dot_dimension_numbers<[1], [0], [0], [1], [0, 0, 1, 1], [], []>} : vector<8x160xbf16>, vector<160x256xbf16>, vector<8x256xf32> -> vector<8x256xf32>
    %c0_43 = arith.constant 0 : index
    %c160 = arith.constant 160 : index
    %51 = vector.load %arg1[%c0_43, %c160] : memref<8x1024xbf16, #tpu.memory_space<vmem>>, vector<8x160xbf16>
    %cst_44 = arith.constant dense<0.000000e+00> : vector<8x256xf32>
    %52 = tpu.matmul %51, %0, %cst_44 {dimension_numbers = #tpu.dot_dimension_numbers<[1], [0], [0], [1], [0, 0, 1, 1], [], []>} : vector<8x160xbf16>, vector<160x256xbf16>, vector<8x256xf32> -> vector<8x256xf32>
    %53 = arith.maximumf %50, %52 : vector<8x256xf32>
    %54 = vector.extract_strided_slice %53 {offsets = [0, 0], sizes = [8, 84], strides = [1, 1]} : vector<8x256xf32> to vector<8x84xf32>
    %55 = vector.extract_strided_slice %53 {offsets = [0, 128], sizes = [8, 84], strides = [1, 1]} : vector<8x256xf32> to vector<8x84xf32>
    %56 = arith.maximumf %54, %55 : vector<8x84xf32>
    %57 = vector.broadcast %1 : vector<1x84xf32> to vector<8x84xf32>
    %58 = arith.addf %56, %57 : vector<8x84xf32>
    %cst_45 = arith.constant 0.000000e+00 : f32
    %59 = vector.broadcast %cst_45 : f32 to vector<8x84xf32>
    %60 = arith.maximumf %58, %59 : vector<8x84xf32>
    %61 = arith.truncf %60 : vector<8x84xf32> to vector<8x84xbf16>
    %c0_46 = arith.constant 0 : index
    %c192 = arith.constant 192 : index
    %62 = vector.load %arg1[%c0_46, %c192] : memref<8x1024xbf16, #tpu.memory_space<vmem>>, vector<8x160xbf16>
    %cst_47 = arith.constant dense<0.000000e+00> : vector<8x256xf32>
    %63 = tpu.matmul %62, %0, %cst_47 {dimension_numbers = #tpu.dot_dimension_numbers<[1], [0], [0], [1], [0, 0, 1, 1], [], []>} : vector<8x160xbf16>, vector<160x256xbf16>, vector<8x256xf32> -> vector<8x256xf32>
    %c0_48 = arith.constant 0 : index
    %c224 = arith.constant 224 : index
    %64 = vector.load %arg1[%c0_48, %c224] : memref<8x1024xbf16, #tpu.memory_space<vmem>>, vector<8x160xbf16>
    %cst_49 = arith.constant dense<0.000000e+00> : vector<8x256xf32>
    %65 = tpu.matmul %64, %0, %cst_49 {dimension_numbers = #tpu.dot_dimension_numbers<[1], [0], [0], [1], [0, 0, 1, 1], [], []>} : vector<8x160xbf16>, vector<160x256xbf16>, vector<8x256xf32> -> vector<8x256xf32>
    %66 = arith.maximumf %63, %65 : vector<8x256xf32>
    %67 = vector.extract_strided_slice %66 {offsets = [0, 0], sizes = [8, 84], strides = [1, 1]} : vector<8x256xf32> to vector<8x84xf32>
    %68 = vector.extract_strided_slice %66 {offsets = [0, 128], sizes = [8, 84], strides = [1, 1]} : vector<8x256xf32> to vector<8x84xf32>
    %69 = arith.maximumf %67, %68 : vector<8x84xf32>
    %70 = vector.broadcast %1 : vector<1x84xf32> to vector<8x84xf32>
    %71 = arith.addf %69, %70 : vector<8x84xf32>
    %cst_50 = arith.constant 0.000000e+00 : f32
    %72 = vector.broadcast %cst_50 : f32 to vector<8x84xf32>
    %73 = arith.maximumf %71, %72 : vector<8x84xf32>
    %74 = arith.truncf %73 : vector<8x84xf32> to vector<8x84xbf16>
    %c0_51 = arith.constant 0 : index
    %c256 = arith.constant 256 : index
    %75 = vector.load %arg1[%c0_51, %c256] : memref<8x1024xbf16, #tpu.memory_space<vmem>>, vector<8x160xbf16>
    %cst_52 = arith.constant dense<0.000000e+00> : vector<8x256xf32>
    %76 = tpu.matmul %75, %0, %cst_52 {dimension_numbers = #tpu.dot_dimension_numbers<[1], [0], [0], [1], [0, 0, 1, 1], [], []>} : vector<8x160xbf16>, vector<160x256xbf16>, vector<8x256xf32> -> vector<8x256xf32>
    %c0_53 = arith.constant 0 : index
    %c288 = arith.constant 288 : index
    %77 = vector.load %arg1[%c0_53, %c288] : memref<8x1024xbf16, #tpu.memory_space<vmem>>, vector<8x160xbf16>
    %cst_54 = arith.constant dense<0.000000e+00> : vector<8x256xf32>
    %78 = tpu.matmul %77, %0, %cst_54 {dimension_numbers = #tpu.dot_dimension_numbers<[1], [0], [0], [1], [0, 0, 1, 1], [], []>} : vector<8x160xbf16>, vector<160x256xbf16>, vector<8x256xf32> -> vector<8x256xf32>
    %79 = arith.maximumf %76, %78 : vector<8x256xf32>
    %80 = vector.extract_strided_slice %79 {offsets = [0, 0], sizes = [8, 84], strides = [1, 1]} : vector<8x256xf32> to vector<8x84xf32>
    %81 = vector.extract_strided_slice %79 {offsets = [0, 128], sizes = [8, 84], strides = [1, 1]} : vector<8x256xf32> to vector<8x84xf32>
    %82 = arith.maximumf %80, %81 : vector<8x84xf32>
    %83 = vector.broadcast %1 : vector<1x84xf32> to vector<8x84xf32>
    %84 = arith.addf %82, %83 : vector<8x84xf32>
    %cst_55 = arith.constant 0.000000e+00 : f32
    %85 = vector.broadcast %cst_55 : f32 to vector<8x84xf32>
    %86 = arith.maximumf %84, %85 : vector<8x84xf32>
    %87 = arith.truncf %86 : vector<8x84xf32> to vector<8x84xbf16>
    %c0_56 = arith.constant 0 : index
    %c320 = arith.constant 320 : index
    %88 = vector.load %arg1[%c0_56, %c320] : memref<8x1024xbf16, #tpu.memory_space<vmem>>, vector<8x160xbf16>
    %cst_57 = arith.constant dense<0.000000e+00> : vector<8x256xf32>
    %89 = tpu.matmul %88, %0, %cst_57 {dimension_numbers = #tpu.dot_dimension_numbers<[1], [0], [0], [1], [0, 0, 1, 1], [], []>} : vector<8x160xbf16>, vector<160x256xbf16>, vector<8x256xf32> -> vector<8x256xf32>
    %c0_58 = arith.constant 0 : index
    %c352 = arith.constant 352 : index
    %90 = vector.load %arg1[%c0_58, %c352] : memref<8x1024xbf16, #tpu.memory_space<vmem>>, vector<8x160xbf16>
    %cst_59 = arith.constant dense<0.000000e+00> : vector<8x256xf32>
    %91 = tpu.matmul %90, %0, %cst_59 {dimension_numbers = #tpu.dot_dimension_numbers<[1], [0], [0], [1], [0, 0, 1, 1], [], []>} : vector<8x160xbf16>, vector<160x256xbf16>, vector<8x256xf32> -> vector<8x256xf32>
    %92 = arith.maximumf %89, %91 : vector<8x256xf32>
    %93 = vector.extract_strided_slice %92 {offsets = [0, 0], sizes = [8, 84], strides = [1, 1]} : vector<8x256xf32> to vector<8x84xf32>
    %94 = vector.extract_strided_slice %92 {offsets = [0, 128], sizes = [8, 84], strides = [1, 1]} : vector<8x256xf32> to vector<8x84xf32>
    %95 = arith.maximumf %93, %94 : vector<8x84xf32>
    %96 = vector.broadcast %1 : vector<1x84xf32> to vector<8x84xf32>
    %97 = arith.addf %95, %96 : vector<8x84xf32>
    %cst_60 = arith.constant 0.000000e+00 : f32
    %98 = vector.broadcast %cst_60 : f32 to vector<8x84xf32>
    %99 = arith.maximumf %97, %98 : vector<8x84xf32>
    %100 = arith.truncf %99 : vector<8x84xf32> to vector<8x84xbf16>
    %c0_61 = arith.constant 0 : index
    %c384 = arith.constant 384 : index
    %101 = vector.load %arg1[%c0_61, %c384] : memref<8x1024xbf16, #tpu.memory_space<vmem>>, vector<8x160xbf16>
    %cst_62 = arith.constant dense<0.000000e+00> : vector<8x256xf32>
    %102 = tpu.matmul %101, %0, %cst_62 {dimension_numbers = #tpu.dot_dimension_numbers<[1], [0], [0], [1], [0, 0, 1, 1], [], []>} : vector<8x160xbf16>, vector<160x256xbf16>, vector<8x256xf32> -> vector<8x256xf32>
    %c0_63 = arith.constant 0 : index
    %c416 = arith.constant 416 : index
    %103 = vector.load %arg1[%c0_63, %c416] : memref<8x1024xbf16, #tpu.memory_space<vmem>>, vector<8x160xbf16>
    %cst_64 = arith.constant dense<0.000000e+00> : vector<8x256xf32>
    %104 = tpu.matmul %103, %0, %cst_64 {dimension_numbers = #tpu.dot_dimension_numbers<[1], [0], [0], [1], [0, 0, 1, 1], [], []>} : vector<8x160xbf16>, vector<160x256xbf16>, vector<8x256xf32> -> vector<8x256xf32>
    %105 = arith.maximumf %102, %104 : vector<8x256xf32>
    %106 = vector.extract_strided_slice %105 {offsets = [0, 0], sizes = [8, 84], strides = [1, 1]} : vector<8x256xf32> to vector<8x84xf32>
    %107 = vector.extract_strided_slice %105 {offsets = [0, 128], sizes = [8, 84], strides = [1, 1]} : vector<8x256xf32> to vector<8x84xf32>
    %108 = arith.maximumf %106, %107 : vector<8x84xf32>
    %109 = vector.broadcast %1 : vector<1x84xf32> to vector<8x84xf32>
    %110 = arith.addf %108, %109 : vector<8x84xf32>
    %cst_65 = arith.constant 0.000000e+00 : f32
    %111 = vector.broadcast %cst_65 : f32 to vector<8x84xf32>
    %112 = arith.maximumf %110, %111 : vector<8x84xf32>
    %113 = arith.truncf %112 : vector<8x84xf32> to vector<8x84xbf16>
    %c0_66 = arith.constant 0 : index
    %c448 = arith.constant 448 : index
    %114 = vector.load %arg1[%c0_66, %c448] : memref<8x1024xbf16, #tpu.memory_space<vmem>>, vector<8x160xbf16>
    %cst_67 = arith.constant dense<0.000000e+00> : vector<8x256xf32>
    %115 = tpu.matmul %114, %0, %cst_67 {dimension_numbers = #tpu.dot_dimension_numbers<[1], [0], [0], [1], [0, 0, 1, 1], [], []>} : vector<8x160xbf16>, vector<160x256xbf16>, vector<8x256xf32> -> vector<8x256xf32>
    %c0_68 = arith.constant 0 : index
    %c480 = arith.constant 480 : index
    %116 = vector.load %arg1[%c0_68, %c480] : memref<8x1024xbf16, #tpu.memory_space<vmem>>, vector<8x160xbf16>
    %cst_69 = arith.constant dense<0.000000e+00> : vector<8x256xf32>
    %117 = tpu.matmul %116, %0, %cst_69 {dimension_numbers = #tpu.dot_dimension_numbers<[1], [0], [0], [1], [0, 0, 1, 1], [], []>} : vector<8x160xbf16>, vector<160x256xbf16>, vector<8x256xf32> -> vector<8x256xf32>
    %118 = arith.maximumf %115, %117 : vector<8x256xf32>
    %119 = vector.extract_strided_slice %118 {offsets = [0, 0], sizes = [8, 84], strides = [1, 1]} : vector<8x256xf32> to vector<8x84xf32>
    %120 = vector.extract_strided_slice %118 {offsets = [0, 128], sizes = [8, 84], strides = [1, 1]} : vector<8x256xf32> to vector<8x84xf32>
    %121 = arith.maximumf %119, %120 : vector<8x84xf32>
    %122 = vector.broadcast %1 : vector<1x84xf32> to vector<8x84xf32>
    %123 = arith.addf %121, %122 : vector<8x84xf32>
    %cst_70 = arith.constant 0.000000e+00 : f32
    %124 = vector.broadcast %cst_70 : f32 to vector<8x84xf32>
    %125 = arith.maximumf %123, %124 : vector<8x84xf32>
    %126 = arith.truncf %125 : vector<8x84xf32> to vector<8x84xbf16>
    %c0_71 = arith.constant 0 : index
    %c512 = arith.constant 512 : index
    %127 = vector.load %arg1[%c0_71, %c512] : memref<8x1024xbf16, #tpu.memory_space<vmem>>, vector<8x160xbf16>
    %cst_72 = arith.constant dense<0.000000e+00> : vector<8x256xf32>
    %128 = tpu.matmul %127, %0, %cst_72 {dimension_numbers = #tpu.dot_dimension_numbers<[1], [0], [0], [1], [0, 0, 1, 1], [], []>} : vector<8x160xbf16>, vector<160x256xbf16>, vector<8x256xf32> -> vector<8x256xf32>
    %c0_73 = arith.constant 0 : index
    %c544 = arith.constant 544 : index
    %129 = vector.load %arg1[%c0_73, %c544] : memref<8x1024xbf16, #tpu.memory_space<vmem>>, vector<8x160xbf16>
    %cst_74 = arith.constant dense<0.000000e+00> : vector<8x256xf32>
    %130 = tpu.matmul %129, %0, %cst_74 {dimension_numbers = #tpu.dot_dimension_numbers<[1], [0], [0], [1], [0, 0, 1, 1], [], []>} : vector<8x160xbf16>, vector<160x256xbf16>, vector<8x256xf32> -> vector<8x256xf32>
    %131 = arith.maximumf %128, %130 : vector<8x256xf32>
    %132 = vector.extract_strided_slice %131 {offsets = [0, 0], sizes = [8, 84], strides = [1, 1]} : vector<8x256xf32> to vector<8x84xf32>
    %133 = vector.extract_strided_slice %131 {offsets = [0, 128], sizes = [8, 84], strides = [1, 1]} : vector<8x256xf32> to vector<8x84xf32>
    %134 = arith.maximumf %132, %133 : vector<8x84xf32>
    %135 = vector.broadcast %1 : vector<1x84xf32> to vector<8x84xf32>
    %136 = arith.addf %134, %135 : vector<8x84xf32>
    %cst_75 = arith.constant 0.000000e+00 : f32
    %137 = vector.broadcast %cst_75 : f32 to vector<8x84xf32>
    %138 = arith.maximumf %136, %137 : vector<8x84xf32>
    %139 = arith.truncf %138 : vector<8x84xf32> to vector<8x84xbf16>
    %c0_76 = arith.constant 0 : index
    %c576 = arith.constant 576 : index
    %140 = vector.load %arg1[%c0_76, %c576] : memref<8x1024xbf16, #tpu.memory_space<vmem>>, vector<8x160xbf16>
    %cst_77 = arith.constant dense<0.000000e+00> : vector<8x256xf32>
    %141 = tpu.matmul %140, %0, %cst_77 {dimension_numbers = #tpu.dot_dimension_numbers<[1], [0], [0], [1], [0, 0, 1, 1], [], []>} : vector<8x160xbf16>, vector<160x256xbf16>, vector<8x256xf32> -> vector<8x256xf32>
    %c0_78 = arith.constant 0 : index
    %c608 = arith.constant 608 : index
    %142 = vector.load %arg1[%c0_78, %c608] : memref<8x1024xbf16, #tpu.memory_space<vmem>>, vector<8x160xbf16>
    %cst_79 = arith.constant dense<0.000000e+00> : vector<8x256xf32>
    %143 = tpu.matmul %142, %0, %cst_79 {dimension_numbers = #tpu.dot_dimension_numbers<[1], [0], [0], [1], [0, 0, 1, 1], [], []>} : vector<8x160xbf16>, vector<160x256xbf16>, vector<8x256xf32> -> vector<8x256xf32>
    %144 = arith.maximumf %141, %143 : vector<8x256xf32>
    %145 = vector.extract_strided_slice %144 {offsets = [0, 0], sizes = [8, 84], strides = [1, 1]} : vector<8x256xf32> to vector<8x84xf32>
    %146 = vector.extract_strided_slice %144 {offsets = [0, 128], sizes = [8, 84], strides = [1, 1]} : vector<8x256xf32> to vector<8x84xf32>
    %147 = arith.maximumf %145, %146 : vector<8x84xf32>
    %148 = vector.broadcast %1 : vector<1x84xf32> to vector<8x84xf32>
    %149 = arith.addf %147, %148 : vector<8x84xf32>
    %cst_80 = arith.constant 0.000000e+00 : f32
    %150 = vector.broadcast %cst_80 : f32 to vector<8x84xf32>
    %151 = arith.maximumf %149, %150 : vector<8x84xf32>
    %152 = arith.truncf %151 : vector<8x84xf32> to vector<8x84xbf16>
    %c0_81 = arith.constant 0 : index
    %c640 = arith.constant 640 : index
    %153 = vector.load %arg1[%c0_81, %c640] : memref<8x1024xbf16, #tpu.memory_space<vmem>>, vector<8x160xbf16>
    %cst_82 = arith.constant dense<0.000000e+00> : vector<8x256xf32>
    %154 = tpu.matmul %153, %0, %cst_82 {dimension_numbers = #tpu.dot_dimension_numbers<[1], [0], [0], [1], [0, 0, 1, 1], [], []>} : vector<8x160xbf16>, vector<160x256xbf16>, vector<8x256xf32> -> vector<8x256xf32>
    %c0_83 = arith.constant 0 : index
    %c672 = arith.constant 672 : index
    %155 = vector.load %arg1[%c0_83, %c672] : memref<8x1024xbf16, #tpu.memory_space<vmem>>, vector<8x160xbf16>
    %cst_84 = arith.constant dense<0.000000e+00> : vector<8x256xf32>
    %156 = tpu.matmul %155, %0, %cst_84 {dimension_numbers = #tpu.dot_dimension_numbers<[1], [0], [0], [1], [0, 0, 1, 1], [], []>} : vector<8x160xbf16>, vector<160x256xbf16>, vector<8x256xf32> -> vector<8x256xf32>
    %157 = arith.maximumf %154, %156 : vector<8x256xf32>
    %158 = vector.extract_strided_slice %157 {offsets = [0, 0], sizes = [8, 84], strides = [1, 1]} : vector<8x256xf32> to vector<8x84xf32>
    %159 = vector.extract_strided_slice %157 {offsets = [0, 128], sizes = [8, 84], strides = [1, 1]} : vector<8x256xf32> to vector<8x84xf32>
    %160 = arith.maximumf %158, %159 : vector<8x84xf32>
    %161 = vector.broadcast %1 : vector<1x84xf32> to vector<8x84xf32>
    %162 = arith.addf %160, %161 : vector<8x84xf32>
    %cst_85 = arith.constant 0.000000e+00 : f32
    %163 = vector.broadcast %cst_85 : f32 to vector<8x84xf32>
    %164 = arith.maximumf %162, %163 : vector<8x84xf32>
    %165 = arith.truncf %164 : vector<8x84xf32> to vector<8x84xbf16>
    %c0_86 = arith.constant 0 : index
    %c704 = arith.constant 704 : index
    %166 = vector.load %arg1[%c0_86, %c704] : memref<8x1024xbf16, #tpu.memory_space<vmem>>, vector<8x160xbf16>
    %cst_87 = arith.constant dense<0.000000e+00> : vector<8x256xf32>
    %167 = tpu.matmul %166, %0, %cst_87 {dimension_numbers = #tpu.dot_dimension_numbers<[1], [0], [0], [1], [0, 0, 1, 1], [], []>} : vector<8x160xbf16>, vector<160x256xbf16>, vector<8x256xf32> -> vector<8x256xf32>
    %c0_88 = arith.constant 0 : index
    %c736 = arith.constant 736 : index
    %168 = vector.load %arg1[%c0_88, %c736] : memref<8x1024xbf16, #tpu.memory_space<vmem>>, vector<8x160xbf16>
    %cst_89 = arith.constant dense<0.000000e+00> : vector<8x256xf32>
    %169 = tpu.matmul %168, %0, %cst_89 {dimension_numbers = #tpu.dot_dimension_numbers<[1], [0], [0], [1], [0, 0, 1, 1], [], []>} : vector<8x160xbf16>, vector<160x256xbf16>, vector<8x256xf32> -> vector<8x256xf32>
    %170 = arith.maximumf %167, %169 : vector<8x256xf32>
    %171 = vector.extract_strided_slice %170 {offsets = [0, 0], sizes = [8, 84], strides = [1, 1]} : vector<8x256xf32> to vector<8x84xf32>
    %172 = vector.extract_strided_slice %170 {offsets = [0, 128], sizes = [8, 84], strides = [1, 1]} : vector<8x256xf32> to vector<8x84xf32>
    %173 = arith.maximumf %171, %172 : vector<8x84xf32>
    %174 = vector.broadcast %1 : vector<1x84xf32> to vector<8x84xf32>
    %175 = arith.addf %173, %174 : vector<8x84xf32>
    %cst_90 = arith.constant 0.000000e+00 : f32
    %176 = vector.broadcast %cst_90 : f32 to vector<8x84xf32>
    %177 = arith.maximumf %175, %176 : vector<8x84xf32>
    %178 = arith.truncf %177 : vector<8x84xf32> to vector<8x84xbf16>
    %c0_91 = arith.constant 0 : index
    %c768 = arith.constant 768 : index
    %179 = vector.load %arg1[%c0_91, %c768] : memref<8x1024xbf16, #tpu.memory_space<vmem>>, vector<8x160xbf16>
    %cst_92 = arith.constant dense<0.000000e+00> : vector<8x256xf32>
    %180 = tpu.matmul %179, %0, %cst_92 {dimension_numbers = #tpu.dot_dimension_numbers<[1], [0], [0], [1], [0, 0, 1, 1], [], []>} : vector<8x160xbf16>, vector<160x256xbf16>, vector<8x256xf32> -> vector<8x256xf32>
    %c0_93 = arith.constant 0 : index
    %c800 = arith.constant 800 : index
    %181 = vector.load %arg1[%c0_93, %c800] : memref<8x1024xbf16, #tpu.memory_space<vmem>>, vector<8x160xbf16>
    %cst_94 = arith.constant dense<0.000000e+00> : vector<8x256xf32>
    %182 = tpu.matmul %181, %0, %cst_94 {dimension_numbers = #tpu.dot_dimension_numbers<[1], [0], [0], [1], [0, 0, 1, 1], [], []>} : vector<8x160xbf16>, vector<160x256xbf16>, vector<8x256xf32> -> vector<8x256xf32>
    %183 = arith.maximumf %180, %182 : vector<8x256xf32>
    %184 = vector.extract_strided_slice %183 {offsets = [0, 0], sizes = [8, 84], strides = [1, 1]} : vector<8x256xf32> to vector<8x84xf32>
    %185 = vector.extract_strided_slice %183 {offsets = [0, 128], sizes = [8, 84], strides = [1, 1]} : vector<8x256xf32> to vector<8x84xf32>
    %186 = arith.maximumf %184, %185 : vector<8x84xf32>
    %187 = vector.broadcast %1 : vector<1x84xf32> to vector<8x84xf32>
    %188 = arith.addf %186, %187 : vector<8x84xf32>
    %cst_95 = arith.constant 0.000000e+00 : f32
    %189 = vector.broadcast %cst_95 : f32 to vector<8x84xf32>
    %190 = arith.maximumf %188, %189 : vector<8x84xf32>
    %191 = arith.truncf %190 : vector<8x84xf32> to vector<8x84xbf16>
    %c0_96 = arith.constant 0 : index
    %c832 = arith.constant 832 : index
    %192 = vector.load %arg1[%c0_96, %c832] : memref<8x1024xbf16, #tpu.memory_space<vmem>>, vector<8x160xbf16>
    %cst_97 = arith.constant dense<0.000000e+00> : vector<8x256xf32>
    %193 = tpu.matmul %192, %0, %cst_97 {dimension_numbers = #tpu.dot_dimension_numbers<[1], [0], [0], [1], [0, 0, 1, 1], [], []>} : vector<8x160xbf16>, vector<160x256xbf16>, vector<8x256xf32> -> vector<8x256xf32>
    %c0_98 = arith.constant 0 : index
    %c864 = arith.constant 864 : index
    %194 = vector.load %arg1[%c0_98, %c864] : memref<8x1024xbf16, #tpu.memory_space<vmem>>, vector<8x160xbf16>
    %cst_99 = arith.constant dense<0.000000e+00> : vector<8x256xf32>
    %195 = tpu.matmul %194, %0, %cst_99 {dimension_numbers = #tpu.dot_dimension_numbers<[1], [0], [0], [1], [0, 0, 1, 1], [], []>} : vector<8x160xbf16>, vector<160x256xbf16>, vector<8x256xf32> -> vector<8x256xf32>
    %196 = arith.maximumf %193, %195 : vector<8x256xf32>
    %197 = vector.extract_strided_slice %196 {offsets = [0, 0], sizes = [8, 84], strides = [1, 1]} : vector<8x256xf32> to vector<8x84xf32>
    %198 = vector.extract_strided_slice %196 {offsets = [0, 128], sizes = [8, 84], strides = [1, 1]} : vector<8x256xf32> to vector<8x84xf32>
    %199 = arith.maximumf %197, %198 : vector<8x84xf32>
    %200 = vector.broadcast %1 : vector<1x84xf32> to vector<8x84xf32>
    %201 = arith.addf %199, %200 : vector<8x84xf32>
    %cst_100 = arith.constant 0.000000e+00 : f32
    %202 = vector.broadcast %cst_100 : f32 to vector<8x84xf32>
    %203 = arith.maximumf %201, %202 : vector<8x84xf32>
    %204 = arith.truncf %203 : vector<8x84xf32> to vector<8x84xbf16>
    %cst_101 = arith.constant dense<0.000000e+00> : vector<8x256xf32>
    %205 = tpu.matmul %35, %4, %cst_101 {dimension_numbers = #tpu.dot_dimension_numbers<[1], [0], [0], [1], [0, 0, 1, 1], [], []>} : vector<8x84xbf16>, vector<84x256xbf16>, vector<8x256xf32> -> vector<8x256xf32>
    %cst_102 = arith.constant dense<0.000000e+00> : vector<8x256xf32>
    %206 = tpu.matmul %48, %6, %cst_102 {dimension_numbers = #tpu.dot_dimension_numbers<[1], [0], [0], [1], [0, 0, 1, 1], [], []>} : vector<8x84xbf16>, vector<84x256xbf16>, vector<8x256xf32> -> vector<8x256xf32>
    %207 = arith.addf %205, %206 : vector<8x256xf32>
    %cst_103 = arith.constant dense<0.000000e+00> : vector<8x256xf32>
    %208 = tpu.matmul %61, %8, %cst_103 {dimension_numbers = #tpu.dot_dimension_numbers<[1], [0], [0], [1], [0, 0, 1, 1], [], []>} : vector<8x84xbf16>, vector<84x256xbf16>, vector<8x256xf32> -> vector<8x256xf32>
    %209 = arith.addf %207, %208 : vector<8x256xf32>
    %cst_104 = arith.constant dense<0.000000e+00> : vector<8x256xf32>
    %210 = tpu.matmul %74, %10, %cst_104 {dimension_numbers = #tpu.dot_dimension_numbers<[1], [0], [0], [1], [0, 0, 1, 1], [], []>} : vector<8x84xbf16>, vector<84x256xbf16>, vector<8x256xf32> -> vector<8x256xf32>
    %211 = arith.addf %209, %210 : vector<8x256xf32>
    %cst_105 = arith.constant dense<0.000000e+00> : vector<8x256xf32>
    %212 = tpu.matmul %87, %12, %cst_105 {dimension_numbers = #tpu.dot_dimension_numbers<[1], [0], [0], [1], [0, 0, 1, 1], [], []>} : vector<8x84xbf16>, vector<84x256xbf16>, vector<8x256xf32> -> vector<8x256xf32>
    %213 = arith.addf %211, %212 : vector<8x256xf32>
    %cst_106 = arith.constant dense<0.000000e+00> : vector<8x256xf32>
    %214 = tpu.matmul %48, %4, %cst_106 {dimension_numbers = #tpu.dot_dimension_numbers<[1], [0], [0], [1], [0, 0, 1, 1], [], []>} : vector<8x84xbf16>, vector<84x256xbf16>, vector<8x256xf32> -> vector<8x256xf32>
    %cst_107 = arith.constant dense<0.000000e+00> : vector<8x256xf32>
    %215 = tpu.matmul %61, %6, %cst_107 {dimension_numbers = #tpu.dot_dimension_numbers<[1], [0], [0], [1], [0, 0, 1, 1], [], []>} : vector<8x84xbf16>, vector<84x256xbf16>, vector<8x256xf32> -> vector<8x256xf32>
    %216 = arith.addf %214, %215 : vector<8x256xf32>
    %cst_108 = arith.constant dense<0.000000e+00> : vector<8x256xf32>
    %217 = tpu.matmul %74, %8, %cst_108 {dimension_numbers = #tpu.dot_dimension_numbers<[1], [0], [0], [1], [0, 0, 1, 1], [], []>} : vector<8x84xbf16>, vector<84x256xbf16>, vector<8x256xf32> -> vector<8x256xf32>
    %218 = arith.addf %216, %217 : vector<8x256xf32>
    %cst_109 = arith.constant dense<0.000000e+00> : vector<8x256xf32>
    %219 = tpu.matmul %87, %10, %cst_109 {dimension_numbers = #tpu.dot_dimension_numbers<[1], [0], [0], [1], [0, 0, 1, 1], [], []>} : vector<8x84xbf16>, vector<84x256xbf16>, vector<8x256xf32> -> vector<8x256xf32>
    %220 = arith.addf %218, %219 : vector<8x256xf32>
    %cst_110 = arith.constant dense<0.000000e+00> : vector<8x256xf32>
    %221 = tpu.matmul %100, %12, %cst_110 {dimension_numbers = #tpu.dot_dimension_numbers<[1], [0], [0], [1], [0, 0, 1, 1], [], []>} : vector<8x84xbf16>, vector<84x256xbf16>, vector<8x256xf32> -> vector<8x256xf32>
    %222 = arith.addf %220, %221 : vector<8x256xf32>
    %223 = arith.maximumf %213, %222 : vector<8x256xf32>
    %224 = vector.extract_strided_slice %223 {offsets = [0, 0], sizes = [8, 80], strides = [1, 1]} : vector<8x256xf32> to vector<8x80xf32>
    %225 = vector.extract_strided_slice %223 {offsets = [0, 128], sizes = [8, 80], strides = [1, 1]} : vector<8x256xf32> to vector<8x80xf32>
    %226 = arith.maximumf %224, %225 : vector<8x80xf32>
    %227 = vector.broadcast %2 : vector<1x80xf32> to vector<8x80xf32>
    %228 = arith.addf %226, %227 : vector<8x80xf32>
    %cst_111 = arith.constant 0.000000e+00 : f32
    %229 = vector.broadcast %cst_111 : f32 to vector<8x80xf32>
    %230 = arith.maximumf %228, %229 : vector<8x80xf32>
    %231 = arith.truncf %230 : vector<8x80xf32> to vector<8x80xbf16>
    %cst_112 = arith.constant dense<0.000000e+00> : vector<8x256xf32>
    %232 = tpu.matmul %61, %4, %cst_112 {dimension_numbers = #tpu.dot_dimension_numbers<[1], [0], [0], [1], [0, 0, 1, 1], [], []>} : vector<8x84xbf16>, vector<84x256xbf16>, vector<8x256xf32> -> vector<8x256xf32>
    %cst_113 = arith.constant dense<0.000000e+00> : vector<8x256xf32>
    %233 = tpu.matmul %74, %6, %cst_113 {dimension_numbers = #tpu.dot_dimension_numbers<[1], [0], [0], [1], [0, 0, 1, 1], [], []>} : vector<8x84xbf16>, vector<84x256xbf16>, vector<8x256xf32> -> vector<8x256xf32>
    %234 = arith.addf %232, %233 : vector<8x256xf32>
    %cst_114 = arith.constant dense<0.000000e+00> : vector<8x256xf32>
    %235 = tpu.matmul %87, %8, %cst_114 {dimension_numbers = #tpu.dot_dimension_numbers<[1], [0], [0], [1], [0, 0, 1, 1], [], []>} : vector<8x84xbf16>, vector<84x256xbf16>, vector<8x256xf32> -> vector<8x256xf32>
    %236 = arith.addf %234, %235 : vector<8x256xf32>
    %cst_115 = arith.constant dense<0.000000e+00> : vector<8x256xf32>
    %237 = tpu.matmul %100, %10, %cst_115 {dimension_numbers = #tpu.dot_dimension_numbers<[1], [0], [0], [1], [0, 0, 1, 1], [], []>} : vector<8x84xbf16>, vector<84x256xbf16>, vector<8x256xf32> -> vector<8x256xf32>
    %238 = arith.addf %236, %237 : vector<8x256xf32>
    %cst_116 = arith.constant dense<0.000000e+00> : vector<8x256xf32>
    %239 = tpu.matmul %113, %12, %cst_116 {dimension_numbers = #tpu.dot_dimension_numbers<[1], [0], [0], [1], [0, 0, 1, 1], [], []>} : vector<8x84xbf16>, vector<84x256xbf16>, vector<8x256xf32> -> vector<8x256xf32>
    %240 = arith.addf %238, %239 : vector<8x256xf32>
    %cst_117 = arith.constant dense<0.000000e+00> : vector<8x256xf32>
    %241 = tpu.matmul %74, %4, %cst_117 {dimension_numbers = #tpu.dot_dimension_numbers<[1], [0], [0], [1], [0, 0, 1, 1], [], []>} : vector<8x84xbf16>, vector<84x256xbf16>, vector<8x256xf32> -> vector<8x256xf32>
    %cst_118 = arith.constant dense<0.000000e+00> : vector<8x256xf32>
    %242 = tpu.matmul %87, %6, %cst_118 {dimension_numbers = #tpu.dot_dimension_numbers<[1], [0], [0], [1], [0, 0, 1, 1], [], []>} : vector<8x84xbf16>, vector<84x256xbf16>, vector<8x256xf32> -> vector<8x256xf32>
    %243 = arith.addf %241, %242 : vector<8x256xf32>
    %cst_119 = arith.constant dense<0.000000e+00> : vector<8x256xf32>
    %244 = tpu.matmul %100, %8, %cst_119 {dimension_numbers = #tpu.dot_dimension_numbers<[1], [0], [0], [1], [0, 0, 1, 1], [], []>} : vector<8x84xbf16>, vector<84x256xbf16>, vector<8x256xf32> -> vector<8x256xf32>
    %245 = arith.addf %243, %244 : vector<8x256xf32>
    %cst_120 = arith.constant dense<0.000000e+00> : vector<8x256xf32>
    %246 = tpu.matmul %113, %10, %cst_120 {dimension_numbers = #tpu.dot_dimension_numbers<[1], [0], [0], [1], [0, 0, 1, 1], [], []>} : vector<8x84xbf16>, vector<84x256xbf16>, vector<8x256xf32> -> vector<8x256xf32>
    %247 = arith.addf %245, %246 : vector<8x256xf32>
    %cst_121 = arith.constant dense<0.000000e+00> : vector<8x256xf32>
    %248 = tpu.matmul %126, %12, %cst_121 {dimension_numbers = #tpu.dot_dimension_numbers<[1], [0], [0], [1], [0, 0, 1, 1], [], []>} : vector<8x84xbf16>, vector<84x256xbf16>, vector<8x256xf32> -> vector<8x256xf32>
    %249 = arith.addf %247, %248 : vector<8x256xf32>
    %250 = arith.maximumf %240, %249 : vector<8x256xf32>
    %251 = vector.extract_strided_slice %250 {offsets = [0, 0], sizes = [8, 80], strides = [1, 1]} : vector<8x256xf32> to vector<8x80xf32>
    %252 = vector.extract_strided_slice %250 {offsets = [0, 128], sizes = [8, 80], strides = [1, 1]} : vector<8x256xf32> to vector<8x80xf32>
    %253 = arith.maximumf %251, %252 : vector<8x80xf32>
    %254 = vector.broadcast %2 : vector<1x80xf32> to vector<8x80xf32>
    %255 = arith.addf %253, %254 : vector<8x80xf32>
    %cst_122 = arith.constant 0.000000e+00 : f32
    %256 = vector.broadcast %cst_122 : f32 to vector<8x80xf32>
    %257 = arith.maximumf %255, %256 : vector<8x80xf32>
    %258 = arith.truncf %257 : vector<8x80xf32> to vector<8x80xbf16>
    %cst_123 = arith.constant dense<0.000000e+00> : vector<8x256xf32>
    %259 = tpu.matmul %87, %4, %cst_123 {dimension_numbers = #tpu.dot_dimension_numbers<[1], [0], [0], [1], [0, 0, 1, 1], [], []>} : vector<8x84xbf16>, vector<84x256xbf16>, vector<8x256xf32> -> vector<8x256xf32>
    %cst_124 = arith.constant dense<0.000000e+00> : vector<8x256xf32>
    %260 = tpu.matmul %100, %6, %cst_124 {dimension_numbers = #tpu.dot_dimension_numbers<[1], [0], [0], [1], [0, 0, 1, 1], [], []>} : vector<8x84xbf16>, vector<84x256xbf16>, vector<8x256xf32> -> vector<8x256xf32>
    %261 = arith.addf %259, %260 : vector<8x256xf32>
    %cst_125 = arith.constant dense<0.000000e+00> : vector<8x256xf32>
    %262 = tpu.matmul %113, %8, %cst_125 {dimension_numbers = #tpu.dot_dimension_numbers<[1], [0], [0], [1], [0, 0, 1, 1], [], []>} : vector<8x84xbf16>, vector<84x256xbf16>, vector<8x256xf32> -> vector<8x256xf32>
    %263 = arith.addf %261, %262 : vector<8x256xf32>
    %cst_126 = arith.constant dense<0.000000e+00> : vector<8x256xf32>
    %264 = tpu.matmul %126, %10, %cst_126 {dimension_numbers = #tpu.dot_dimension_numbers<[1], [0], [0], [1], [0, 0, 1, 1], [], []>} : vector<8x84xbf16>, vector<84x256xbf16>, vector<8x256xf32> -> vector<8x256xf32>
    %265 = arith.addf %263, %264 : vector<8x256xf32>
    %cst_127 = arith.constant dense<0.000000e+00> : vector<8x256xf32>
    %266 = tpu.matmul %139, %12, %cst_127 {dimension_numbers = #tpu.dot_dimension_numbers<[1], [0], [0], [1], [0, 0, 1, 1], [], []>} : vector<8x84xbf16>, vector<84x256xbf16>, vector<8x256xf32> -> vector<8x256xf32>
    %267 = arith.addf %265, %266 : vector<8x256xf32>
    %cst_128 = arith.constant dense<0.000000e+00> : vector<8x256xf32>
    %268 = tpu.matmul %100, %4, %cst_128 {dimension_numbers = #tpu.dot_dimension_numbers<[1], [0], [0], [1], [0, 0, 1, 1], [], []>} : vector<8x84xbf16>, vector<84x256xbf16>, vector<8x256xf32> -> vector<8x256xf32>
    %cst_129 = arith.constant dense<0.000000e+00> : vector<8x256xf32>
    %269 = tpu.matmul %113, %6, %cst_129 {dimension_numbers = #tpu.dot_dimension_numbers<[1], [0], [0], [1], [0, 0, 1, 1], [], []>} : vector<8x84xbf16>, vector<84x256xbf16>, vector<8x256xf32> -> vector<8x256xf32>
    %270 = arith.addf %268, %269 : vector<8x256xf32>
    %cst_130 = arith.constant dense<0.000000e+00> : vector<8x256xf32>
    %271 = tpu.matmul %126, %8, %cst_130 {dimension_numbers = #tpu.dot_dimension_numbers<[1], [0], [0], [1], [0, 0, 1, 1], [], []>} : vector<8x84xbf16>, vector<84x256xbf16>, vector<8x256xf32> -> vector<8x256xf32>
    %272 = arith.addf %270, %271 : vector<8x256xf32>
    %cst_131 = arith.constant dense<0.000000e+00> : vector<8x256xf32>
    %273 = tpu.matmul %139, %10, %cst_131 {dimension_numbers = #tpu.dot_dimension_numbers<[1], [0], [0], [1], [0, 0, 1, 1], [], []>} : vector<8x84xbf16>, vector<84x256xbf16>, vector<8x256xf32> -> vector<8x256xf32>
    %274 = arith.addf %272, %273 : vector<8x256xf32>
    %cst_132 = arith.constant dense<0.000000e+00> : vector<8x256xf32>
    %275 = tpu.matmul %152, %12, %cst_132 {dimension_numbers = #tpu.dot_dimension_numbers<[1], [0], [0], [1], [0, 0, 1, 1], [], []>} : vector<8x84xbf16>, vector<84x256xbf16>, vector<8x256xf32> -> vector<8x256xf32>
    %276 = arith.addf %274, %275 : vector<8x256xf32>
    %277 = arith.maximumf %267, %276 : vector<8x256xf32>
    %278 = vector.extract_strided_slice %277 {offsets = [0, 0], sizes = [8, 80], strides = [1, 1]} : vector<8x256xf32> to vector<8x80xf32>
    %279 = vector.extract_strided_slice %277 {offsets = [0, 128], sizes = [8, 80], strides = [1, 1]} : vector<8x256xf32> to vector<8x80xf32>
    %280 = arith.maximumf %278, %279 : vector<8x80xf32>
    %281 = vector.broadcast %2 : vector<1x80xf32> to vector<8x80xf32>
    %282 = arith.addf %280, %281 : vector<8x80xf32>
    %cst_133 = arith.constant 0.000000e+00 : f32
    %283 = vector.broadcast %cst_133 : f32 to vector<8x80xf32>
    %284 = arith.maximumf %282, %283 : vector<8x80xf32>
    %285 = arith.truncf %284 : vector<8x80xf32> to vector<8x80xbf16>
    %cst_134 = arith.constant dense<0.000000e+00> : vector<8x256xf32>
    %286 = tpu.matmul %113, %4, %cst_134 {dimension_numbers = #tpu.dot_dimension_numbers<[1], [0], [0], [1], [0, 0, 1, 1], [], []>} : vector<8x84xbf16>, vector<84x256xbf16>, vector<8x256xf32> -> vector<8x256xf32>
    %cst_135 = arith.constant dense<0.000000e+00> : vector<8x256xf32>
    %287 = tpu.matmul %126, %6, %cst_135 {dimension_numbers = #tpu.dot_dimension_numbers<[1], [0], [0], [1], [0, 0, 1, 1], [], []>} : vector<8x84xbf16>, vector<84x256xbf16>, vector<8x256xf32> -> vector<8x256xf32>
    %288 = arith.addf %286, %287 : vector<8x256xf32>
    %cst_136 = arith.constant dense<0.000000e+00> : vector<8x256xf32>
    %289 = tpu.matmul %139, %8, %cst_136 {dimension_numbers = #tpu.dot_dimension_numbers<[1], [0], [0], [1], [0, 0, 1, 1], [], []>} : vector<8x84xbf16>, vector<84x256xbf16>, vector<8x256xf32> -> vector<8x256xf32>
    %290 = arith.addf %288, %289 : vector<8x256xf32>
    %cst_137 = arith.constant dense<0.000000e+00> : vector<8x256xf32>
    %291 = tpu.matmul %152, %10, %cst_137 {dimension_numbers = #tpu.dot_dimension_numbers<[1], [0], [0], [1], [0, 0, 1, 1], [], []>} : vector<8x84xbf16>, vector<84x256xbf16>, vector<8x256xf32> -> vector<8x256xf32>
    %292 = arith.addf %290, %291 : vector<8x256xf32>
    %cst_138 = arith.constant dense<0.000000e+00> : vector<8x256xf32>
    %293 = tpu.matmul %165, %12, %cst_138 {dimension_numbers = #tpu.dot_dimension_numbers<[1], [0], [0], [1], [0, 0, 1, 1], [], []>} : vector<8x84xbf16>, vector<84x256xbf16>, vector<8x256xf32> -> vector<8x256xf32>
    %294 = arith.addf %292, %293 : vector<8x256xf32>
    %cst_139 = arith.constant dense<0.000000e+00> : vector<8x256xf32>
    %295 = tpu.matmul %126, %4, %cst_139 {dimension_numbers = #tpu.dot_dimension_numbers<[1], [0], [0], [1], [0, 0, 1, 1], [], []>} : vector<8x84xbf16>, vector<84x256xbf16>, vector<8x256xf32> -> vector<8x256xf32>
    %cst_140 = arith.constant dense<0.000000e+00> : vector<8x256xf32>
    %296 = tpu.matmul %139, %6, %cst_140 {dimension_numbers = #tpu.dot_dimension_numbers<[1], [0], [0], [1], [0, 0, 1, 1], [], []>} : vector<8x84xbf16>, vector<84x256xbf16>, vector<8x256xf32> -> vector<8x256xf32>
    %297 = arith.addf %295, %296 : vector<8x256xf32>
    %cst_141 = arith.constant dense<0.000000e+00> : vector<8x256xf32>
    %298 = tpu.matmul %152, %8, %cst_141 {dimension_numbers = #tpu.dot_dimension_numbers<[1], [0], [0], [1], [0, 0, 1, 1], [], []>} : vector<8x84xbf16>, vector<84x256xbf16>, vector<8x256xf32> -> vector<8x256xf32>
    %299 = arith.addf %297, %298 : vector<8x256xf32>
    %cst_142 = arith.constant dense<0.000000e+00> : vector<8x256xf32>
    %300 = tpu.matmul %165, %10, %cst_142 {dimension_numbers = #tpu.dot_dimension_numbers<[1], [0], [0], [1], [0, 0, 1, 1], [], []>} : vector<8x84xbf16>, vector<84x256xbf16>, vector<8x256xf32> -> vector<8x256xf32>
    %301 = arith.addf %299, %300 : vector<8x256xf32>
    %cst_143 = arith.constant dense<0.000000e+00> : vector<8x256xf32>
    %302 = tpu.matmul %178, %12, %cst_143 {dimension_numbers = #tpu.dot_dimension_numbers<[1], [0], [0], [1], [0, 0, 1, 1], [], []>} : vector<8x84xbf16>, vector<84x256xbf16>, vector<8x256xf32> -> vector<8x256xf32>
    %303 = arith.addf %301, %302 : vector<8x256xf32>
    %304 = arith.maximumf %294, %303 : vector<8x256xf32>
    %305 = vector.extract_strided_slice %304 {offsets = [0, 0], sizes = [8, 80], strides = [1, 1]} : vector<8x256xf32> to vector<8x80xf32>
    %306 = vector.extract_strided_slice %304 {offsets = [0, 128], sizes = [8, 80], strides = [1, 1]} : vector<8x256xf32> to vector<8x80xf32>
    %307 = arith.maximumf %305, %306 : vector<8x80xf32>
    %308 = vector.broadcast %2 : vector<1x80xf32> to vector<8x80xf32>
    %309 = arith.addf %307, %308 : vector<8x80xf32>
    %cst_144 = arith.constant 0.000000e+00 : f32
    %310 = vector.broadcast %cst_144 : f32 to vector<8x80xf32>
    %311 = arith.maximumf %309, %310 : vector<8x80xf32>
    %312 = arith.truncf %311 : vector<8x80xf32> to vector<8x80xbf16>
    %cst_145 = arith.constant dense<0.000000e+00> : vector<8x256xf32>
    %313 = tpu.matmul %139, %4, %cst_145 {dimension_numbers = #tpu.dot_dimension_numbers<[1], [0], [0], [1], [0, 0, 1, 1], [], []>} : vector<8x84xbf16>, vector<84x256xbf16>, vector<8x256xf32> -> vector<8x256xf32>
    %cst_146 = arith.constant dense<0.000000e+00> : vector<8x256xf32>
    %314 = tpu.matmul %152, %6, %cst_146 {dimension_numbers = #tpu.dot_dimension_numbers<[1], [0], [0], [1], [0, 0, 1, 1], [], []>} : vector<8x84xbf16>, vector<84x256xbf16>, vector<8x256xf32> -> vector<8x256xf32>
    %315 = arith.addf %313, %314 : vector<8x256xf32>
    %cst_147 = arith.constant dense<0.000000e+00> : vector<8x256xf32>
    %316 = tpu.matmul %165, %8, %cst_147 {dimension_numbers = #tpu.dot_dimension_numbers<[1], [0], [0], [1], [0, 0, 1, 1], [], []>} : vector<8x84xbf16>, vector<84x256xbf16>, vector<8x256xf32> -> vector<8x256xf32>
    %317 = arith.addf %315, %316 : vector<8x256xf32>
    %cst_148 = arith.constant dense<0.000000e+00> : vector<8x256xf32>
    %318 = tpu.matmul %178, %10, %cst_148 {dimension_numbers = #tpu.dot_dimension_numbers<[1], [0], [0], [1], [0, 0, 1, 1], [], []>} : vector<8x84xbf16>, vector<84x256xbf16>, vector<8x256xf32> -> vector<8x256xf32>
    %319 = arith.addf %317, %318 : vector<8x256xf32>
    %cst_149 = arith.constant dense<0.000000e+00> : vector<8x256xf32>
    %320 = tpu.matmul %191, %12, %cst_149 {dimension_numbers = #tpu.dot_dimension_numbers<[1], [0], [0], [1], [0, 0, 1, 1], [], []>} : vector<8x84xbf16>, vector<84x256xbf16>, vector<8x256xf32> -> vector<8x256xf32>
    %321 = arith.addf %319, %320 : vector<8x256xf32>
    %cst_150 = arith.constant dense<0.000000e+00> : vector<8x256xf32>
    %322 = tpu.matmul %152, %4, %cst_150 {dimension_numbers = #tpu.dot_dimension_numbers<[1], [0], [0], [1], [0, 0, 1, 1], [], []>} : vector<8x84xbf16>, vector<84x256xbf16>, vector<8x256xf32> -> vector<8x256xf32>
    %cst_151 = arith.constant dense<0.000000e+00> : vector<8x256xf32>
    %323 = tpu.matmul %165, %6, %cst_151 {dimension_numbers = #tpu.dot_dimension_numbers<[1], [0], [0], [1], [0, 0, 1, 1], [], []>} : vector<8x84xbf16>, vector<84x256xbf16>, vector<8x256xf32> -> vector<8x256xf32>
    %324 = arith.addf %322, %323 : vector<8x256xf32>
    %cst_152 = arith.constant dense<0.000000e+00> : vector<8x256xf32>
    %325 = tpu.matmul %178, %8, %cst_152 {dimension_numbers = #tpu.dot_dimension_numbers<[1], [0], [0], [1], [0, 0, 1, 1], [], []>} : vector<8x84xbf16>, vector<84x256xbf16>, vector<8x256xf32> -> vector<8x256xf32>
    %326 = arith.addf %324, %325 : vector<8x256xf32>
    %cst_153 = arith.constant dense<0.000000e+00> : vector<8x256xf32>
    %327 = tpu.matmul %191, %10, %cst_153 {dimension_numbers = #tpu.dot_dimension_numbers<[1], [0], [0], [1], [0, 0, 1, 1], [], []>} : vector<8x84xbf16>, vector<84x256xbf16>, vector<8x256xf32> -> vector<8x256xf32>
    %328 = arith.addf %326, %327 : vector<8x256xf32>
    %cst_154 = arith.constant dense<0.000000e+00> : vector<8x256xf32>
    %329 = tpu.matmul %204, %12, %cst_154 {dimension_numbers = #tpu.dot_dimension_numbers<[1], [0], [0], [1], [0, 0, 1, 1], [], []>} : vector<8x84xbf16>, vector<84x256xbf16>, vector<8x256xf32> -> vector<8x256xf32>
    %330 = arith.addf %328, %329 : vector<8x256xf32>
    %331 = arith.maximumf %321, %330 : vector<8x256xf32>
    %332 = vector.extract_strided_slice %331 {offsets = [0, 0], sizes = [8, 80], strides = [1, 1]} : vector<8x256xf32> to vector<8x80xf32>
    %333 = vector.extract_strided_slice %331 {offsets = [0, 128], sizes = [8, 80], strides = [1, 1]} : vector<8x256xf32> to vector<8x80xf32>
    %334 = arith.maximumf %332, %333 : vector<8x80xf32>
    %335 = vector.broadcast %2 : vector<1x80xf32> to vector<8x80xf32>
    %336 = arith.addf %334, %335 : vector<8x80xf32>
    %cst_155 = arith.constant 0.000000e+00 : f32
    %337 = vector.broadcast %cst_155 : f32 to vector<8x80xf32>
    %338 = arith.maximumf %336, %337 : vector<8x80xf32>
    %339 = arith.truncf %338 : vector<8x80xf32> to vector<8x80xbf16>
    %cst_156 = arith.constant dense<0.000000e+00> : vector<8x120xf32>
    %340 = tpu.matmul %231, %14, %cst_156 {dimension_numbers = #tpu.dot_dimension_numbers<[1], [0], [0], [1], [0, 0, 1, 1], [], []>} : vector<8x80xbf16>, vector<80x120xbf16>, vector<8x120xf32> -> vector<8x120xf32>
    %cst_157 = arith.constant dense<0.000000e+00> : vector<8x120xf32>
    %341 = tpu.matmul %258, %16, %cst_157 {dimension_numbers = #tpu.dot_dimension_numbers<[1], [0], [0], [1], [0, 0, 1, 1], [], []>} : vector<8x80xbf16>, vector<80x120xbf16>, vector<8x120xf32> -> vector<8x120xf32>
    %342 = arith.addf %340, %341 : vector<8x120xf32>
    %cst_158 = arith.constant dense<0.000000e+00> : vector<8x120xf32>
    %343 = tpu.matmul %285, %18, %cst_158 {dimension_numbers = #tpu.dot_dimension_numbers<[1], [0], [0], [1], [0, 0, 1, 1], [], []>} : vector<8x80xbf16>, vector<80x120xbf16>, vector<8x120xf32> -> vector<8x120xf32>
    %344 = arith.addf %342, %343 : vector<8x120xf32>
    %cst_159 = arith.constant dense<0.000000e+00> : vector<8x120xf32>
    %345 = tpu.matmul %312, %20, %cst_159 {dimension_numbers = #tpu.dot_dimension_numbers<[1], [0], [0], [1], [0, 0, 1, 1], [], []>} : vector<8x80xbf16>, vector<80x120xbf16>, vector<8x120xf32> -> vector<8x120xf32>
    %346 = arith.addf %344, %345 : vector<8x120xf32>
    %cst_160 = arith.constant dense<0.000000e+00> : vector<8x120xf32>
    %347 = tpu.matmul %339, %22, %cst_160 {dimension_numbers = #tpu.dot_dimension_numbers<[1], [0], [0], [1], [0, 0, 1, 1], [], []>} : vector<8x80xbf16>, vector<80x120xbf16>, vector<8x120xf32> -> vector<8x120xf32>
    %348 = arith.addf %346, %347 : vector<8x120xf32>
    %c0_161 = arith.constant 0 : index
    %c0_162 = arith.constant 0 : index
    %349 = vector.load %arg7[%c0_161, %c0_162] : memref<1x120xf32, #tpu.memory_space<vmem>>, vector<1x120xf32>
    %350 = vector.broadcast %349 : vector<1x120xf32> to vector<8x120xf32>
    %351 = arith.addf %348, %350 : vector<8x120xf32>
    %cst_163 = arith.constant 0.000000e+00 : f32
    %352 = vector.broadcast %cst_163 : f32 to vector<8x120xf32>
    %353 = arith.maximumf %351, %352 : vector<8x120xf32>
    %354 = arith.truncf %353 : vector<8x120xf32> to vector<8x120xbf16>
    %c0_164 = arith.constant 0 : index
    %c0_165 = arith.constant 0 : index
    %355 = vector.load %arg8[%c0_164, %c0_165] : memref<120x84xbf16, #tpu.memory_space<vmem>>, vector<120x84xbf16>
    %cst_166 = arith.constant dense<0.000000e+00> : vector<8x84xf32>
    %356 = tpu.matmul %354, %355, %cst_166 {dimension_numbers = #tpu.dot_dimension_numbers<[1], [0], [0], [1], [0, 0, 1, 1], [], []>} : vector<8x120xbf16>, vector<120x84xbf16>, vector<8x84xf32> -> vector<8x84xf32>
    %c0_167 = arith.constant 0 : index
    %c0_168 = arith.constant 0 : index
    %357 = vector.load %arg9[%c0_167, %c0_168] : memref<1x84xf32, #tpu.memory_space<vmem>>, vector<1x84xf32>
    %358 = vector.broadcast %357 : vector<1x84xf32> to vector<8x84xf32>
    %359 = arith.addf %356, %358 : vector<8x84xf32>
    %cst_169 = arith.constant 0.000000e+00 : f32
    %360 = vector.broadcast %cst_169 : f32 to vector<8x84xf32>
    %361 = arith.maximumf %359, %360 : vector<8x84xf32>
    %362 = arith.truncf %361 : vector<8x84xf32> to vector<8x84xbf16>
    %c0_170 = arith.constant 0 : index
    %c0_171 = arith.constant 0 : index
    %363 = vector.load %arg10[%c0_170, %c0_171] : memref<84x10xbf16, #tpu.memory_space<vmem>>, vector<84x10xbf16>
    %cst_172 = arith.constant dense<0.000000e+00> : vector<8x10xf32>
    %364 = tpu.matmul %362, %363, %cst_172 {dimension_numbers = #tpu.dot_dimension_numbers<[1], [0], [0], [1], [0, 0, 1, 1], [], []>} : vector<8x84xbf16>, vector<84x10xbf16>, vector<8x10xf32> -> vector<8x10xf32>
    %c0_173 = arith.constant 0 : index
    %c0_174 = arith.constant 0 : index
    %365 = vector.load %arg11[%c0_173, %c0_174] : memref<1x10xf32, #tpu.memory_space<vmem>>, vector<1x10xf32>
    %366 = vector.broadcast %365 : vector<1x10xf32> to vector<8x10xf32>
    %367 = arith.addf %364, %366 : vector<8x10xf32>
    %cst_175 = arith.constant dense<0xFF800000> : vector<8xf32>
    %368 = vector.multi_reduction <maximumf>, %367, %cst_175 [1] : vector<8x10xf32> to vector<8xf32>
    %369 = vector.shape_cast %368 : vector<8xf32> to vector<8x1xf32>
    %370 = vector.broadcast %369 : vector<8x1xf32> to vector<8x10xf32>
    %371 = arith.subf %367, %370 : vector<8x10xf32>
    %372 = math.exp %371 : vector<8x10xf32>
    %cst_176 = arith.constant dense<0.000000e+00> : vector<8xf32>
    %373 = vector.multi_reduction <add>, %372, %cst_176 [1] : vector<8x10xf32> to vector<8xf32>
    %374 = vector.shape_cast %373 : vector<8xf32> to vector<8x1xf32>
    %375 = math.log %374 : vector<8x1xf32>
    %376 = arith.addf %375, %369 : vector<8x1xf32>
    %377 = vector.broadcast %376 : vector<8x1xf32> to vector<8x10xf32>
    %378 = arith.subf %367, %377 : vector<8x10xf32>
    %c0_177 = arith.constant 0 : index
    %c0_178 = arith.constant 0 : index
    %379 = vector.load %arg12[%c0_177, %c0_178] : memref<8x10xf32, #tpu.memory_space<vmem>>, vector<8x10xf32>
    tpu.vector_store %arg12[%c0_177, %c0_178], %378 {strides = array<i32>} : memref<8x10xf32, #tpu.memory_space<vmem>>, vector<8x10xf32>,
    return
  }
  func.func @transform_0(%arg0: i32) -> (i32, i32) {
    %c0_i32 = arith.constant 0 : i32
    %c0_i32_0 = arith.constant 0 : i32
    return %arg0, %c0_i32 : i32, i32
  }
  func.func @transform_1(%arg0: i32) -> (i32, i32) {
    %c0_i32 = arith.constant 0 : i32
    %c0_i32_0 = arith.constant 0 : i32
    %c0_i32_1 = arith.constant 0 : i32
    return %c0_i32, %c0_i32_0 : i32, i32
  }
  func.func @transform_2(%arg0: i32) -> (i32, i32) {
    %c0_i32 = arith.constant 0 : i32
    %c0_i32_0 = arith.constant 0 : i32
    %c0_i32_1 = arith.constant 0 : i32
    return %c0_i32, %c0_i32_0 : i32, i32
  }
  func.func @transform_3(%arg0: i32) -> (i32, i32, i32) {
    %c0_i32 = arith.constant 0 : i32
    %c0_i32_0 = arith.constant 0 : i32
    %c0_i32_1 = arith.constant 0 : i32
    %c0_i32_2 = arith.constant 0 : i32
    return %c0_i32, %c0_i32_0, %c0_i32_1 : i32, i32, i32
  }
  func.func @transform_4(%arg0: i32) -> (i32, i32) {
    %c0_i32 = arith.constant 0 : i32
    %c0_i32_0 = arith.constant 0 : i32
    %c0_i32_1 = arith.constant 0 : i32
    return %c0_i32, %c0_i32_0 : i32, i32
  }
  func.func @transform_5(%arg0: i32) -> (i32, i32, i32) {
    %c0_i32 = arith.constant 0 : i32
    %c0_i32_0 = arith.constant 0 : i32
    %c0_i32_1 = arith.constant 0 : i32
    %c0_i32_2 = arith.constant 0 : i32
    return %c0_i32, %c0_i32_0, %c0_i32_1 : i32, i32, i32
  }
  func.func @transform_6(%arg0: i32) -> (i32, i32) {
    %c0_i32 = arith.constant 0 : i32
    %c0_i32_0 = arith.constant 0 : i32
    %c0_i32_1 = arith.constant 0 : i32
    return %c0_i32, %c0_i32_0 : i32, i32
  }
  func.func @transform_7(%arg0: i32) -> (i32, i32) {
    %c0_i32 = arith.constant 0 : i32
    %c0_i32_0 = arith.constant 0 : i32
    %c0_i32_1 = arith.constant 0 : i32
    return %c0_i32, %c0_i32_0 : i32, i32
  }
  func.func @transform_8(%arg0: i32) -> (i32, i32) {
    %c0_i32 = arith.constant 0 : i32
    %c0_i32_0 = arith.constant 0 : i32
    %c0_i32_1 = arith.constant 0 : i32
    return %c0_i32, %c0_i32_0 : i32, i32
  }
  func.func @transform_9(%arg0: i32) -> (i32, i32) {
    %c0_i32 = arith.constant 0 : i32
    %c0_i32_0 = arith.constant 0 : i32
    %c0_i32_1 = arith.constant 0 : i32
    return %c0_i32, %c0_i32_0 : i32, i32
  }
  func.func @transform_10(%arg0: i32) -> (i32, i32) {
    %c0_i32 = arith.constant 0 : i32
    %c0_i32_0 = arith.constant 0 : i32
    %c0_i32_1 = arith.constant 0 : i32
    return %c0_i32, %c0_i32_0 : i32, i32
  }
  func.func @transform_11(%arg0: i32) -> (i32, i32) {
    %c0_i32 = arith.constant 0 : i32
    %c0_i32_0 = arith.constant 0 : i32
    return %arg0, %c0_i32 : i32, i32
  }
}

</mosaic_0001>

<bundles_post_ra>
// kernel: tile.13
= control target key start
LH: loop header
LB: loop body
LE: loop exit
PB: predicated region body
PF: predicated region fallthrough
CT: control target
= control target key end

     0   :  { %s28_s0 = inlined_call_operand.vmem [shape: f32[6], index: 0, kind: input, shape index: {}]   ;;  %s29_s1 = inlined_call_operand.vmem [shape: f32[14,6], index: 1, kind: output, shape index: {}]  }
   0x1   :  { %v4_v0 = vld [vmem:[%s28_s0] ss:$0 sm:$0xff] }
   0x2   :  { %5 = vst [vmem:[%s29_s1] sm:$0xff] %v4_v0  ;;  %8 = vst [vmem:[%s29_s1 + $0x8] sm:$0xff] %v4_v0 }

// kernel: tile.14
= control target key start
LH: loop header
LB: loop body
LE: loop exit
PB: predicated region body
PF: predicated region fallthrough
CT: control target
= control target key end

     0   :  { %s115_s10 = smov 78   ;;  %s116_s11 = smov 66   ;;  %vm3_vm0 = vcmask 48128   ;;  %vm9_vm1 = vcmask 687728   ;;  %vm15_vm2 = vcmask 638528   ;;  %vm21_vm3 = vcmask 589328   ;;  %s183_s0 = inlined_call_operand.vmem [shape: f32[14,6], index: 0, kind: input, shape index: {}]   ;;  %s184_s1 = inlined_call_operand.vmem [shape: f32[1,84], index: 1, kind: output, shape index: {}]  }
   0x1   :  { %v89_v0 = vld [vmem:[%s183_s0 + $0xd] sm:$0x1]   ;;  %v91_v1 = vld [vmem:[%s183_s0 + $0xb] sm:$0x1]   ;;  %v90_v2 = vld [vmem:[%s183_s0 + $0xc] sm:$0x1]  }
   0x2   :  { %7 = vrot.lane.b32.xlu0 %v89_v0, %s115_s10  ;;  %19 = vrot.lane.b32.xlu1 %v91_v1, %s116_s11  ;;  %v92_v3 = vld [vmem:[%s183_s0 + $0xa] sm:$0x1]   ;;  %s117_s16 = smov 72   ;;  %s118_s17 = smov 60   ;;  %v93_v4 = vld [vmem:[%s183_s0 + $0x9] sm:$0x1]  }
   0x3   :  { %v94_v5 = vld [vmem:[%s183_s0 + $0x8] sm:$0x1]   ;;  %v2_v6 = vld [vmem:[%s183_s0] sm:$0x1]   ;;  %s119_s24 = smov 54   ;;  %s120_s25 = smov 48  }
   0x4   :  { %4 = vst.msk [vmem:[#allocation0] sm:$0x1] %vm3_vm0, %v2_v6   ;;  %v95_v7 = vld [vmem:[%s183_s0 + $0x7] sm:$0x1]   ;;  %v96_v8 = vld [vmem:[%s183_s0 + $0x6] sm:$0x1]  }
   0x5   :  { %s121_s30 = smov 42   ;;  %s122_s2 = smov 36   ;;  %v97_v9 = vld [vmem:[%s183_s0 + $0x5] sm:$0x1]   ;;  %v98_v10 = vld [vmem:[%s183_s0 + $0x4] sm:$0x1]  }
   0x6   :  { %13 = vrot.lane.b32.xlu0 %v90_v2, %s117_s16  ;;  %25 = vrot.lane.b32.xlu1 %v92_v3, %s118_s17  ;;  %s123_s7 = smov 30   ;;  %s124_s8 = smov 24   ;;  %v99_v11 = vld [vmem:[%s183_s0 + $0x3] sm:$0x1]   ;;  %v100_v12 = vld [vmem:[%s183_s0 + $0x2] sm:$0x1]  }
   0x7   :  { %s125_s13 = smov 18   ;;  %s126_s14 = smov 12   ;;  %v101_v13 = vld [vmem:[%s183_s0 + $0x1] sm:$0x1]   ;;  %vm27_vm4 = vcmask 540128   ;;  %vm33_vm5 = vcmask 490928  }
   0x8   :  { %s127_s0 = smov 6   ;;  %vm39_vm6 = vcmask 441728   ;;  %vm45_vm7 = vcmask 392528   ;;  %vm51_vm8 = vcmask 343328   ;;  %vm57_vm9 = vcmask 294128  }
   0x9   :  { %vm63_vm10 = vcmask 244928   ;;  %vm69_vm11 = vcmask 195728   ;;  %vm75_vm12 = vcmask 146528   ;;  %vm81_vm13 = vcmask 97328  }
   0xa   :  { %31 = vrot.lane.b32.xlu0 %v93_v4, %s119_s24  ;;  %37 = vrot.lane.b32.xlu1 %v94_v5, %s120_s25 }
   0xe   :  { %43 = vrot.lane.b32.xlu0 %v95_v7, %s121_s30  ;;  %49 = vrot.lane.b32.xlu1 %v96_v8, %s122_s2 }
  0x12   :  { %55 = vrot.lane.b32.xlu0 %v97_v9, %s123_s7  ;;  %61 = vrot.lane.b32.xlu1 %v98_v10, %s124_s8 }
  0x16   :  { %67 = vrot.lane.b32.xlu0 %v99_v11, %s125_s13  ;;  %73 = vrot.lane.b32.xlu1 %v100_v12, %s126_s14 }
  0x1a   :  { %79 = vrot.lane.b32.xlu0 %v101_v13, %s127_s0 }
  0x74   :  { %v8_v14 = vpop.permute.xlu0 %7   ;;  %v20_v15 = vpop.permute.xlu1 %19  }
  0x75   :  { %10 = vst.msk [vmem:[#allocation0] sm:$0x1] %vm9_vm1, %v8_v14  }
  0x78   :  { %v14_v16 = vpop.permute.xlu0 %13   ;;  %v26_v17 = vpop.permute.xlu1 %25  }
  0x79   :  { %16 = vst.msk [vmem:[#allocation0] sm:$0x1] %vm15_vm2, %v14_v16  }
  0x7a   :  { %22 = vst.msk [vmem:[#allocation0] sm:$0x1] %vm21_vm3, %v20_v15  }
  0x7b   :  { %28 = vst.msk [vmem:[#allocation0] sm:$0x1] %vm27_vm4, %v26_v17  }
  0x7c   :  { %v32_v18 = vpop.permute.xlu0 %31   ;;  %v38_v19 = vpop.permute.xlu1 %37  }
  0x7d   :  { %34 = vst.msk [vmem:[#allocation0] sm:$0x1] %vm33_vm5, %v32_v18  }
  0x7e   :  { %40 = vst.msk [vmem:[#allocation0] sm:$0x1] %vm39_vm6, %v38_v19  }
  0x80   :  { %v44_v20 = vpop.permute.xlu0 %43   ;;  %v50_v21 = vpop.permute.xlu1 %49  }
  0x81   :  { %46 = vst.msk [vmem:[#allocation0] sm:$0x1] %vm45_vm7, %v44_v20  }
  0x82   :  { %52 = vst.msk [vmem:[#allocation0] sm:$0x1] %vm51_vm8, %v50_v21  }
  0x84   :  { %v56_v22 = vpop.permute.xlu0 %55   ;;  %v62_v23 = vpop.permute.xlu1 %61  }
  0x85   :  { %58 = vst.msk [vmem:[#allocation0] sm:$0x1] %vm57_vm9, %v56_v22  }
  0x86   :  { %64 = vst.msk [vmem:[#allocation0] sm:$0x1] %vm63_vm10, %v62_v23  }
  0x88   :  { %v68_v24 = vpop.permute.xlu0 %67   ;;  %v74_v25 = vpop.permute.xlu1 %73  }
  0x89   :  { %70 = vst.msk [vmem:[#allocation0] sm:$0x1] %vm69_vm11, %v68_v24  }
  0x8a   :  { %76 = vst.msk [vmem:[#allocation0] sm:$0x1] %vm75_vm12, %v74_v25  }
  0x8c   :  { %v80_v26 = vpop.permute.xlu0 %79  }
  0x8d   :  { %82 = vst.msk [vmem:[#allocation0] sm:$0x1] %vm81_vm13, %v80_v26  }
  0x94   :  { %v86_v27 = vld [vmem:[#allocation0] sm:$0x1] }
  0x95   :  { %88 = vst [vmem:[%s184_s1] sm:$0x1] %v86_v27 }

// kernel: tile.18
= control target key start
LH: loop header
LB: loop body
LE: loop exit
PB: predicated region body
PF: predicated region fallthrough
CT: control target
= control target key end

     0   :  { %s22_s0 = inlined_call_operand.vmem [shape: f32[16], index: 0, kind: input, shape index: {}]   ;;  %s23_s1 = inlined_call_operand.vmem [shape: f32[5,16], index: 1, kind: output, shape index: {}]  }
   0x1   :  { %v4_v0 = vld [vmem:[%s22_s0] ss:$0 sm:$0xff] }
   0x2   :  { %5 = vst [vmem:[%s23_s1] sm:$0xff] %v4_v0 }

// kernel: tile.19
= control target key start
LH: loop header
LB: loop body
LE: loop exit
PB: predicated region body
PF: predicated region fallthrough
CT: control target
= control target key end

     0   :  { %s43_s10 = smov 64   ;;  %s44_s11 = smov 32   ;;  %vm3_vm0 = vcmask 130048   ;;  %vm9_vm1 = vcmask 654848   ;;  %vm15_vm2 = vcmask 523648   ;;  %vm21_vm3 = vcmask 392448   ;;  %s75_s0 = inlined_call_operand.vmem [shape: f32[5,16], index: 0, kind: input, shape index: {}]   ;;  %s76_s1 = inlined_call_operand.vmem [shape: f32[1,80], index: 1, kind: output, shape index: {}]  }
   0x1   :  { %v35_v0 = vld [vmem:[%s75_s0 + $0x4] sm:$0x1]   ;;  %v37_v1 = vld [vmem:[%s75_s0 + $0x2] sm:$0x1]   ;;  %v36_v2 = vld [vmem:[%s75_s0 + $0x3] sm:$0x1]  }
   0x2   :  { %7 = vrot.lane.b32.xlu0 %v35_v0, %s43_s10  ;;  %19 = vrot.lane.b32.xlu1 %v37_v1, %s44_s11  ;;  %v38_v3 = vld [vmem:[%s75_s0 + $0x1] sm:$0x1]   ;;  %v2_v4 = vld [vmem:[%s75_s0] sm:$0x1]   ;;  %s45_s0 = smov 48   ;;  %s46_s18 = smov 16  }
   0x3   :  { %4 = vst.msk [vmem:[#allocation0] sm:$0x1] %vm3_vm0, %v2_v4   ;;  %vm27_vm4 = vcmask 261248  }
   0x6   :  { %13 = vrot.lane.b32.xlu0 %v36_v2, %s45_s0  ;;  %25 = vrot.lane.b32.xlu1 %v38_v3, %s46_s18 }
  0x74   :  { %v8_v5 = vpop.permute.xlu0 %7   ;;  %v20_v6 = vpop.permute.xlu1 %19  }
  0x75   :  { %10 = vst.msk [vmem:[#allocation0] sm:$0x1] %vm9_vm1, %v8_v5  }
  0x78   :  { %v14_v7 = vpop.permute.xlu0 %13   ;;  %v26_v8 = vpop.permute.xlu1 %25  }
  0x79   :  { %16 = vst.msk [vmem:[#allocation0] sm:$0x1] %vm15_vm2, %v14_v7  }
  0x7a   :  { %22 = vst.msk [vmem:[#allocation0] sm:$0x1] %vm21_vm3, %v20_v6  }
  0x7b   :  { %28 = vst.msk [vmem:[#allocation0] sm:$0x1] %vm27_vm4, %v26_v8  }
  0x82   :  { %v32_v9 = vld [vmem:[#allocation0] sm:$0x1] }
  0x83   :  { %34 = vst [vmem:[%s76_s1] sm:$0x1] %v32_v9 }

// kernel: net_forward.1
= control target key start
LH: loop header
LB: loop body
LE: loop exit
PB: predicated region body
PF: predicated region fallthrough
CT: control target
= control target key end

     0   :  { %vm281_vm0 = vcmask 261120   ;;  %s5800_s25 = smov 64   ;;  %s5801_s26 = smov 96   ;;  %vm393_vm1 = vcmask 523264   ;;  %vm330_vm2 = vcmask 785408   ;;  %vm1834_vm3 = vcmask 1041408   ;;  %s8570_s0 = inlined_call_operand.vmem [shape: bf16[8,1024], index: 0, kind: input, shape index: {}]   ;;  %s8571_s1 = inlined_call_operand.vmem [shape: bf16[160,256], index: 1, kind: input, shape index: {}]   ;;  %s8572_s3 = inlined_call_operand.vmem [shape: bf16[5,84,256], index: 3, kind: input, shape index: {}]   ;;  %s8573_s2 = inlined_call_operand.vmem [shape: f32[1,84], index: 2, kind: input, shape index: {}]   ;;  %s8574_s5 = inlined_call_operand.vmem [shape: bf16[5,80,120], index: 5, kind: input, shape index: {}]   ;;  %s8575_s4 = inlined_call_operand.vmem [shape: f32[1,80], index: 4, kind: input, shape index: {}]   ;;  %s8576_s7 = inlined_call_operand.vmem [shape: bf16[120,84], index: 7, kind: input, shape index: {}]   ;;  %s8577_s9 = inlined_call_operand.vmem [shape: bf16[84,10], index: 9, kind: input, shape index: {}]   ;;  %s8578_s6 = inlined_call_operand.vmem [shape: f32[1,120], index: 6, kind: input, shape index: {}]   ;;  %s8579_s8 = inlined_call_operand.vmem [shape: f32[1,84], index: 8, kind: input, shape index: {}]   ;;  %s8580_s10 = inlined_call_operand.vmem [shape: f32[1,10], index: 10, kind: input, shape index: {}]   ;;  %s8581_s11 = inlined_call_operand.vmem [shape: f32[8,10], index: 11, kind: output, shape index: {}]  }
   0x1   :  { %v174_v0 = vld [vmem:[%s8570_s0] sm:$0xff]  ;;  %v5884_v5 = vld [vmem:[%s8571_s1 + $0x14] ss:$8 sps:$4 sm:$0xff]   ;;  %v5896_v6 = vld [vmem:[%s8571_s1 + $0x10] ss:$8 sps:$4 sm:$0xff]   ;;  %s5802_s16 = smov 32  }
   0x2   :  { %v5869_v1 = vcombine.low %v174_v0, %v174_v0  ;;  %v5874_v2 = vld [vmem:[%s8571_s1 + $0x4] ss:$8 sps:$4 sm:$0xff]   ;;  %v5879_v3 = vld [vmem:[%s8571_s1] ss:$8 sps:$4 sm:$0xff]   ;;  %v4967_v4 = vcombine.high %v174_v0, %v174_v0  ;;  %v5919_v9 = vld [vmem:[%s8571_s1 + $0x34] ss:$8 sps:$4 sm:$0xff]  }
   0x3   :  { %285 = vmatprep.subr.bf16.mxu0 %v5874_v2  ;;  %336 = vmatprep.subr.bf16.mxu1 %v5874_v2  ;;  %v5903_v7 = vld [vmem:[%s8571_s1 + $0x24] ss:$8 sps:$4 sm:$0xff]   ;;  %v5913_v8 = vld [vmem:[%s8571_s1 + $0x20] ss:$8 sps:$4 sm:$0xff]   ;;  %v5930_v10 = vld [vmem:[%s8571_s1 + $0x30] ss:$8 sps:$4 sm:$0xff]  }
   0x4   :  { %389 = vrot.lane.b32.xlu1 %v5869_v1, %s5800_s25  ;;  %326 = vrot.lane.b32.xlu0 %v5869_v1, %s5801_s26  ;;  %v5936_v11 = vld [vmem:[%s8571_s1 + $0x44] ss:$8 sps:$4 sm:$0xff]   ;;  %v5951_v15 = vld [vmem:[%s8571_s1 + $0x40] ss:$8 sps:$4 sm:$0xff]   ;;  %vm1830_vm4 = vcmask 687104   ;;  %vm5805_vm5 = vmmov 0  }
   0x5   :  { %4988 = vmatprep.mubr.msk.bf16.mxu0 %vm281_vm0, %v4967_v4  ;;  %286 = vmatpush1.bf16.msra.mxu0 %v5879_v3  ;;  %v497_v12 = vld [vmem:[%s8570_s0 + $0x4] sm:$0xff]  ;;  %v5959_v16 = vld [vmem:[%s8571_s1 + $0x54] ss:$8 sps:$4 sm:$0xff]   ;;  %v5969_v17 = vld [vmem:[%s8571_s1 + $0x50] ss:$8 sps:$4 sm:$0xff]   ;;  %vm4300_vm6 = vcmask 654336  }
   0x6   :  { %287 = vmatprep.subr.bf16.mxu0 %v5884_v5  ;;  %337 = vmatpush1.bf16.msra.mxu1 %v5879_v3  ;;  %v5942_v13 = vcombine.high %v497_v12, %v497_v12  ;;  %v5944_v14 = vcombine.low %v497_v12, %v497_v12  ;;  %v5977_v18 = vld [vmem:[%s8571_s1 + $0x64] ss:$8 sps:$4 sm:$0xff]   ;;  %v5987_v19 = vld [vmem:[%s8571_s1 + $0x60] ss:$8 sps:$4 sm:$0xff]   ;;  %v5995_v20 = vld [vmem:[%s8571_s1 + $0x74] ss:$8 sps:$4 sm:$0xff]  }
   0x7   :  { %338 = vmatprep.subr.bf16.mxu1 %v5884_v5  ;;  %v6005_v21 = vld [vmem:[%s8571_s1 + $0x70] ss:$8 sps:$4 sm:$0xff]   ;;  %v6011_v22 = vld [vmem:[%s8571_s1 + $0x84] ss:$8 sps:$4 sm:$0xff]   ;;  %v6019_v23 = vld [vmem:[%s8571_s1 + $0x80] ss:$8 sps:$4 sm:$0xff]  }
   0x8   :  { %391 = vrot.lane.b32.xlu1 %v4967_v4, %s5800_s25  ;;  %328 = vrot.lane.b32.xlu0 %v4967_v4, %s5801_s26  ;;  %v710_v24 = vld [vmem:[%s8570_s0 + $0x8] sm:$0xff]  ;;  %v6028_v25 = vld [vmem:[%s8571_s1 + $0x94] ss:$8 sps:$4 sm:$0xff]   ;;  %vm4720_vm7 = vcmask 1043456   ;;  %vm4716_vm8 = vcmask 982016   ;;  %vm4863_vm9 = vcmask 80896  }
   0x9   :  { %288 = vmatpush1.bf16.msra.mxu0 %v5896_v6  ;;  %v6030_v26 = vcombine.high %v710_v24, %v710_v24  ;;  %v6032_v27 = vcombine.low %v710_v24, %v710_v24  ;;  %v6042_v28 = vld [vmem:[%s8571_s1 + $0x90] ss:$8 sps:$4 sm:$0xff]  }
   0xa   :  { %289 = vmatprep.subr.bf16.mxu0 %v5903_v7  ;;  %339 = vmatpush1.bf16.msra.mxu1 %v5896_v6  ;;  %v923_v29 = vld [vmem:[%s8570_s0 + $0xc] sm:$0xff]  ;;  %v1349_v60 = vld [vmem:[%s8570_s0 + $0x14] sm:$0xff] }
   0xb   :  { %340 = vmatprep.subr.bf16.mxu1 %v5903_v7  ;;  %v6085_v30 = vcombine.high %v923_v29, %v923_v29  ;;  %v6087_v31 = vcombine.low %v923_v29, %v923_v29  ;;  %v1136_v44 = vld [vmem:[%s8570_s0 + $0x10] sm:$0xff]  ;;  %v6299_v61 = vcombine.high %v1349_v60, %v1349_v60  ;;  %v6301_v62 = vcombine.low %v1349_v60, %v1349_v60 }
   0xc   :  { %442 = vrot.lane.b32.xlu1 %v4967_v4, %s5802_s16  ;;  %440 = vrot.lane.b32.xlu0 %v5869_v1, %s5802_s16  ;;  %v6187_v45 = vcombine.high %v1136_v44, %v1136_v44  ;;  %v6189_v46 = vcombine.low %v1136_v44, %v1136_v44 }
   0xd   :  { %290 = vmatpush1.bf16.msra.mxu0 %v5913_v8 }
   0xe   :  { %291 = vmatprep.subr.bf16.mxu0 %v5919_v9  ;;  %341 = vmatpush1.bf16.msra.mxu1 %v5913_v8 }
   0xf   :  { %342 = vmatprep.subr.bf16.mxu1 %v5919_v9 }
  0x10   :  { %550 = vrot.lane.b32.xlu1 %v5942_v13, %s5801_s26  ;;  %548 = vrot.lane.b32.xlu0 %v5944_v14, %s5801_s26 }
  0x11   :  { %292 = vmatpush1.bf16.msra.mxu0 %v5930_v10 }
  0x12   :  { %293 = vmatprep.subr.bf16.mxu0 %v5936_v11  ;;  %343 = vmatpush1.bf16.msra.mxu1 %v5930_v10 }
  0x13   :  { %344 = vmatprep.subr.bf16.mxu1 %v5936_v11 }
  0x14   :  { %606 = vrot.lane.b32.xlu1 %v5942_v13, %s5800_s25  ;;  %604 = vrot.lane.b32.xlu0 %v5944_v14, %s5800_s25 }
  0x15   :  { %294 = vmatpush1.bf16.msra.mxu0 %v5951_v15 }
  0x16   :  { %295 = vmatprep.subr.bf16.mxu0 %v5959_v16  ;;  %345 = vmatpush1.bf16.msra.mxu1 %v5951_v15 }
  0x17   :  { %346 = vmatprep.subr.bf16.mxu1 %v5959_v16 }
  0x18   :  { %656 = vrot.lane.b32.xlu1 %v5942_v13, %s5802_s16  ;;  %654 = vrot.lane.b32.xlu0 %v5944_v14, %s5802_s16 }
  0x19   :  { %296 = vmatpush1.bf16.msra.mxu0 %v5969_v17 }
  0x1a   :  { %297 = vmatprep.subr.bf16.mxu0 %v5977_v18  ;;  %347 = vmatpush1.bf16.msra.mxu1 %v5969_v17 }
  0x1b   :  { %348 = vmatprep.subr.bf16.mxu1 %v5977_v18 }
  0x1c   :  { %763 = vrot.lane.b32.xlu1 %v6030_v26, %s5801_s26  ;;  %761 = vrot.lane.b32.xlu0 %v6032_v27, %s5801_s26 }
  0x1d   :  { %298 = vmatpush1.bf16.msra.mxu0 %v5987_v19 }
  0x1e   :  { %299 = vmatprep.subr.bf16.mxu0 %v5995_v20  ;;  %349 = vmatpush1.bf16.msra.mxu1 %v5987_v19 }
  0x1f   :  { %350 = vmatprep.subr.bf16.mxu1 %v5995_v20 }
  0x20   :  { %819 = vrot.lane.b32.xlu1 %v6030_v26, %s5800_s25  ;;  %817 = vrot.lane.b32.xlu0 %v6032_v27, %s5800_s25 }
  0x21   :  { %300 = vmatpush1.bf16.msra.mxu0 %v6005_v21 }
  0x22   :  { %301 = vmatprep.subr.bf16.mxu0 %v6011_v22  ;;  %351 = vmatpush1.bf16.msra.mxu1 %v6005_v21 }
  0x23   :  { %352 = vmatprep.subr.bf16.mxu1 %v6011_v22 }
  0x24   :  { %869 = vrot.lane.b32.xlu1 %v6030_v26, %s5802_s16  ;;  %867 = vrot.lane.b32.xlu0 %v6032_v27, %s5802_s16 }
  0x25   :  { %302 = vmatpush1.bf16.msra.mxu0 %v6019_v23 }
  0x26   :  { %303 = vmatprep.subr.bf16.mxu0 %v6028_v25  ;;  %353 = vmatpush1.bf16.msra.mxu1 %v6019_v23 }
  0x27   :  { %354 = vmatprep.subr.bf16.mxu1 %v6028_v25 }
  0x28   :  { %976 = vrot.lane.b32.xlu1 %v6085_v30, %s5801_s26  ;;  %974 = vrot.lane.b32.xlu0 %v6087_v31, %s5801_s26 }
  0x29   :  { %304 = vmatpush1.bf16.msra.mxu0 %v6042_v28 }
  0x2a   :  { %399 = vmatprep.subr.bf16.mxu0 %v5874_v2  ;;  %355 = vmatpush1.bf16.msra.mxu1 %v6042_v28 }
  0x2b   :  { %450 = vmatprep.subr.bf16.mxu1 %v5874_v2 }
  0x2c   :  { %318 = vmatmul.mubr.bf16.vlgmr.msra.gmra.mrb[0].mxu0 %v5869_v1  ;;  %1032 = vrot.lane.b32.xlu1 %v6085_v30, %s5800_s25 }
  0x2d   :  { %400 = vmatpush1.bf16.msra.mxu0 %v5879_v3  ;;  %1030 = vrot.lane.b32.xlu0 %v6087_v31, %s5800_s25 }
  0x2e   :  { %401 = vmatprep.subr.bf16.mxu0 %v5884_v5 }
  0x30   :  { %1082 = vrot.lane.b32.xlu1 %v6085_v30, %s5802_s16 }
  0x31   :  { %402 = vmatpush1.bf16.msra.mxu0 %v5896_v6  ;;  %1080 = vrot.lane.b32.xlu0 %v6087_v31, %s5802_s16 }
  0x32   :  { %403 = vmatprep.subr.bf16.mxu0 %v5903_v7 }
  0x34   :  { %1189 = vrot.lane.b32.xlu1 %v6187_v45, %s5801_s26 }
  0x35   :  { %404 = vmatpush1.bf16.msra.mxu0 %v5913_v8  ;;  %1187 = vrot.lane.b32.xlu0 %v6189_v46, %s5801_s26 }
  0x36   :  { %405 = vmatprep.subr.bf16.mxu0 %v5919_v9 }
  0x38   :  { %1245 = vrot.lane.b32.xlu1 %v6187_v45, %s5800_s25 }
  0x39   :  { %406 = vmatpush1.bf16.msra.mxu0 %v5930_v10  ;;  %1243 = vrot.lane.b32.xlu0 %v6189_v46, %s5800_s25 }
  0x3a   :  { %407 = vmatprep.subr.bf16.mxu0 %v5936_v11 }
  0x3c   :  { %1295 = vrot.lane.b32.xlu1 %v6187_v45, %s5802_s16 }
  0x3d   :  { %408 = vmatpush1.bf16.msra.mxu0 %v5951_v15  ;;  %1293 = vrot.lane.b32.xlu0 %v6189_v46, %s5802_s16 }
  0x3e   :  { %409 = vmatprep.subr.bf16.mxu0 %v5959_v16 }
  0x40   :  { %1402 = vrot.lane.b32.xlu1 %v6299_v61, %s5801_s26 }
  0x41   :  { %410 = vmatpush1.bf16.msra.mxu0 %v5969_v17  ;;  %1400 = vrot.lane.b32.xlu0 %v6301_v62, %s5801_s26 }
  0x42   :  { %411 = vmatprep.subr.bf16.mxu0 %v5977_v18 }
  0x44   :  { %1458 = vrot.lane.b32.xlu1 %v6299_v61, %s5800_s25 }
  0x45   :  { %412 = vmatpush1.bf16.msra.mxu0 %v5987_v19  ;;  %1456 = vrot.lane.b32.xlu0 %v6301_v62, %s5800_s25 }
  0x46   :  { %413 = vmatprep.subr.bf16.mxu0 %v5995_v20 }
  0x48   :  { %1508 = vrot.lane.b32.xlu1 %v6299_v61, %s5802_s16 }
  0x49   :  { %414 = vmatpush1.bf16.msra.mxu0 %v6005_v21  ;;  %1506 = vrot.lane.b32.xlu0 %v6301_v62, %s5802_s16 }
  0x4a   :  { %415 = vmatprep.subr.bf16.mxu0 %v6011_v22 }
  0x4d   :  { %416 = vmatpush1.bf16.msra.mxu0 %v6019_v23 }
  0x4e   :  { %417 = vmatprep.subr.bf16.mxu0 %v6028_v25 }
  0x51   :  { %418 = vmatpush1.bf16.msra.mxu0 %v6042_v28 }
  0x52   :  { %507 = vmatprep.subr.bf16.mxu0 %v5874_v2 }
  0x76   :  { %v390_v32 = vpop.permute.xlu1 %389  ;;  %v327_v33 = vpop.permute.xlu0 %326 }
  0x7a   :  { %v392_v34 = vpop.permute.xlu1 %391  ;;  %v329_v35 = vpop.permute.xlu0 %328 }
  0x7b   :  { %v394_v36 = vsel %vm393_vm1, %v390_v32, %v392_v34  ;;  %4989 = vmatprep.mubr.msk.bf16.mxu1 %vm281_vm0, %v329_v35  ;;  %4991 = vmatprep.mubr.msk.bf16.mxu0 %vm281_vm0, %v392_v34  ;;  %v331_v37 = vsel %vm330_vm2, %v327_v33, %v329_v35 }
  0x7c   :  { %369 = vmatmul.mubr.bf16.vlgmr.msra.gmra.mrb[0].mxu1 %v331_v37  ;;  %432 = vmatmul.mubr.bf16.vlgmr.msra.gmra.mrb[4].mxu0 %v394_v36 }
  0x7d   :  { %451 = vmatpush1.bf16.msra.mxu1 %v5879_v3  ;;  %508 = vmatpush1.bf16.msra.mxu0 %v5879_v3 }
  0x7e   :  { %452 = vmatprep.subr.bf16.mxu1 %v5884_v5  ;;  %509 = vmatprep.subr.bf16.mxu0 %v5884_v5  ;;  %v443_v38 = vpop.permute.xlu1 %442  ;;  %v441_v39 = vpop.permute.xlu0 %440 }
  0x7f   :  { %4992 = vmatprep.mubr.msk.bf16.mxu1 %vm281_vm0, %v443_v38  ;;  %4995 = vmatprep.mubr.msk.bf16.mxu0 %vm281_vm0, %v5942_v13  ;;  %v445_v41 = vsel %vm281_vm0, %v441_v39, %v443_v38  ;;  %v1562_v39 = vld [vmem:[%s8570_s0 + $0x18] sm:$0xff] }
  0x81   :  { %453 = vmatpush1.bf16.msra.mxu1 %v5896_v6  ;;  %510 = vmatpush1.bf16.msra.mxu0 %v5896_v6 }
  0x82   :  { %454 = vmatprep.subr.bf16.mxu1 %v5903_v7  ;;  %511 = vmatprep.subr.bf16.mxu0 %v5903_v7  ;;  %v551_v40 = vpop.permute.xlu1 %550  ;;  %v549_v43 = vpop.permute.xlu0 %548 }
  0x83   :  { %v552_v48 = vsel %vm330_vm2, %v549_v43, %v551_v40 }
  0x85   :  { %455 = vmatpush1.bf16.msra.mxu1 %v5913_v8  ;;  %512 = vmatpush1.bf16.msra.mxu0 %v5913_v8 }
  0x86   :  { %456 = vmatprep.subr.bf16.mxu1 %v5919_v9  ;;  %513 = vmatprep.subr.bf16.mxu0 %v5919_v9  ;;  %v607_v42 = vpop.permute.xlu1 %606  ;;  %v605_v47 = vpop.permute.xlu0 %604 }
  0x87   :  { %v608_v49 = vsel %vm393_vm1, %v605_v47, %v607_v42 }
  0x89   :  { %457 = vmatpush1.bf16.msra.mxu1 %v5930_v10  ;;  %514 = vmatpush1.bf16.msra.mxu0 %v5930_v10 }
  0x8a   :  { %458 = vmatprep.subr.bf16.mxu1 %v5936_v11  ;;  %515 = vmatprep.subr.bf16.mxu0 %v5936_v11  ;;  %v657_v50 = vpop.permute.xlu1 %656  ;;  %v655_v51 = vpop.permute.xlu0 %654 }
  0x8b   :  { %v658_v53 = vsel %vm281_vm0, %v655_v51, %v657_v50  ;;  %v6517_v51 = vld [vmem:[%s8571_s1 + $0x14] ss:$8 sps:$4 sm:$0xff]  }
  0x8d   :  { %459 = vmatpush1.bf16.msra.mxu1 %v5951_v15  ;;  %516 = vmatpush1.bf16.msra.mxu0 %v5951_v15 }
  0x8e   :  { %460 = vmatprep.subr.bf16.mxu1 %v5959_v16  ;;  %517 = vmatprep.subr.bf16.mxu0 %v5959_v16  ;;  %v764_v52 = vpop.permute.xlu1 %763  ;;  %v762_v59 = vpop.permute.xlu0 %761 }
  0x8f   :  { %v765_v0 = vsel %vm330_vm2, %v762_v59, %v764_v52 }
  0x91   :  { %461 = vmatpush1.bf16.msra.mxu1 %v5969_v17  ;;  %518 = vmatpush1.bf16.msra.mxu0 %v5969_v17 }
  0x92   :  { %462 = vmatprep.subr.bf16.mxu1 %v5977_v18  ;;  %519 = vmatprep.subr.bf16.mxu0 %v5977_v18  ;;  %v820_v54 = vpop.permute.xlu1 %819  ;;  %v818_v63 = vpop.permute.xlu0 %817 }
  0x93   :  { %v821_v1 = vsel %vm393_vm1, %v818_v63, %v820_v54 }
  0x95   :  { %463 = vmatpush1.bf16.msra.mxu1 %v5987_v19  ;;  %520 = vmatpush1.bf16.msra.mxu0 %v5987_v19 }
  0x96   :  { %464 = vmatprep.subr.bf16.mxu1 %v5995_v20  ;;  %521 = vmatprep.subr.bf16.mxu0 %v5995_v20  ;;  %v870_v4 = vpop.permute.xlu1 %869  ;;  %v868_v12 = vpop.permute.xlu0 %867 }
  0x99   :  { %465 = vmatpush1.bf16.msra.mxu1 %v6005_v21  ;;  %522 = vmatpush1.bf16.msra.mxu0 %v6005_v21 }
  0x9a   :  { %466 = vmatprep.subr.bf16.mxu1 %v6011_v22  ;;  %523 = vmatprep.subr.bf16.mxu0 %v6011_v22  ;;  %v6364_v13 = vpop.permute.xlu1 %976  ;;  %v975_v38 = vpop.permute.xlu0 %974 }
  0x9b   :  { %v978_v43 = vsel %vm330_vm2, %v975_v38, %v6364_v13 }
  0x9d   :  { %467 = vmatpush1.bf16.msra.mxu1 %v6019_v23  ;;  %524 = vmatpush1.bf16.msra.mxu0 %v6019_v23 }
  0x9e   :  { %468 = vmatprep.subr.bf16.mxu1 %v6028_v25  ;;  %525 = vmatprep.subr.bf16.mxu0 %v6028_v25  ;;  %v1033_v24 = vpop.permute.xlu1 %1032 }
  0xa1   :  { %469 = vmatpush1.bf16.msra.mxu1 %v6042_v28  ;;  %526 = vmatpush1.bf16.msra.mxu0 %v6042_v28 }
  0xa2   :  { %557 = vmatprep.subr.bf16.mxu1 %v5874_v2  ;;  %613 = vmatprep.subr.bf16.mxu0 %v5874_v2  ;;  %v1083_v47 = vpop.permute.xlu1 %1082 }
  0xa4   :  { %483 = vmatmul.mubr.bf16.vlgmr.msra.gmra.mrb[4].mxu1 %v445_v41  ;;  %540 = vmatmul.mubr.bf16.vlgmr.msra.gmra.mrb[8].mxu0 %v5944_v14  ;;  %v871_v14 = vsel %vm281_vm0, %v868_v12, %v870_v4  ;;  %v6420_v41 = vcombine.low %v1562_v39, %v1562_v39  ;;  %v6569_v12 = vld [vmem:[%s8571_s1 + $0x44] ss:$8 sps:$4 sm:$0xff]  }
  0xa5   :  { %558 = vmatpush1.bf16.msra.mxu1 %v5879_v3  ;;  %614 = vmatpush1.bf16.msra.mxu0 %v5879_v3 }
  0xa6   :  { %559 = vmatprep.subr.bf16.mxu1 %v5884_v5  ;;  %615 = vmatprep.subr.bf16.mxu0 %v5884_v5 }
  0xa7   :  { %4996 = vmatprep.mubr.msk.bf16.mxu1 %vm281_vm0, %v551_v40  ;;  %4997 = vmatprep.mubr.msk.bf16.mxu0 %vm281_vm0, %v607_v42  ;;  %v6418_v40 = vcombine.high %v1562_v39, %v1562_v39  ;;  %v1031_v42 = vpop.permute.xlu0 %1030  ;;  %v6664_v39 = vld [vmem:[%s8571_s1 + $0x60] ss:$8 sps:$4 sm:$0xff]  }
  0xa8   :  { %1613 = vrot.lane.b32.xlu0 %v6420_v41, %s5801_s26  ;;  %v1034_v44 = vsel %vm393_vm1, %v1031_v42, %v1033_v24  ;;  %v6671_v42 = vld [vmem:[%s8571_s1 + $0x74] ss:$8 sps:$4 sm:$0xff]  }
  0xa9   :  { %560 = vmatpush1.bf16.msra.mxu1 %v5896_v6  ;;  %616 = vmatpush1.bf16.msra.mxu0 %v5896_v6 }
  0xaa   :  { %561 = vmatprep.subr.bf16.mxu1 %v5903_v7  ;;  %617 = vmatprep.subr.bf16.mxu0 %v5903_v7 }
  0xab   :  { %1615 = vrot.lane.b32.xlu1 %v6418_v40, %s5801_s26 }
  0xac   :  { %1669 = vrot.lane.b32.xlu0 %v6420_v41, %s5800_s25 }
  0xad   :  { %562 = vmatpush1.bf16.msra.mxu1 %v5913_v8  ;;  %618 = vmatpush1.bf16.msra.mxu0 %v5913_v8 }
  0xae   :  { %563 = vmatprep.subr.bf16.mxu1 %v5919_v9  ;;  %619 = vmatprep.subr.bf16.mxu0 %v5919_v9 }
  0xaf   :  { %1671 = vrot.lane.b32.xlu1 %v6418_v40, %s5800_s25 }
  0xb0   :  { %1719 = vrot.lane.b32.xlu0 %v6420_v41, %s5802_s16 }
  0xb1   :  { %564 = vmatpush1.bf16.msra.mxu1 %v5930_v10  ;;  %620 = vmatpush1.bf16.msra.mxu0 %v5930_v10 }
  0xb2   :  { %565 = vmatprep.subr.bf16.mxu1 %v5936_v11  ;;  %621 = vmatprep.subr.bf16.mxu0 %v5936_v11 }
  0xb3   :  { %1721 = vrot.lane.b32.xlu1 %v6418_v40, %s5802_s16 }
  0xb5   :  { %566 = vmatpush1.bf16.msra.mxu1 %v5951_v15  ;;  %622 = vmatpush1.bf16.msra.mxu0 %v5951_v15 }
  0xb6   :  { %567 = vmatprep.subr.bf16.mxu1 %v5959_v16  ;;  %623 = vmatprep.subr.bf16.mxu0 %v5959_v16 }
  0xb9   :  { %568 = vmatpush1.bf16.msra.mxu1 %v5969_v17  ;;  %624 = vmatpush1.bf16.msra.mxu0 %v5969_v17 }
  0xba   :  { %569 = vmatprep.subr.bf16.mxu1 %v5977_v18  ;;  %625 = vmatprep.subr.bf16.mxu0 %v5977_v18 }
  0xbd   :  { %570 = vmatpush1.bf16.msra.mxu1 %v5987_v19  ;;  %626 = vmatpush1.bf16.msra.mxu0 %v5987_v19 }
  0xbe   :  { %571 = vmatprep.subr.bf16.mxu1 %v5995_v20  ;;  %627 = vmatprep.subr.bf16.mxu0 %v5995_v20 }
  0xc1   :  { %572 = vmatpush1.bf16.msra.mxu1 %v6005_v21  ;;  %628 = vmatpush1.bf16.msra.mxu0 %v6005_v21 }
  0xc2   :  { %573 = vmatprep.subr.bf16.mxu1 %v6011_v22  ;;  %629 = vmatprep.subr.bf16.mxu0 %v6011_v22 }
  0xc5   :  { %574 = vmatpush1.bf16.msra.mxu1 %v6019_v23  ;;  %630 = vmatpush1.bf16.msra.mxu0 %v6019_v23 }
  0xc6   :  { %575 = vmatprep.subr.bf16.mxu1 %v6028_v25  ;;  %631 = vmatprep.subr.bf16.mxu0 %v6028_v25 }
  0xc9   :  { %576 = vmatpush1.bf16.msra.mxu1 %v6042_v28  ;;  %632 = vmatpush1.bf16.msra.mxu0 %v6042_v28 }
  0xca   :  { %663 = vmatprep.subr.bf16.mxu1 %v5874_v2  ;;  %720 = vmatprep.subr.bf16.mxu0 %v5874_v2 }
  0xcc   :  { %590 = vmatmul.mubr.bf16.vlgmr.msra.gmra.mrb[8].mxu1 %v552_v48  ;;  %646 = vmatmul.mubr.bf16.vlgmr.msra.gmra.mrb[12].mxu0 %v608_v49 }
  0xcd   :  { %664 = vmatpush1.bf16.msra.mxu1 %v5879_v3  ;;  %721 = vmatpush1.bf16.msra.mxu0 %v5879_v3 }
  0xce   :  { %665 = vmatprep.subr.bf16.mxu1 %v5884_v5  ;;  %722 = vmatprep.subr.bf16.mxu0 %v5884_v5 }
  0xcf   :  { %4998 = vmatprep.mubr.msk.bf16.mxu1 %vm281_vm0, %v657_v50  ;;  %5001 = vmatprep.mubr.msk.bf16.mxu0 %vm281_vm0, %v6030_v26 }
  0xd1   :  { %666 = vmatpush1.bf16.msra.mxu1 %v5896_v6  ;;  %723 = vmatpush1.bf16.msra.mxu0 %v5896_v6 }
  0xd2   :  { %667 = vmatprep.subr.bf16.mxu1 %v5903_v7  ;;  %724 = vmatprep.subr.bf16.mxu0 %v5903_v7 }
  0xd5   :  { %668 = vmatpush1.bf16.msra.mxu1 %v5913_v8  ;;  %725 = vmatpush1.bf16.msra.mxu0 %v5913_v8 }
  0xd6   :  { %669 = vmatprep.subr.bf16.mxu1 %v5919_v9  ;;  %726 = vmatprep.subr.bf16.mxu0 %v5919_v9 }
  0xd9   :  { %670 = vmatpush1.bf16.msra.mxu1 %v5930_v10  ;;  %727 = vmatpush1.bf16.msra.mxu0 %v5930_v10 }
  0xda   :  { %671 = vmatprep.subr.bf16.mxu1 %v5936_v11  ;;  %728 = vmatprep.subr.bf16.mxu0 %v5936_v11 }
  0xdd   :  { %672 = vmatpush1.bf16.msra.mxu1 %v5951_v15  ;;  %729 = vmatpush1.bf16.msra.mxu0 %v5951_v15 }
  0xde   :  { %673 = vmatprep.subr.bf16.mxu1 %v5959_v16  ;;  %730 = vmatprep.subr.bf16.mxu0 %v5959_v16 }
  0xe1   :  { %674 = vmatpush1.bf16.msra.mxu1 %v5969_v17  ;;  %731 = vmatpush1.bf16.msra.mxu0 %v5969_v17 }
  0xe2   :  { %675 = vmatprep.subr.bf16.mxu1 %v5977_v18  ;;  %732 = vmatprep.subr.bf16.mxu0 %v5977_v18 }
  0xe5   :  { %676 = vmatpush1.bf16.msra.mxu1 %v5987_v19  ;;  %733 = vmatpush1.bf16.msra.mxu0 %v5987_v19 }
  0xe6   :  { %677 = vmatprep.subr.bf16.mxu1 %v5995_v20  ;;  %734 = vmatprep.subr.bf16.mxu0 %v5995_v20 }
  0xe9   :  { %678 = vmatpush1.bf16.msra.mxu1 %v6005_v21  ;;  %735 = vmatpush1.bf16.msra.mxu0 %v6005_v21 }
  0xea   :  { %679 = vmatprep.subr.bf16.mxu1 %v6011_v22  ;;  %736 = vmatprep.subr.bf16.mxu0 %v6011_v22 }
  0xed   :  { %680 = vmatpush1.bf16.msra.mxu1 %v6019_v23  ;;  %737 = vmatpush1.bf16.msra.mxu0 %v6019_v23 }
  0xee   :  { %681 = vmatprep.subr.bf16.mxu1 %v6028_v25  ;;  %738 = vmatprep.subr.bf16.mxu0 %v6028_v25 }
  0xf1   :  { %682 = vmatpush1.bf16.msra.mxu1 %v6042_v28  ;;  %739 = vmatpush1.bf16.msra.mxu0 %v6042_v28 }
  0xf2   :  { %770 = vmatprep.subr.bf16.mxu1 %v5874_v2  ;;  %826 = vmatprep.subr.bf16.mxu0 %v5874_v2 }
  0xf4   :  { %696 = vmatmul.mubr.bf16.vlgmr.msra.gmra.mrb[12].mxu1 %v658_v53  ;;  %753 = vmatmul.mubr.bf16.vlgmr.msra.gmra.mrb[16].mxu0 %v6032_v27  ;;  %v6542_v53 = vld [vmem:[%s8571_s1 + $0x20] ss:$8 sps:$4 sm:$0xff]  }
  0xf5   :  { %771 = vmatpush1.bf16.msra.mxu1 %v5879_v3  ;;  %827 = vmatpush1.bf16.msra.mxu0 %v5879_v3 }
  0xf6   :  { %772 = vmatprep.subr.bf16.mxu1 %v5884_v5  ;;  %828 = vmatprep.subr.bf16.mxu0 %v5884_v5 }
  0xf7   :  { %5002 = vmatprep.mubr.msk.bf16.mxu1 %vm281_vm0, %v764_v52  ;;  %5003 = vmatprep.mubr.msk.bf16.mxu0 %vm281_vm0, %v820_v54  ;;  %v6535_v52 = vld [vmem:[%s8571_s1 + $0x24] ss:$8 sps:$4 sm:$0xff]   ;;  %v6549_v54 = vld [vmem:[%s8571_s1 + $0x34] ss:$8 sps:$4 sm:$0xff]  }
  0xf9   :  { %773 = vmatpush1.bf16.msra.mxu1 %v5896_v6  ;;  %829 = vmatpush1.bf16.msra.mxu0 %v5896_v6 }
  0xfa   :  { %774 = vmatprep.subr.bf16.mxu1 %v5903_v7  ;;  %830 = vmatprep.subr.bf16.mxu0 %v5903_v7 }
  0xfd   :  { %775 = vmatpush1.bf16.msra.mxu1 %v5913_v8  ;;  %831 = vmatpush1.bf16.msra.mxu0 %v5913_v8 }
  0xfe   :  { %776 = vmatprep.subr.bf16.mxu1 %v5919_v9  ;;  %832 = vmatprep.subr.bf16.mxu0 %v5919_v9 }
  0xff   :  { %v6272_v55 = vpop.f32.mrb[0].mxu0 }
 0x100   :  { %v6276_v56 = vpop.f32.mrb[1].mxu0 }
 0x101   :  { %777 = vmatpush1.bf16.msra.mxu1 %v5930_v10  ;;  %833 = vmatpush1.bf16.msra.mxu0 %v5930_v10  ;;  %v323_v57 = vpop.f32.mrb[2].mxu0 }
 0x102   :  { %778 = vmatprep.subr.bf16.mxu1 %v5936_v11  ;;  %834 = vmatprep.subr.bf16.mxu0 %v5936_v11  ;;  %v324_v58 = vpop.f32.mrb[3].mxu0 }
 0x105   :  { %779 = vmatpush1.bf16.msra.mxu1 %v5951_v15  ;;  %835 = vmatpush1.bf16.msra.mxu0 %v5951_v15 }
 0x106   :  { %780 = vmatprep.subr.bf16.mxu1 %v5959_v16  ;;  %836 = vmatprep.subr.bf16.mxu0 %v5959_v16 }
 0x109   :  { %781 = vmatpush1.bf16.msra.mxu1 %v5969_v17  ;;  %837 = vmatpush1.bf16.msra.mxu0 %v5969_v17 }
 0x10a   :  { %782 = vmatprep.subr.bf16.mxu1 %v5977_v18  ;;  %838 = vmatprep.subr.bf16.mxu0 %v5977_v18 }
 0x10d   :  { %783 = vmatpush1.bf16.msra.mxu1 %v5987_v19  ;;  %839 = vmatpush1.bf16.msra.mxu0 %v5987_v19 }
 0x10e   :  { %784 = vmatprep.subr.bf16.mxu1 %v5995_v20  ;;  %840 = vmatprep.subr.bf16.mxu0 %v5995_v20 }
 0x111   :  { %785 = vmatpush1.bf16.msra.mxu1 %v6005_v21  ;;  %841 = vmatpush1.bf16.msra.mxu0 %v6005_v21 }
 0x112   :  { %786 = vmatprep.subr.bf16.mxu1 %v6011_v22  ;;  %842 = vmatprep.subr.bf16.mxu0 %v6011_v22 }
 0x115   :  { %787 = vmatpush1.bf16.msra.mxu1 %v6019_v23  ;;  %843 = vmatpush1.bf16.msra.mxu0 %v6019_v23 }
 0x116   :  { %788 = vmatprep.subr.bf16.mxu1 %v6028_v25  ;;  %844 = vmatprep.subr.bf16.mxu0 %v6028_v25 }
 0x119   :  { %789 = vmatpush1.bf16.msra.mxu1 %v6042_v28  ;;  %845 = vmatpush1.bf16.msra.mxu0 %v6042_v28 }
 0x11a   :  { %876 = vmatprep.subr.bf16.mxu1 %v5874_v2  ;;  %933 = vmatprep.subr.bf16.mxu0 %v5874_v2 }
 0x11c   :  { %803 = vmatmul.mubr.bf16.vlgmr.msra.gmra.mrb[16].mxu1 %v765_v0  ;;  %859 = vmatmul.mubr.bf16.vlgmr.msra.gmra.mrb[20].mxu0 %v821_v1  ;;  %v6562_v0 = vld [vmem:[%s8571_s1 + $0x30] ss:$8 sps:$4 sm:$0xff]  }
 0x11d   :  { %877 = vmatpush1.bf16.msra.mxu1 %v5879_v3  ;;  %934 = vmatpush1.bf16.msra.mxu0 %v5879_v3 }
 0x11e   :  { %878 = vmatprep.subr.bf16.mxu1 %v5884_v5  ;;  %935 = vmatprep.subr.bf16.mxu0 %v5884_v5 }
 0x11f   :  { %5004 = vmatprep.mubr.msk.bf16.mxu1 %vm281_vm0, %v870_v4  ;;  %5007 = vmatprep.mubr.msk.bf16.mxu0 %vm281_vm0, %v6085_v30 }
 0x121   :  { %879 = vmatpush1.bf16.msra.mxu1 %v5896_v6  ;;  %936 = vmatpush1.bf16.msra.mxu0 %v5896_v6 }
 0x122   :  { %880 = vmatprep.subr.bf16.mxu1 %v5903_v7  ;;  %937 = vmatprep.subr.bf16.mxu0 %v5903_v7 }
 0x125   :  { %881 = vmatpush1.bf16.msra.mxu1 %v5913_v8  ;;  %938 = vmatpush1.bf16.msra.mxu0 %v5913_v8 }
 0x126   :  { %882 = vmatprep.subr.bf16.mxu1 %v5919_v9  ;;  %939 = vmatprep.subr.bf16.mxu0 %v5919_v9 }
 0x129   :  { %883 = vmatpush1.bf16.msra.mxu1 %v5930_v10  ;;  %940 = vmatpush1.bf16.msra.mxu0 %v5930_v10 }
 0x12a   :  { %884 = vmatprep.subr.bf16.mxu1 %v5936_v11  ;;  %941 = vmatprep.subr.bf16.mxu0 %v5936_v11 }
 0x12d   :  { %885 = vmatpush1.bf16.msra.mxu1 %v5951_v15  ;;  %942 = vmatpush1.bf16.msra.mxu0 %v5951_v15 }
 0x12e   :  { %886 = vmatprep.subr.bf16.mxu1 %v5959_v16  ;;  %943 = vmatprep.subr.bf16.mxu0 %v5959_v16 }
 0x131   :  { %887 = vmatpush1.bf16.msra.mxu1 %v5969_v17  ;;  %944 = vmatpush1.bf16.msra.mxu0 %v5969_v17 }
 0x132   :  { %888 = vmatprep.subr.bf16.mxu1 %v5977_v18  ;;  %945 = vmatprep.subr.bf16.mxu0 %v5977_v18 }
 0x135   :  { %889 = vmatpush1.bf16.msra.mxu1 %v5987_v19  ;;  %946 = vmatpush1.bf16.msra.mxu0 %v5987_v19 }
 0x136   :  { %890 = vmatprep.subr.bf16.mxu1 %v5995_v20  ;;  %947 = vmatprep.subr.bf16.mxu0 %v5995_v20 }
 0x139   :  { %891 = vmatpush1.bf16.msra.mxu1 %v6005_v21  ;;  %948 = vmatpush1.bf16.msra.mxu0 %v6005_v21 }
 0x13a   :  { %892 = vmatprep.subr.bf16.mxu1 %v6011_v22  ;;  %949 = vmatprep.subr.bf16.mxu0 %v6011_v22 }
 0x13d   :  { %893 = vmatpush1.bf16.msra.mxu1 %v6019_v23  ;;  %950 = vmatpush1.bf16.msra.mxu0 %v6019_v23 }
 0x13e   :  { %894 = vmatprep.subr.bf16.mxu1 %v6028_v25  ;;  %951 = vmatprep.subr.bf16.mxu0 %v6028_v25 }
 0x141   :  { %895 = vmatpush1.bf16.msra.mxu1 %v6042_v28  ;;  %952 = vmatpush1.bf16.msra.mxu0 %v6042_v28 }
 0x142   :  { %983 = vmatprep.subr.bf16.mxu1 %v5874_v2  ;;  %1039 = vmatprep.subr.bf16.mxu0 %v5874_v2 }
 0x144   :  { %909 = vmatmul.mubr.bf16.vlgmr.msra.gmra.mrb[20].mxu1 %v871_v14  ;;  %966 = vmatmul.mubr.bf16.vlgmr.msra.gmra.mrb[24].mxu0 %v6087_v31 }
 0x145   :  { %984 = vmatpush1.bf16.msra.mxu1 %v5879_v3  ;;  %1040 = vmatpush1.bf16.msra.mxu0 %v5879_v3 }
 0x146   :  { %985 = vmatprep.subr.bf16.mxu1 %v5884_v5  ;;  %1041 = vmatprep.subr.bf16.mxu0 %v5884_v5 }
 0x147   :  { %5008 = vmatprep.mubr.msk.bf16.mxu1 %vm281_vm0, %v6364_v13  ;;  %5009 = vmatprep.mubr.msk.bf16.mxu0 %vm281_vm0, %v1033_v24  ;;  %v6578_v24 = vld [vmem:[%s8571_s1 + $0x40] ss:$8 sps:$4 sm:$0xff]  }
 0x149   :  { %986 = vmatpush1.bf16.msra.mxu1 %v5896_v6  ;;  %1042 = vmatpush1.bf16.msra.mxu0 %v5896_v6 }
 0x14a   :  { %987 = vmatprep.subr.bf16.mxu1 %v5903_v7  ;;  %1043 = vmatprep.subr.bf16.mxu0 %v5903_v7 }
 0x14d   :  { %988 = vmatpush1.bf16.msra.mxu1 %v5913_v8  ;;  %1044 = vmatpush1.bf16.msra.mxu0 %v5913_v8 }
 0x14e   :  { %989 = vmatprep.subr.bf16.mxu1 %v5919_v9  ;;  %1045 = vmatprep.subr.bf16.mxu0 %v5919_v9 }
 0x14f   :  { %v370_v26 = vpop.f32.mrb[0].mxu1  ;;  %v6387_v27 = vpop.f32.mrb[4].mxu0 }
 0x150   :  { %v377_v29 = vmax.f32 %v6272_v55, %v370_v26  ;;  %v372_v30 = vpop.f32.mrb[1].mxu1  ;;  %v6390_v31 = vpop.f32.mrb[5].mxu0  ;;  %v6585_v26 = vld [vmem:[%s8571_s1 + $0x54] ss:$8 sps:$4 sm:$0xff]  }
 0x151   :  { %v378_v32 = vmax.f32 %v6276_v56, %v372_v30  ;;  %990 = vmatpush1.bf16.msra.mxu1 %v5930_v10  ;;  %1046 = vmatpush1.bf16.msra.mxu0 %v5930_v10  ;;  %v374_v33 = vpop.f32.mrb[2].mxu1  ;;  %v437_v34 = vpop.f32.mrb[6].mxu0 }
 0x152   :  { %v375_v35 = vpop.f32.mrb[3].mxu1  ;;  %991 = vmatprep.subr.bf16.mxu1 %v5936_v11  ;;  %1047 = vmatprep.subr.bf16.mxu0 %v5936_v11  ;;  %v438_v36 = vpop.f32.mrb[7].mxu0 }
 0x153   :  { %v6397_v37 = vmax.f32 %v377_v29, %v378_v32  ;;  %v6599_v29 = vld [vmem:[%s8571_s1 + $0x64] ss:$8 sps:$4 sm:$0xff]  }
 0x155   :  { %992 = vmatpush1.bf16.msra.mxu1 %v5951_v15  ;;  %1048 = vmatpush1.bf16.msra.mxu0 %v5951_v15 }
 0x156   :  { %993 = vmatprep.subr.bf16.mxu1 %v5959_v16  ;;  %1049 = vmatprep.subr.bf16.mxu0 %v5959_v16 }
 0x159   :  { %994 = vmatpush1.bf16.msra.mxu1 %v5969_v17  ;;  %1050 = vmatpush1.bf16.msra.mxu0 %v5969_v17 }
 0x15a   :  { %995 = vmatprep.subr.bf16.mxu1 %v5977_v18  ;;  %1051 = vmatprep.subr.bf16.mxu0 %v5977_v18 }
 0x15d   :  { %996 = vmatpush1.bf16.msra.mxu1 %v5987_v19  ;;  %1052 = vmatpush1.bf16.msra.mxu0 %v5987_v19 }
 0x15e   :  { %997 = vmatprep.subr.bf16.mxu1 %v5995_v20  ;;  %1053 = vmatprep.subr.bf16.mxu0 %v5995_v20 }
 0x161   :  { %998 = vmatpush1.bf16.msra.mxu1 %v6005_v21  ;;  %1054 = vmatpush1.bf16.msra.mxu0 %v6005_v21 }
 0x162   :  { %999 = vmatprep.subr.bf16.mxu1 %v6011_v22  ;;  %1055 = vmatprep.subr.bf16.mxu0 %v6011_v22 }
 0x165   :  { %1000 = vmatpush1.bf16.msra.mxu1 %v6019_v23  ;;  %1056 = vmatpush1.bf16.msra.mxu0 %v6019_v23 }
 0x166   :  { %1001 = vmatprep.subr.bf16.mxu1 %v6028_v25  ;;  %1057 = vmatprep.subr.bf16.mxu0 %v6028_v25 }
 0x169   :  { %1002 = vmatpush1.bf16.msra.mxu1 %v6042_v28  ;;  %1058 = vmatpush1.bf16.msra.mxu0 %v6042_v28 }
 0x16a   :  { %1089 = vmatprep.subr.bf16.mxu1 %v5874_v2  ;;  %1146 = vmatprep.subr.bf16.mxu0 %v5874_v2 }
 0x16c   :  { %1016 = vmatmul.mubr.bf16.vlgmr.msra.gmra.mrb[24].mxu1 %v978_v43  ;;  %1072 = vmatmul.mubr.bf16.vlgmr.msra.gmra.mrb[28].mxu0 %v1034_v44  ;;  %v6678_v43 = vld [vmem:[%s8571_s1 + $0x70] ss:$8 sps:$4 sm:$0xff]   ;;  %v6685_v44 = vld [vmem:[%s8571_s1 + $0x84] ss:$8 sps:$4 sm:$0xff]  }
 0x16d   :  { %1090 = vmatpush1.bf16.msra.mxu1 %v5879_v3  ;;  %1147 = vmatpush1.bf16.msra.mxu0 %v5879_v3 }
 0x16e   :  { %1091 = vmatprep.subr.bf16.mxu1 %v5884_v5  ;;  %1148 = vmatprep.subr.bf16.mxu0 %v5884_v5 }
 0x16f   :  { %5010 = vmatprep.mubr.msk.bf16.mxu1 %vm281_vm0, %v1083_v47  ;;  %5013 = vmatprep.mubr.msk.bf16.mxu0 %vm281_vm0, %v6187_v45 }
 0x171   :  { %1092 = vmatpush1.bf16.msra.mxu1 %v5896_v6  ;;  %1149 = vmatpush1.bf16.msra.mxu0 %v5896_v6 }
 0x172   :  { %1093 = vmatprep.subr.bf16.mxu1 %v5903_v7  ;;  %1150 = vmatprep.subr.bf16.mxu0 %v5903_v7 }
 0x175   :  { %1094 = vmatpush1.bf16.msra.mxu1 %v5913_v8  ;;  %1151 = vmatpush1.bf16.msra.mxu0 %v5913_v8 }
 0x176   :  { %1095 = vmatprep.subr.bf16.mxu1 %v5919_v9  ;;  %1152 = vmatprep.subr.bf16.mxu0 %v5919_v9 }
 0x177   :  { %v484_v2 = vpop.f32.mrb[4].mxu1  ;;  %v6460_v3 = vpop.f32.mrb[8].mxu0 }
 0x178   :  { %v491_v5 = vmax.f32 %v6387_v27, %v484_v2  ;;  %v486_v45 = vpop.f32.mrb[5].mxu1  ;;  %v6463_v48 = vpop.f32.mrb[9].mxu0  ;;  %v6592_v27 = vld [vmem:[%s8571_s1 + $0x50] ss:$8 sps:$4 sm:$0xff]   ;;  %v6699_v2 = vld [vmem:[%s8571_s1 + $0x94] ss:$8 sps:$4 sm:$0xff]  }
 0x179   :  { %v492_v6 = vmax.f32 %v6390_v31, %v486_v45  ;;  %v488_v49 = vpop.f32.mrb[6].mxu1  ;;  %1096 = vmatpush1.bf16.msra.mxu1 %v5930_v10  ;;  %1153 = vmatpush1.bf16.msra.mxu0 %v5930_v10  ;;  %v545_v7 = vpop.f32.mrb[10].mxu0  ;;  %v6706_v45 = vld [vmem:[%s8571_s1 + $0x90] ss:$8 sps:$4 sm:$0xff]  }
 0x17a   :  { %v489_v8 = vpop.f32.mrb[7].mxu1  ;;  %1097 = vmatprep.subr.bf16.mxu1 %v5936_v11  ;;  %1154 = vmatprep.subr.bf16.mxu0 %v5936_v11  ;;  %v546_v9 = vpop.f32.mrb[11].mxu0 }
 0x17b   :  { %v6470_v50 = vmax.f32 %v491_v5, %v492_v6  ;;  %v1081_v10 = vpop.permute.xlu0 %1080  ;;  %v6492_v11 = vpop.permute.xlu1 %1189 }
 0x17d   :  { %1098 = vmatpush1.bf16.msra.mxu1 %v5951_v15  ;;  %1155 = vmatpush1.bf16.msra.mxu0 %v5951_v15  ;;  %v1084_v15 = vsel %vm281_vm0, %v1081_v10, %v1083_v47  ;;  %v6692_v47 = vld [vmem:[%s8571_s1 + $0x80] ss:$8 sps:$4 sm:$0xff]  }
 0x17e   :  { %1099 = vmatprep.subr.bf16.mxu1 %v5959_v16  ;;  %1156 = vmatprep.subr.bf16.mxu0 %v5959_v16  ;;  %v6500_v16 = vld [vmem:[%s8571_s1 + $0x4] ss:$8 sps:$4 sm:$0xff]  }
 0x17f   :  { %v1188_v30 = vpop.permute.xlu0 %1187 }
 0x181   :  { %1100 = vmatpush1.bf16.msra.mxu1 %v5969_v17  ;;  %1157 = vmatpush1.bf16.msra.mxu0 %v5969_v17  ;;  %v6505_v17 = vpop.permute.xlu1 %1245 }
 0x182   :  { %1101 = vmatprep.subr.bf16.mxu1 %v5977_v18  ;;  %1158 = vmatprep.subr.bf16.mxu0 %v5977_v18  ;;  %v6510_v18 = vld [vmem:[%s8571_s1] ss:$8 sps:$4 sm:$0xff]  }
 0x185   :  { %1102 = vmatpush1.bf16.msra.mxu1 %v5987_v19  ;;  %1159 = vmatpush1.bf16.msra.mxu0 %v5987_v19 }
 0x186   :  { %1103 = vmatprep.subr.bf16.mxu1 %v5995_v20  ;;  %1160 = vmatprep.subr.bf16.mxu0 %v5995_v20 }
 0x189   :  { %1104 = vmatpush1.bf16.msra.mxu1 %v6005_v21  ;;  %1161 = vmatpush1.bf16.msra.mxu0 %v6005_v21 }
 0x18a   :  { %1105 = vmatprep.subr.bf16.mxu1 %v6011_v22  ;;  %1162 = vmatprep.subr.bf16.mxu0 %v6011_v22 }
 0x18d   :  { %1106 = vmatpush1.bf16.msra.mxu1 %v6019_v23  ;;  %1163 = vmatpush1.bf16.msra.mxu0 %v6019_v23 }
 0x18e   :  { %1107 = vmatprep.subr.bf16.mxu1 %v6028_v25  ;;  %1164 = vmatprep.subr.bf16.mxu0 %v6028_v25 }
 0x191   :  { %1108 = vmatpush1.bf16.msra.mxu1 %v6042_v28  ;;  %1165 = vmatpush1.bf16.msra.mxu0 %v6042_v28 }
 0x192   :  { %1196 = vmatprep.subr.bf16.mxu1 %v6500_v16  ;;  %1252 = vmatprep.subr.bf16.mxu0 %v6500_v16 }
 0x194   :  { %1122 = vmatmul.mubr.bf16.vlgmr.msra.gmra.mrb[28].mxu1 %v1084_v15  ;;  %1179 = vmatmul.mubr.bf16.vlgmr.msra.gmra.mrb[32].mxu0 %v6189_v46  ;;  %v6528_v46 = vld [vmem:[%s8571_s1 + $0x10] ss:$8 sps:$4 sm:$0xff]  }
 0x195   :  { %1197 = vmatpush1.bf16.msra.mxu1 %v6510_v18  ;;  %1253 = vmatpush1.bf16.msra.mxu0 %v6510_v18 }
 0x196   :  { %1198 = vmatprep.subr.bf16.mxu1 %v6517_v51  ;;  %1254 = vmatprep.subr.bf16.mxu0 %v6517_v51 }
 0x197   :  { %5014 = vmatprep.mubr.msk.bf16.mxu1 %vm281_vm0, %v6492_v11  ;;  %5015 = vmatprep.mubr.msk.bf16.mxu0 %vm281_vm0, %v6505_v17 }
 0x199   :  { %1199 = vmatpush1.bf16.msra.mxu1 %v6528_v46  ;;  %1255 = vmatpush1.bf16.msra.mxu0 %v6528_v46 }
 0x19a   :  { %1200 = vmatprep.subr.bf16.mxu1 %v6535_v52  ;;  %1256 = vmatprep.subr.bf16.mxu0 %v6535_v52 }
 0x19d   :  { %1201 = vmatpush1.bf16.msra.mxu1 %v6542_v53  ;;  %1257 = vmatpush1.bf16.msra.mxu0 %v6542_v53 }
 0x19e   :  { %1202 = vmatprep.subr.bf16.mxu1 %v6549_v54  ;;  %1258 = vmatprep.subr.bf16.mxu0 %v6549_v54 }
 0x19f   :  { %v591_v55 = vpop.f32.mrb[8].mxu1  ;;  %v6553_v56 = vpop.f32.mrb[12].mxu0 }
 0x1a0   :  { %v598_v57 = vmax.f32 %v6460_v3, %v591_v55  ;;  %v593_v58 = vpop.f32.mrb[9].mxu1  ;;  %v6556_v59 = vpop.f32.mrb[13].mxu0 }
 0x1a1   :  { %v599_v60 = vmax.f32 %v6463_v48, %v593_v58  ;;  %v595_v63 = vpop.f32.mrb[10].mxu1  ;;  %1203 = vmatpush1.bf16.msra.mxu1 %v6562_v0  ;;  %1259 = vmatpush1.bf16.msra.mxu0 %v6562_v0  ;;  %v651_v1 = vpop.f32.mrb[14].mxu0 }
 0x1a2   :  { %v596_v4 = vpop.f32.mrb[11].mxu1  ;;  %1204 = vmatprep.subr.bf16.mxu1 %v6569_v12  ;;  %1260 = vmatprep.subr.bf16.mxu0 %v6569_v12  ;;  %v652_v13 = vpop.f32.mrb[15].mxu0 }
 0x1a3   :  { %v6573_v14 = vmax.f32 %v598_v57, %v599_v60 }
 0x1a5   :  { %1205 = vmatpush1.bf16.msra.mxu1 %v6578_v24  ;;  %1261 = vmatpush1.bf16.msra.mxu0 %v6578_v24 }
 0x1a6   :  { %1206 = vmatprep.subr.bf16.mxu1 %v6585_v26  ;;  %1262 = vmatprep.subr.bf16.mxu0 %v6585_v26 }
 0x1a9   :  { %1207 = vmatpush1.bf16.msra.mxu1 %v6592_v27  ;;  %1263 = vmatpush1.bf16.msra.mxu0 %v6592_v27 }
 0x1aa   :  { %1208 = vmatprep.subr.bf16.mxu1 %v6599_v29  ;;  %1264 = vmatprep.subr.bf16.mxu0 %v6599_v29 }
 0x1ad   :  { %1209 = vmatpush1.bf16.msra.mxu1 %v5987_v19  ;;  %1265 = vmatpush1.bf16.msra.mxu0 %v5987_v19  ;;  %v1244_v19 = vpop.permute.xlu0 %1243 }
 0x1ae   :  { %1210 = vmatprep.subr.bf16.mxu1 %v5995_v20  ;;  %1266 = vmatprep.subr.bf16.mxu0 %v5995_v20  ;;  %v1191_v20 = vsel %vm330_vm2, %v1188_v30, %v6492_v11 }
 0x1b1   :  { %1211 = vmatpush1.bf16.msra.mxu1 %v6005_v21  ;;  %1267 = vmatpush1.bf16.msra.mxu0 %v6005_v21  ;;  %v1247_v21 = vsel %vm393_vm1, %v1244_v19, %v6505_v17  ;;  %v1294_v3 = vpop.permute.xlu0 %1293 }
 0x1b2   :  { %1212 = vmatprep.subr.bf16.mxu1 %v6011_v22  ;;  %1268 = vmatprep.subr.bf16.mxu0 %v6011_v22  ;;  %v6623_v22 = vpop.permute.xlu1 %1295 }
 0x1b3   :  { %v1297_v48 = vsel %vm281_vm0, %v1294_v3, %v6623_v22 }
 0x1b5   :  { %1213 = vmatpush1.bf16.msra.mxu1 %v6019_v23  ;;  %1269 = vmatpush1.bf16.msra.mxu0 %v6019_v23  ;;  %v1401_v57 = vpop.permute.xlu0 %1400 }
 0x1b6   :  { %1214 = vmatprep.subr.bf16.mxu1 %v6028_v25  ;;  %1270 = vmatprep.subr.bf16.mxu0 %v6028_v25  ;;  %v1403_v5 = vpop.permute.xlu1 %1402 }
 0x1b9   :  { %1215 = vmatpush1.bf16.msra.mxu1 %v6042_v28  ;;  %1271 = vmatpush1.bf16.msra.mxu0 %v6042_v28  ;;  %v1457_v58 = vpop.permute.xlu0 %1456 }
 0x1ba   :  { %1302 = vmatprep.subr.bf16.mxu1 %v6500_v16  ;;  %1359 = vmatprep.subr.bf16.mxu0 %v6500_v16  ;;  %v1459_v6 = vpop.permute.xlu1 %1458 }
 0x1bb   :  { %v1460_v60 = vsel %vm393_vm1, %v1457_v58, %v1459_v6  ;;  %v8584_v58 = vmov 0  }
 0x1bc   :  { %1229 = vmatmul.mubr.bf16.vlgmr.msra.gmra.mrb[32].mxu1 %v1191_v20  ;;  %1285 = vmatmul.mubr.bf16.vlgmr.msra.gmra.mrb[36].mxu0 %v1247_v21 }
 0x1bd   :  { %1303 = vmatpush1.bf16.msra.mxu1 %v6510_v18  ;;  %1360 = vmatpush1.bf16.msra.mxu0 %v6510_v18 }
 0x1be   :  { %1304 = vmatprep.subr.bf16.mxu1 %v6517_v51  ;;  %1361 = vmatprep.subr.bf16.mxu0 %v6517_v51  ;;  %v1509_v63 = vpop.permute.xlu1 %1508 }
 0x1bf   :  { %5016 = vmatprep.mubr.msk.bf16.mxu1 %vm281_vm0, %v6623_v22  ;;  %5019 = vmatprep.mubr.msk.bf16.mxu0 %vm281_vm0, %v6299_v61 }
 0x1c1   :  { %1305 = vmatpush1.bf16.msra.mxu1 %v6528_v46  ;;  %1362 = vmatpush1.bf16.msra.mxu0 %v6528_v46 }
 0x1c2   :  { %1306 = vmatprep.subr.bf16.mxu1 %v6535_v52  ;;  %1363 = vmatprep.subr.bf16.mxu0 %v6535_v52 }
 0x1c5   :  { %1307 = vmatpush1.bf16.msra.mxu1 %v6542_v53  ;;  %1364 = vmatpush1.bf16.msra.mxu0 %v6542_v53 }
 0x1c6   :  { %1308 = vmatprep.subr.bf16.mxu1 %v6549_v54  ;;  %1365 = vmatprep.subr.bf16.mxu0 %v6549_v54 }
 0x1c7   :  { %v697_v23 = vpop.f32.mrb[12].mxu1  ;;  %v6641_v25 = vpop.f32.mrb[16].mxu0 }
 0x1c8   :  { %v704_v28 = vmax.f32 %v6553_v56, %v697_v23  ;;  %v699_v61 = vpop.f32.mrb[13].mxu1  ;;  %v6644_v31 = vpop.f32.mrb[17].mxu0 }
 0x1c9   :  { %v705_v32 = vmax.f32 %v6556_v59, %v699_v61  ;;  %v701_v33 = vpop.f32.mrb[14].mxu1  ;;  %1309 = vmatpush1.bf16.msra.mxu1 %v6562_v0  ;;  %1366 = vmatpush1.bf16.msra.mxu0 %v6562_v0  ;;  %v758_v34 = vpop.f32.mrb[18].mxu0  ;;  %v1404_v59 = vsel %vm330_vm2, %v1401_v57, %v1403_v5  ;;  %v6894_v57 = vld [vmem:[%s8572_s3 + $0x68] ss:$8 sps:$4 sm:$0xff]  }
 0x1ca   :  { %v702_v35 = vpop.f32.mrb[15].mxu1  ;;  %1310 = vmatprep.subr.bf16.mxu1 %v6569_v12  ;;  %1367 = vmatprep.subr.bf16.mxu0 %v6569_v12  ;;  %v759_v36 = vpop.f32.mrb[19].mxu0 }
 0x1cb   :  { %v6651_v38 = vmax.f32 %v704_v28, %v705_v32  ;;  %v1507_v28 = vpop.permute.xlu0 %1506  ;;  %v1616_v61 = vpop.permute.xlu1 %1615 }
 0x1cd   :  { %1311 = vmatpush1.bf16.msra.mxu1 %v6578_v24  ;;  %1368 = vmatpush1.bf16.msra.mxu0 %v6578_v24 }
 0x1ce   :  { %1312 = vmatprep.subr.bf16.mxu1 %v6585_v26  ;;  %1369 = vmatprep.subr.bf16.mxu0 %v6585_v26 }
 0x1cf   :  { %v1672_v32 = vpop.permute.xlu1 %1671 }
 0x1d1   :  { %1313 = vmatpush1.bf16.msra.mxu1 %v6592_v27  ;;  %1370 = vmatpush1.bf16.msra.mxu0 %v6592_v27 }
 0x1d2   :  { %1314 = vmatprep.subr.bf16.mxu1 %v6599_v29  ;;  %1371 = vmatprep.subr.bf16.mxu0 %v6599_v29 }
 0x1d5   :  { %1315 = vmatpush1.bf16.msra.mxu1 %v6664_v39  ;;  %1372 = vmatpush1.bf16.msra.mxu0 %v6664_v39 }
 0x1d6   :  { %1316 = vmatprep.subr.bf16.mxu1 %v6671_v42  ;;  %1373 = vmatprep.subr.bf16.mxu0 %v6671_v42 }
 0x1d9   :  { %1317 = vmatpush1.bf16.msra.mxu1 %v6678_v43  ;;  %1374 = vmatpush1.bf16.msra.mxu0 %v6678_v43 }
 0x1da   :  { %1318 = vmatprep.subr.bf16.mxu1 %v6685_v44  ;;  %1375 = vmatprep.subr.bf16.mxu0 %v6685_v44 }
 0x1dd   :  { %1319 = vmatpush1.bf16.msra.mxu1 %v6692_v47  ;;  %1376 = vmatpush1.bf16.msra.mxu0 %v6692_v47 }
 0x1de   :  { %1320 = vmatprep.subr.bf16.mxu1 %v6699_v2  ;;  %1377 = vmatprep.subr.bf16.mxu0 %v6699_v2 }
 0x1e1   :  { %1321 = vmatpush1.bf16.msra.mxu1 %v6706_v45  ;;  %1378 = vmatpush1.bf16.msra.mxu0 %v6706_v45 }
 0x1e2   :  { %1409 = vmatprep.subr.bf16.mxu1 %v6500_v16  ;;  %1465 = vmatprep.subr.bf16.mxu0 %v6500_v16 }
 0x1e4   :  { %1335 = vmatmul.mubr.bf16.vlgmr.msra.gmra.mrb[36].mxu1 %v1297_v48  ;;  %1392 = vmatmul.mubr.bf16.vlgmr.msra.gmra.mrb[40].mxu0 %v6301_v62 }
 0x1e5   :  { %1410 = vmatpush1.bf16.msra.mxu1 %v6510_v18  ;;  %1466 = vmatpush1.bf16.msra.mxu0 %v6510_v18 }
 0x1e6   :  { %1411 = vmatprep.subr.bf16.mxu1 %v6517_v51  ;;  %1467 = vmatprep.subr.bf16.mxu0 %v6517_v51 }
 0x1e7   :  { %5020 = vmatprep.mubr.msk.bf16.mxu1 %vm281_vm0, %v1403_v5  ;;  %5021 = vmatprep.mubr.msk.bf16.mxu0 %vm281_vm0, %v1459_v6 }
 0x1e9   :  { %1412 = vmatpush1.bf16.msra.mxu1 %v6528_v46  ;;  %1468 = vmatpush1.bf16.msra.mxu0 %v6528_v46 }
 0x1ea   :  { %1413 = vmatprep.subr.bf16.mxu1 %v6535_v52  ;;  %1469 = vmatprep.subr.bf16.mxu0 %v6535_v52 }
 0x1ed   :  { %1414 = vmatpush1.bf16.msra.mxu1 %v6542_v53  ;;  %1470 = vmatpush1.bf16.msra.mxu0 %v6542_v53 }
 0x1ee   :  { %1415 = vmatprep.subr.bf16.mxu1 %v6549_v54  ;;  %1471 = vmatprep.subr.bf16.mxu0 %v6549_v54 }
 0x1ef   :  { %v804_v62 = vpop.f32.mrb[16].mxu1  ;;  %v6729_v49 = vpop.f32.mrb[20].mxu0 }
 0x1f0   :  { %v811_v7 = vmax.f32 %v6641_v25, %v804_v62  ;;  %v806_v8 = vpop.f32.mrb[17].mxu1  ;;  %v6732_v9 = vpop.f32.mrb[21].mxu0 }
 0x1f1   :  { %v812_v10 = vmax.f32 %v6644_v31, %v806_v8  ;;  %v808_v11 = vpop.f32.mrb[18].mxu1  ;;  %1416 = vmatpush1.bf16.msra.mxu1 %v6562_v0  ;;  %1472 = vmatpush1.bf16.msra.mxu0 %v6562_v0  ;;  %v864_v15 = vpop.f32.mrb[22].mxu0  ;;  %v1510_v31 = vsel %vm281_vm0, %v1507_v28, %v1509_v63 }
 0x1f2   :  { %v809_v17 = vpop.f32.mrb[19].mxu1  ;;  %1417 = vmatprep.subr.bf16.mxu1 %v6569_v12  ;;  %1473 = vmatprep.subr.bf16.mxu0 %v6569_v12  ;;  %v865_v55 = vpop.f32.mrb[23].mxu0  ;;  %v6878_v15 = vld [vmem:[%s8572_s3 + $0x58] ss:$8 sps:$4 sm:$0xff]  }
 0x1f3   :  { %v6739_v56 = vmax.f32 %v811_v7, %v812_v10  ;;  %v1614_v7 = vpop.permute.xlu0 %1613  ;;  %v6885_v17 = vld [vmem:[%s8572_s3 + $0x6c] ss:$8 sps:$4 sm:$0xff]   ;;  %v6887_v55 = vpop.permute.xlu1 %1721 }
 0x1f4   :  { %v1617_v10 = vsel %vm330_vm2, %v1614_v7, %v1616_v61 }
 0x1f5   :  { %1418 = vmatpush1.bf16.msra.mxu1 %v6578_v24  ;;  %1474 = vmatpush1.bf16.msra.mxu0 %v6578_v24 }
 0x1f6   :  { %1419 = vmatprep.subr.bf16.mxu1 %v6585_v26  ;;  %1475 = vmatprep.subr.bf16.mxu0 %v6585_v26 }
 0x1f7   :  { %v1670_v8 = vpop.permute.xlu0 %1669 }
 0x1f8   :  { %v1673_v11 = vsel %vm393_vm1, %v1670_v8, %v1672_v32 }
 0x1f9   :  { %1420 = vmatpush1.bf16.msra.mxu1 %v6592_v27  ;;  %1476 = vmatpush1.bf16.msra.mxu0 %v6592_v27 }
 0x1fa   :  { %1421 = vmatprep.subr.bf16.mxu1 %v6599_v29  ;;  %1477 = vmatprep.subr.bf16.mxu0 %v6599_v29 }
 0x1fd   :  { %1422 = vmatpush1.bf16.msra.mxu1 %v6664_v39  ;;  %1478 = vmatpush1.bf16.msra.mxu0 %v6664_v39 }
 0x1fe   :  { %1423 = vmatprep.subr.bf16.mxu1 %v6671_v42  ;;  %1479 = vmatprep.subr.bf16.mxu0 %v6671_v42 }
 0x201   :  { %1424 = vmatpush1.bf16.msra.mxu1 %v6678_v43  ;;  %1480 = vmatpush1.bf16.msra.mxu0 %v6678_v43 }
 0x202   :  { %1425 = vmatprep.subr.bf16.mxu1 %v6685_v44  ;;  %1481 = vmatprep.subr.bf16.mxu0 %v6685_v44 }
 0x205   :  { %1426 = vmatpush1.bf16.msra.mxu1 %v6692_v47  ;;  %1482 = vmatpush1.bf16.msra.mxu0 %v6692_v47 }
 0x206   :  { %1427 = vmatprep.subr.bf16.mxu1 %v6699_v2  ;;  %1483 = vmatprep.subr.bf16.mxu0 %v6699_v2 }
 0x209   :  { %1428 = vmatpush1.bf16.msra.mxu1 %v6706_v45  ;;  %1484 = vmatpush1.bf16.msra.mxu0 %v6706_v45 }
 0x20a   :  { %1515 = vmatprep.subr.bf16.mxu1 %v6500_v16  ;;  %1572 = vmatprep.subr.bf16.mxu0 %v6500_v16 }
 0x20c   :  { %1442 = vmatmul.mubr.bf16.vlgmr.msra.gmra.mrb[40].mxu1 %v1404_v59  ;;  %1498 = vmatmul.mubr.bf16.vlgmr.msra.gmra.mrb[44].mxu0 %v1460_v60 }
 0x20d   :  { %1516 = vmatpush1.bf16.msra.mxu1 %v6510_v18  ;;  %1573 = vmatpush1.bf16.msra.mxu0 %v6510_v18 }
 0x20e   :  { %1517 = vmatprep.subr.bf16.mxu1 %v6517_v51  ;;  %1574 = vmatprep.subr.bf16.mxu0 %v6517_v51 }
 0x20f   :  { %5022 = vmatprep.mubr.msk.bf16.mxu1 %vm281_vm0, %v1509_v63  ;;  %5025 = vmatprep.mubr.msk.bf16.mxu0 %vm281_vm0, %v6418_v40 }
 0x211   :  { %1518 = vmatpush1.bf16.msra.mxu1 %v6528_v46  ;;  %1575 = vmatpush1.bf16.msra.mxu0 %v6528_v46 }
 0x212   :  { %1519 = vmatprep.subr.bf16.mxu1 %v6535_v52  ;;  %1576 = vmatprep.subr.bf16.mxu0 %v6535_v52 }
 0x215   :  { %1520 = vmatpush1.bf16.msra.mxu1 %v6542_v53  ;;  %1577 = vmatpush1.bf16.msra.mxu0 %v6542_v53 }
 0x216   :  { %1521 = vmatprep.subr.bf16.mxu1 %v6549_v54  ;;  %1578 = vmatprep.subr.bf16.mxu0 %v6549_v54 }
 0x217   :  { %v910_v1 = vpop.f32.mrb[20].mxu1  ;;  %v6782_v4 = vpop.f32.mrb[24].mxu0 }
 0x218   :  { %v917_v40 = vmax.f32 %v6729_v49, %v910_v1  ;;  %v912_v13 = vpop.f32.mrb[21].mxu1  ;;  %v6785_v30 = vpop.f32.mrb[25].mxu0 }
 0x219   :  { %v918_v19 = vmax.f32 %v6732_v9, %v912_v13  ;;  %v914_v20 = vpop.f32.mrb[22].mxu1  ;;  %1522 = vmatpush1.bf16.msra.mxu1 %v6562_v0  ;;  %1579 = vmatpush1.bf16.msra.mxu0 %v6562_v0  ;;  %v971_v21 = vpop.f32.mrb[26].mxu0  ;;  %v6869_v9 = vld [vmem:[%s8572_s3 + $0x5c] ss:$8 sps:$4 sm:$0xff]  }
 0x21a   :  { %v915_v22 = vpop.f32.mrb[23].mxu1  ;;  %1523 = vmatprep.subr.bf16.mxu1 %v6569_v12  ;;  %1580 = vmatprep.subr.bf16.mxu0 %v6569_v12  ;;  %v972_v23 = vpop.f32.mrb[27].mxu0 }
 0x21b   :  { %v6792_v25 = vmax.f32 %v917_v40, %v918_v19 }
 0x21d   :  { %1524 = vmatpush1.bf16.msra.mxu1 %v6578_v24  ;;  %1581 = vmatpush1.bf16.msra.mxu0 %v6578_v24 }
 0x21e   :  { %1525 = vmatprep.subr.bf16.mxu1 %v6585_v26  ;;  %1582 = vmatprep.subr.bf16.mxu0 %v6585_v26 }
 0x221   :  { %1526 = vmatpush1.bf16.msra.mxu1 %v6592_v27  ;;  %1583 = vmatpush1.bf16.msra.mxu0 %v6592_v27 }
 0x222   :  { %1527 = vmatprep.subr.bf16.mxu1 %v6599_v29  ;;  %1584 = vmatprep.subr.bf16.mxu0 %v6599_v29 }
 0x225   :  { %1528 = vmatpush1.bf16.msra.mxu1 %v6664_v39  ;;  %1585 = vmatpush1.bf16.msra.mxu0 %v6664_v39 }
 0x226   :  { %1529 = vmatprep.subr.bf16.mxu1 %v6671_v42  ;;  %1586 = vmatprep.subr.bf16.mxu0 %v6671_v42 }
 0x229   :  { %1530 = vmatpush1.bf16.msra.mxu1 %v6678_v43  ;;  %1587 = vmatpush1.bf16.msra.mxu0 %v6678_v43 }
 0x22a   :  { %1531 = vmatprep.subr.bf16.mxu1 %v6685_v44  ;;  %1588 = vmatprep.subr.bf16.mxu0 %v6685_v44 }
 0x22d   :  { %1532 = vmatpush1.bf16.msra.mxu1 %v6692_v47  ;;  %1589 = vmatpush1.bf16.msra.mxu0 %v6692_v47 }
 0x22e   :  { %1533 = vmatprep.subr.bf16.mxu1 %v6699_v2  ;;  %1590 = vmatprep.subr.bf16.mxu0 %v6699_v2 }
 0x231   :  { %1534 = vmatpush1.bf16.msra.mxu1 %v6706_v45  ;;  %1591 = vmatpush1.bf16.msra.mxu0 %v6706_v45 }
 0x232   :  { %1622 = vmatprep.subr.bf16.mxu1 %v6500_v16  ;;  %1678 = vmatprep.subr.bf16.mxu0 %v6500_v16 }
 0x234   :  { %1548 = vmatmul.mubr.bf16.vlgmr.msra.gmra.mrb[44].mxu1 %v1510_v31  ;;  %1605 = vmatmul.mubr.bf16.vlgmr.msra.gmra.mrb[48].mxu0 %v6420_v41  ;;  %v6990_v31 = vld [vmem:[%s8572_s3 + $0x14] ss:$8 sps:$4 sm:$0xff]  }
 0x235   :  { %1623 = vmatpush1.bf16.msra.mxu1 %v6510_v18  ;;  %1679 = vmatpush1.bf16.msra.mxu0 %v6510_v18 }
 0x236   :  { %1624 = vmatprep.subr.bf16.mxu1 %v6517_v51  ;;  %1680 = vmatprep.subr.bf16.mxu0 %v6517_v51 }
 0x237   :  { %5026 = vmatprep.mubr.msk.bf16.mxu1 %vm281_vm0, %v1616_v61  ;;  %5027 = vmatprep.mubr.msk.bf16.mxu0 %vm281_vm0, %v1672_v32  ;;  %v7035_v32 = vld [vmem:[%s8572_s3 + $0x44] ss:$8 sps:$4 sm:$0xff]  }
 0x238   :  { %8650 = vst [vmem:[#allocation9_spill] sm:$0xff] %v7035_v32 }
 0x239   :  { %1625 = vmatpush1.bf16.msra.mxu1 %v6528_v46  ;;  %1681 = vmatpush1.bf16.msra.mxu0 %v6528_v46 }
 0x23a   :  { %1626 = vmatprep.subr.bf16.mxu1 %v6535_v52  ;;  %1682 = vmatprep.subr.bf16.mxu0 %v6535_v52 }
 0x23d   :  { %1627 = vmatpush1.bf16.msra.mxu1 %v6542_v53  ;;  %1683 = vmatpush1.bf16.msra.mxu0 %v6542_v53 }
 0x23e   :  { %1628 = vmatprep.subr.bf16.mxu1 %v6549_v54  ;;  %1684 = vmatprep.subr.bf16.mxu0 %v6549_v54 }
 0x23f   :  { %v1017_v41 = vpop.f32.mrb[24].mxu1  ;;  %v6834_v33 = vpop.f32.mrb[28].mxu0 }
 0x240   :  { %v1024_v34 = vmax.f32 %v6782_v4, %v1017_v41  ;;  %v1019_v35 = vpop.f32.mrb[25].mxu1  ;;  %v6837_v36 = vpop.f32.mrb[29].mxu0 }
 0x241   :  { %v1025_v3 = vmax.f32 %v6785_v30, %v1019_v35  ;;  %v1021_v5 = vpop.f32.mrb[26].mxu1  ;;  %1629 = vmatpush1.bf16.msra.mxu1 %v6562_v0  ;;  %1685 = vmatpush1.bf16.msra.mxu0 %v6562_v0  ;;  %v1077_v48 = vpop.f32.mrb[30].mxu0  ;;  %v6953_v30 = vld [vmem:[%s8572_s3 + $0x98] ss:$8 sps:$4 sm:$0xff]  }
 0x242   :  { %v1022_v6 = vpop.f32.mrb[27].mxu1  ;;  %1630 = vmatprep.subr.bf16.mxu1 %v6569_v12  ;;  %1686 = vmatprep.subr.bf16.mxu0 %v6569_v12  ;;  %v1078_v62 = vpop.f32.mrb[31].mxu0  ;;  %v7081_v48 = vld [vmem:[%s8572_s3 + $0xc4] ss:$8 sps:$4 sm:$0xff]  }
 0x243   :  { %v6844_v49 = vmax.f32 %v1024_v34, %v1025_v3  ;;  %v7074_v3 = vld [vmem:[%s8572_s3 + $0xb0] ss:$8 sps:$4 sm:$0xff]   ;;  %8656 = vst [vmem:[#allocation15_spill] sm:$0xff] %v7081_v48  ;;  %v7089_v6 = vld [vmem:[%s8572_s3 + $0xc0] ss:$8 sps:$4 sm:$0xff]  }
 0x244   :  { %8655 = vst [vmem:[#allocation14_spill] sm:$0xff] %v7074_v3  ;;  %v7096_v62 = vld [vmem:[%s8572_s3 + $0xd4] ss:$8 sps:$4 sm:$0xff]  }
 0x245   :  { %8643 = vst [vmem:[#allocation2_spill] sm:$0xff] %v6844_v49  ;;  %1631 = vmatpush1.bf16.msra.mxu1 %v6578_v24  ;;  %1687 = vmatpush1.bf16.msra.mxu0 %v6578_v24 }
 0x246   :  { %1632 = vmatprep.subr.bf16.mxu1 %v6585_v26  ;;  %1688 = vmatprep.subr.bf16.mxu0 %v6585_v26 }
 0x249   :  { %1633 = vmatpush1.bf16.msra.mxu1 %v6592_v27  ;;  %1689 = vmatpush1.bf16.msra.mxu0 %v6592_v27 }
 0x24a   :  { %1634 = vmatprep.subr.bf16.mxu1 %v6599_v29  ;;  %1690 = vmatprep.subr.bf16.mxu0 %v6599_v29 }
 0x24d   :  { %1635 = vmatpush1.bf16.msra.mxu1 %v6664_v39  ;;  %1691 = vmatpush1.bf16.msra.mxu0 %v6664_v39 }
 0x24e   :  { %1636 = vmatprep.subr.bf16.mxu1 %v6671_v42  ;;  %1692 = vmatprep.subr.bf16.mxu0 %v6671_v42 }
 0x251   :  { %1637 = vmatpush1.bf16.msra.mxu1 %v6678_v43  ;;  %1693 = vmatpush1.bf16.msra.mxu0 %v6678_v43 }
 0x252   :  { %1638 = vmatprep.subr.bf16.mxu1 %v6685_v44  ;;  %1694 = vmatprep.subr.bf16.mxu0 %v6685_v44 }
 0x255   :  { %1639 = vmatpush1.bf16.msra.mxu1 %v6692_v47  ;;  %1695 = vmatpush1.bf16.msra.mxu0 %v6692_v47 }
 0x256   :  { %1640 = vmatprep.subr.bf16.mxu1 %v6699_v2  ;;  %1696 = vmatprep.subr.bf16.mxu0 %v6699_v2 }
 0x259   :  { %1641 = vmatpush1.bf16.msra.mxu1 %v6706_v45  ;;  %1697 = vmatpush1.bf16.msra.mxu0 %v6706_v45 }
 0x25a   :  { %1728 = vmatprep.subr.bf16.mxu1 %v6500_v16  ;;  %1841 = vmatprep.subr.bf16.mxu0 %v6869_v9  ;;  %v6901_v16 = vld [vmem:[%s8572_s3 + $0x7c] ss:$8 sps:$4 sm:$0xff]  }
 0x25c   :  { %1655 = vmatmul.mubr.bf16.vlgmr.msra.gmra.mrb[48].mxu1 %v1617_v10  ;;  %1711 = vmatmul.mubr.bf16.vlgmr.msra.gmra.mrb[52].mxu0 %v1673_v11 }
 0x25d   :  { %1729 = vmatpush1.bf16.msra.mxu1 %v6510_v18  ;;  %1842 = vmatpush1.bf16.msra.mxu0 %v6878_v15  ;;  %v6911_v18 = vld [vmem:[%s8572_s3 + $0x78] ss:$8 sps:$4 sm:$0xff]  }
 0x25e   :  { %1730 = vmatprep.subr.bf16.mxu1 %v6517_v51  ;;  %1843 = vmatprep.subr.bf16.mxu0 %v6885_v17  ;;  %8644 = vst [vmem:[#allocation3_spill] sm:$0xff] %v6911_v18  ;;  %v6918_v51 = vld [vmem:[%s8572_s3 + $0x8c] ss:$8 sps:$4 sm:$0xff]  }
 0x25f   :  { %1873 = vmatprep.mubr.bf16.mxu0 %v8584_v58  ;;  %5028 = vmatprep.mubr.msk.bf16.mxu1 %vm281_vm0, %v6887_v55  ;;  %8645 = vst [vmem:[#allocation4_spill] sm:$0xff] %v6918_v51 }
 0x261   :  { %1731 = vmatpush1.bf16.msra.mxu1 %v6528_v46  ;;  %1844 = vmatpush1.bf16.msra.mxu0 %v6894_v57  ;;  %v6925_v46 = vld [vmem:[%s8572_s3 + $0x88] ss:$8 sps:$4 sm:$0xff]  }
 0x262   :  { %1732 = vmatprep.subr.bf16.mxu1 %v6535_v52  ;;  %1845 = vmatprep.subr.bf16.mxu0 %v6901_v16  ;;  %v6932_v52 = vld [vmem:[%s8572_s3 + $0x9c] ss:$8 sps:$4 sm:$0xff]  }
 0x265   :  { %1733 = vmatpush1.bf16.msra.mxu1 %v6542_v53  ;;  %1846 = vmatpush1.bf16.msra.mxu0 %v6911_v18  ;;  %v4892_v53 = vld [vmem:[%s8572_s3 + $0xa8] sm:$0x33] }
 0x266   :  { %1734 = vmatprep.subr.bf16.mxu1 %v6549_v54  ;;  %1847 = vmatprep.subr.bf16.mxu0 %v6918_v51  ;;  %v6945_v54 = vld [vmem:[%s8573_s2] ss:$0 sm:$0xff]  ;;  %v6959_v22 = vcombine.high %v4892_v53, %v4892_v53  ;;  %v5039_v23 = vcombine.low %v4892_v53, %v4892_v53 }
 0x267   :  { %v1123_v59 = vpop.f32.mrb[28].mxu1  ;;  %v6937_v60 = vpop.f32.mrb[32].mxu0  ;;  %v494_v20 = vadd.f32 %v6945_v54, %v6470_v50 }
 0x268   :  { %v1130_v63 = vmax.f32 %v6834_v33, %v1123_v59  ;;  %v1125_v1 = vpop.f32.mrb[29].mxu1  ;;  %v6940_v4 = vpop.f32.mrb[33].mxu0  ;;  %v6969_v50 = vsel %vm1834_vm3, %v5039_v23, 0  ;;  %v386_v33 = vadd.f32 %v6945_v54, %v6397_v37  ;;  %v4903_v23 = vld [vmem:[%s8572_s3 + $0x100] sm:$0x33] }
 0x269   :  { %v1131_v40 = vmax.f32 %v6837_v36, %v1125_v1  ;;  %v1127_v13 = vpop.f32.mrb[30].mxu1  ;;  %1735 = vmatpush1.bf16.msra.mxu1 %v6562_v0  ;;  %1848 = vmatpush1.bf16.msra.mxu0 %v6925_v46  ;;  %v1184_v19 = vpop.f32.mrb[34].mxu0  ;;  %v495_v61 = vmax.f32 %v494_v20, 0.0  ;;  %v7066_v36 = vld [vmem:[%s8572_s3 + $0xb4] ss:$8 sps:$4 sm:$0xff]  }
 0x26a   :  { %v1128_v21 = vpop.f32.mrb[31].mxu1  ;;  %1736 = vmatprep.subr.bf16.mxu1 %v6569_v12  ;;  %1849 = vmatprep.subr.bf16.mxu0 %v6932_v52  ;;  %v1185_v0 = vpop.f32.mrb[35].mxu0  ;;  %v6974_v12 = vld [vmem:[%s8572_s3 + $0x4] ss:$8 sps:$4 sm:$0xff]   ;;  %v387_v35 = vmax.f32 %v386_v33, 0.0  ;;  %8654 = vst [vmem:[#allocation13_spill] sm:$0xff] %v7066_v36 }
 0x26b   :  { %v6961_v28 = vmax.f32 %v1130_v63, %v1131_v40  ;;  %v7110_v63 = vld [vmem:[%s8572_s3 + $0xd0] ss:$8 sps:$4 sm:$0xff]   ;;  %v601_v40 = vadd.f32 %v6945_v54, %v6573_v14  ;;  %v7128_v14 = vld [vmem:[%s8572_s3 + $0xe0] ss:$8 sps:$4 sm:$0xff]   ;;  %v7136_v21 = vld [vmem:[%s8572_s3 + $0xf4] ss:$8 sps:$4 sm:$0xff]  }
 0x26c   :  { %v388_v5 = vpack.c.bf16 %v387_v35, %v387_v35  ;;  %8658 = vst [vmem:[#allocation17_spill] sm:$0xff] %v7136_v21  ;;  %v7146_v0 = vld [vmem:[%s8572_s3 + $0xf0] ss:$8 sps:$4 sm:$0xff]   ;;  %v7167_v33 = vld [vmem:[%s8572_s3 + $0x10c] ss:$8 sps:$4 sm:$0xff]  }
 0x26d   :  { %8646 = vst [vmem:[#allocation5_spill] sm:$0xff] %v6961_v28  ;;  %1737 = vmatpush1.bf16.msra.mxu1 %v6578_v24  ;;  %1850 = vmatpush1.bf16.msra.mxu0 %v6953_v30  ;;  %v6981_v24 = vld [vmem:[%s8572_s3] ss:$8 sps:$4 sm:$0xff]   ;;  %v602_v20 = vmax.f32 %v601_v40, 0.0  ;;  %8659 = vst [vmem:[#allocation18_spill] sm:$0xff] %v7146_v0 }
 0x26e   :  { %1738 = vmatprep.subr.bf16.mxu1 %v6585_v26  ;;  %5041 = vmatprep.subr.msk.bf16.mxu0 %vm1834_vm3, %v6959_v22  ;;  %v6983_v26 = vpack.c.bf16 %v495_v61, %v495_v61  ;;  %v7182_v35 = vld [vmem:[%s8572_s3 + $0x11c] ss:$8 sps:$4 sm:$0xff]   ;;  %v7238_v40 = vld [vmem:[%s8572_s3 + $0x148] ss:$8 sps:$4 sm:$0xff]  }
 0x26f   :  { %v7148_v61 = vpack.c.bf16 %v602_v20, %v602_v20  ;;  %8669 = vst [vmem:[#allocation28_spill] sm:$0xff] %v7238_v40 }
 0x271   :  { %1739 = vmatpush1.bf16.msra.mxu1 %v6592_v27  ;;  %1852 = vmatpush1.bf16.msra.mxu0 %v6969_v50  ;;  %v6999_v27 = vld [vmem:[%s8572_s3 + $0x10] ss:$8 sps:$4 sm:$0xff]   ;;  %8660 = vst [vmem:[#allocation19_spill] sm:$0xff] %v7148_v61 }
 0x272   :  { %1740 = vmatprep.subr.bf16.mxu1 %v6599_v29  ;;  %1946 = vmatprep.subr.bf16.mxu0 %v6974_v12  ;;  %v7006_v29 = vld [vmem:[%s8572_s3 + $0x24] ss:$8 sps:$4 sm:$0xff]  }
 0x274   :  { %5042 = vmatmul.mubr.msk.bf16.vlgmr.msra.gmra.mrb[56].mxu0 %vm1830_vm4, %v6983_v26 }
 0x275   :  { %1741 = vmatpush1.bf16.msra.mxu1 %v6664_v39  ;;  %1947 = vmatpush1.bf16.msra.mxu0 %v6981_v24  ;;  %v7014_v39 = vld [vmem:[%s8572_s3 + $0x20] ss:$8 sps:$4 sm:$0xff]  }
 0x276   :  { %1742 = vmatprep.subr.bf16.mxu1 %v6671_v42  ;;  %1948 = vmatprep.subr.bf16.mxu0 %v6990_v31  ;;  %8647 = vst [vmem:[#allocation6_spill] sm:$0xff] %v7014_v39  ;;  %v7021_v42 = vld [vmem:[%s8572_s3 + $0x34] ss:$8 sps:$4 sm:$0xff]  }
 0x277   :  { %1978 = vmatprep.mubr.bf16.mxu0 %v8584_v58  ;;  %8648 = vst [vmem:[#allocation7_spill] sm:$0xff] %v7021_v42 }
 0x279   :  { %1743 = vmatpush1.bf16.msra.mxu1 %v6678_v43  ;;  %1949 = vmatpush1.bf16.msra.mxu0 %v6999_v27  ;;  %v7028_v43 = vld [vmem:[%s8572_s3 + $0x30] ss:$8 sps:$4 sm:$0xff]  }
 0x27a   :  { %1744 = vmatprep.subr.bf16.mxu1 %v6685_v44  ;;  %1950 = vmatprep.subr.bf16.mxu0 %v7006_v29  ;;  %8649 = vst [vmem:[#allocation8_spill] sm:$0xff] %v7028_v43  ;;  %v1720_v44 = vpop.permute.xlu0 %1719 }
 0x27b   :  { %v1723_v41 = vsel %vm281_vm0, %v1720_v44, %v6887_v55  ;;  %v7152_v44 = vcombine.high %v4903_v23, %v4903_v23 }
 0x27d   :  { %1745 = vmatpush1.bf16.msra.mxu1 %v6692_v47  ;;  %1951 = vmatpush1.bf16.msra.mxu0 %v7014_v39  ;;  %v71_v47 = vld [vmem:[%s8572_s3 + $0x50] sm:$0x33]  ;;  %8661 = vst [vmem:[#allocation20_spill] sm:$0xff] %v7152_v44 }
 0x27e   :  { %1746 = vmatprep.subr.bf16.mxu1 %v6699_v2  ;;  %1952 = vmatprep.subr.bf16.mxu0 %v7021_v42  ;;  %v7047_v2 = vld [vmem:[%s8572_s3 + $0x40] ss:$8 sps:$4 sm:$0xff]   ;;  %v7053_v34 = vcombine.high %v71_v47, %v71_v47 }
 0x27f   :  { %8651 = vst [vmem:[#allocation10_spill] sm:$0xff] %v7047_v2 }
 0x280   :  { %8652 = vst [vmem:[#allocation11_spill] sm:$0xff] %v7053_v34 }
 0x281   :  { %1747 = vmatpush1.bf16.msra.mxu1 %v6706_v45  ;;  %1953 = vmatpush1.bf16.msra.mxu0 %v7028_v43  ;;  %v5053_v45 = vcombine.low %v71_v47, %v71_v47  ;;  %v5067_v47 = vcombine.low %v4903_v23, %v4903_v23 }
 0x282   :  { %1954 = vmatprep.subr.bf16.mxu0 %v7035_v32  ;;  %2308 = vmatprep.subr.bf16.mxu1 %v6869_v9 }
 0x283   :  { %v7061_v37 = vsel %vm1834_vm3, %v5053_v45, 0  ;;  %v7175_v45 = vld [vmem:[%s8572_s3 + $0x108] ss:$8 sps:$4 sm:$0xff]  }
 0x284   :  { %1761 = vmatmul.mubr.bf16.vlgmr.msra.gmra.mrb[52].mxu1 %v1723_v41  ;;  %8653 = vst [vmem:[#allocation12_spill] sm:$0xff] %v7061_v37  ;;  %v7162_v41 = vsel %vm1834_vm3, %v5067_v47, 0  ;;  %v7259_v47 = vld [vmem:[%s8572_s3 + $0x164] ss:$8 sps:$4 sm:$0xff]  }
 0x285   :  { %1955 = vmatpush1.bf16.msra.mxu0 %v7047_v2  ;;  %2309 = vmatpush1.bf16.msra.mxu1 %v6878_v15  ;;  %8662 = vst [vmem:[#allocation21_spill] sm:$0xff] %v7162_v41 }
 0x286   :  { %5055 = vmatprep.subr.msk.bf16.mxu0 %vm1834_vm3, %v7053_v34  ;;  %2310 = vmatprep.subr.bf16.mxu1 %v6885_v17 }
 0x287   :  { %2340 = vmatprep.mubr.bf16.mxu1 %v8584_v58 }
 0x289   :  { %1957 = vmatpush1.bf16.msra.mxu0 %v7061_v37  ;;  %2311 = vmatpush1.bf16.msra.mxu1 %v6894_v57 }
 0x28a   :  { %2051 = vmatprep.subr.bf16.mxu0 %v7066_v36  ;;  %2312 = vmatprep.subr.bf16.mxu1 %v6901_v16 }
 0x28c   :  { %5056 = vmatmul.mubr.msk.bf16.vlgmr.msra.gmra.mrb[56].mxu0 %vm1830_vm4, %v388_v5  ;;  %v7191_v5 = vld [vmem:[%s8572_s3 + $0x118] ss:$8 sps:$4 sm:$0xff]  }
 0x28d   :  { %2052 = vmatpush1.bf16.msra.mxu0 %v7074_v3  ;;  %2313 = vmatpush1.bf16.msra.mxu1 %v6911_v18  ;;  %8663 = vst [vmem:[#allocation22_spill] sm:$0xff] %v7191_v5 }
 0x28e   :  { %2053 = vmatprep.subr.bf16.mxu0 %v7081_v48  ;;  %2314 = vmatprep.subr.bf16.mxu1 %v6918_v51 }
 0x28f   :  { %v1230_v7 = vpop.f32.mrb[32].mxu1  ;;  %2083 = vmatprep.mubr.bf16.mxu0 %v8584_v58  ;;  %v7099_v8 = vpop.f32.mrb[36].mxu0 }
 0x290   :  { %v1237_v10 = vmax.f32 %v6937_v60, %v1230_v7  ;;  %v1232_v11 = vpop.f32.mrb[33].mxu1  ;;  %v7102_v55 = vpop.f32.mrb[37].mxu0  ;;  %v7198_v7 = vld [vmem:[%s8572_s3 + $0x12c] ss:$8 sps:$4 sm:$0xff]  }
 0x291   :  { %v1238_v59 = vmax.f32 %v6940_v4, %v1232_v11  ;;  %v1234_v53 = vpop.f32.mrb[34].mxu1  ;;  %2054 = vmatpush1.bf16.msra.mxu0 %v7089_v6  ;;  %2315 = vmatpush1.bf16.msra.mxu1 %v6925_v46  ;;  %v1290_v1 = vpop.f32.mrb[38].mxu0  ;;  %v7119_v4 = vld [vmem:[%s8572_s3 + $0xe4] ss:$8 sps:$4 sm:$0xff]   ;;  %8664 = vst [vmem:[#allocation23_spill] sm:$0xff] %v7198_v7 }
 0x292   :  { %v1235_v60 = vpop.f32.mrb[35].mxu1  ;;  %2055 = vmatprep.subr.bf16.mxu0 %v7096_v62  ;;  %2316 = vmatprep.subr.bf16.mxu1 %v6932_v52  ;;  %v1291_v13 = vpop.f32.mrb[39].mxu0  ;;  %v7213_v11 = vld [vmem:[%s8572_s3 + $0x13c] ss:$8 sps:$4 sm:$0xff]   ;;  %v7228_v53 = vld [vmem:[%s8572_s3 + $0x14c] ss:$8 sps:$4 sm:$0xff]  }
 0x293   :  { %v7121_v19 = vmax.f32 %v1237_v10, %v1238_v59  ;;  %v7206_v10 = vld [vmem:[%s8572_s3 + $0x128] ss:$8 sps:$4 sm:$0xff]   ;;  %8666 = vst [vmem:[#allocation25_spill] sm:$0xff] %v7213_v11  ;;  %v7220_v59 = vld [vmem:[%s8572_s3 + $0x138] ss:$8 sps:$4 sm:$0xff]   ;;  %8668 = vst [vmem:[#allocation27_spill] sm:$0xff] %v7228_v53  ;;  %v707_v60 = vadd.f32 %v6945_v54, %v6651_v38 }
 0x294   :  { %8665 = vst [vmem:[#allocation24_spill] sm:$0xff] %v7206_v10  ;;  %8667 = vst [vmem:[#allocation26_spill] sm:$0xff] %v7220_v59  ;;  %v4914_v1 = vld [vmem:[%s8572_s3 + $0x158] sm:$0x33] }
 0x295   :  { %8657 = vst [vmem:[#allocation16_spill] sm:$0xff] %v7121_v19  ;;  %2056 = vmatpush1.bf16.msra.mxu0 %v7110_v63  ;;  %2317 = vmatpush1.bf16.msra.mxu1 %v6953_v30  ;;  %v7244_v13 = vcombine.high %v4914_v1, %v4914_v1  ;;  %v5081_v20 = vcombine.low %v4914_v1, %v4914_v1  ;;  %v708_v23 = vmax.f32 %v707_v60, 0.0 }
 0x296   :  { %2057 = vmatprep.subr.bf16.mxu0 %v7119_v4  ;;  %5099 = vmatprep.subr.msk.bf16.mxu1 %vm1834_vm3, %v6959_v22 }
 0x297   :  { %8670 = vst [vmem:[#allocation29_spill] sm:$0xff] %v7244_v13  ;;  %v7254_v38 = vsel %vm1834_vm3, %v5081_v20, 0  ;;  %v7273_v20 = vld [vmem:[%s8572_s3 + $0x160] ss:$8 sps:$4 sm:$0xff]  }
 0x299   :  { %2058 = vmatpush1.bf16.msra.mxu0 %v7128_v14  ;;  %2319 = vmatpush1.bf16.msra.mxu1 %v6969_v50 }
 0x29a   :  { %2059 = vmatprep.subr.bf16.mxu0 %v7136_v21  ;;  %2349 = vmatprep.subr.bf16.mxu1 %v6974_v12 }
 0x29c   :  { %5100 = vmatmul.mubr.msk.bf16.vlgmr.msra.gmra.mrb[56].mxu1 %vm1830_vm4, %v7148_v61 }
 0x29d   :  { %2060 = vmatpush1.bf16.msra.mxu0 %v7146_v0  ;;  %2350 = vmatpush1.bf16.msra.mxu1 %v6981_v24 }
 0x29e   :  { %5069 = vmatprep.subr.msk.bf16.mxu0 %vm1834_vm3, %v7152_v44  ;;  %2351 = vmatprep.subr.bf16.mxu1 %v6990_v31 }
 0x29f   :  { %2381 = vmatprep.mubr.bf16.mxu1 %v8584_v58 }
 0x2a1   :  { %2062 = vmatpush1.bf16.msra.mxu0 %v7162_v41  ;;  %2352 = vmatpush1.bf16.msra.mxu1 %v6999_v27 }
 0x2a2   :  { %2158 = vmatprep.subr.bf16.mxu0 %v7167_v33  ;;  %2353 = vmatprep.subr.bf16.mxu1 %v7006_v29 }
 0x2a4   :  { %5070 = vmatmul.mubr.msk.bf16.vlgmr.msra.gmra.mrb[56].mxu0 %vm1830_vm4, %v7148_v61 }
 0x2a5   :  { %2159 = vmatpush1.bf16.msra.mxu0 %v7175_v45  ;;  %2354 = vmatpush1.bf16.msra.mxu1 %v7014_v39 }
 0x2a6   :  { %2160 = vmatprep.subr.bf16.mxu0 %v7182_v35  ;;  %2355 = vmatprep.subr.bf16.mxu1 %v7021_v42 }
 0x2a7   :  { %2190 = vmatprep.mubr.bf16.mxu0 %v8584_v58 }
 0x2a9   :  { %2161 = vmatpush1.bf16.msra.mxu0 %v7191_v5  ;;  %2356 = vmatpush1.bf16.msra.mxu1 %v7028_v43 }
 0x2aa   :  { %2162 = vmatprep.subr.bf16.mxu0 %v7198_v7  ;;  %2357 = vmatprep.subr.bf16.mxu1 %v7035_v32 }
 0x2ad   :  { %2163 = vmatpush1.bf16.msra.mxu0 %v7206_v10  ;;  %2358 = vmatpush1.bf16.msra.mxu1 %v7047_v2 }
 0x2ae   :  { %2164 = vmatprep.subr.bf16.mxu0 %v7213_v11  ;;  %5101 = vmatprep.subr.msk.bf16.mxu1 %vm1834_vm3, %v7053_v34 }
 0x2b1   :  { %2165 = vmatpush1.bf16.msra.mxu0 %v7220_v59  ;;  %2360 = vmatpush1.bf16.msra.mxu1 %v7061_v37 }
 0x2b2   :  { %2166 = vmatprep.subr.bf16.mxu0 %v7228_v53  ;;  %2390 = vmatprep.subr.bf16.mxu1 %v7066_v36 }
 0x2b4   :  { %5102 = vmatmul.mubr.msk.bf16.vlgmr.msra.gmra.mrb[56].mxu1 %vm1830_vm4, %v6983_v26 }
 0x2b5   :  { %2167 = vmatpush1.bf16.msra.mxu0 %v7238_v40  ;;  %2391 = vmatpush1.bf16.msra.mxu1 %v7074_v3  ;;  %v7275_v3 = vpack.c.bf16 %v708_v23, %v708_v23  ;;  %v7315_v23 = vld [vmem:[%s8572_s3 + $0x194] ss:$8 sps:$4 sm:$0xff]  }
 0x2b6   :  { %5083 = vmatprep.subr.msk.bf16.mxu0 %vm1834_vm3, %v7244_v13  ;;  %2392 = vmatprep.subr.bf16.mxu1 %v7081_v48 }
 0x2b7   :  { %v1336_v1 = vpop.f32.mrb[36].mxu1  ;;  %2422 = vmatprep.mubr.bf16.mxu1 %v8584_v58  ;;  %v7262_v26 = vpop.f32.mrb[40].mxu0 }
 0x2b8   :  { %v1343_v60 = vmax.f32 %v7099_v8, %v1336_v1  ;;  %v1338_v19 = vpop.f32.mrb[37].mxu1  ;;  %v7265_v28 = vpop.f32.mrb[41].mxu0  ;;  %v7322_v1 = vld [vmem:[%s8572_s3 + $0x190] ss:$8 sps:$4 sm:$0xff]  }
 0x2b9   :  { %v1344_v49 = vmax.f32 %v7102_v55, %v1338_v19  ;;  %v1340_v48 = vpop.f32.mrb[38].mxu1  ;;  %2169 = vmatpush1.bf16.msra.mxu0 %v7254_v38  ;;  %2393 = vmatpush1.bf16.msra.mxu1 %v7089_v6  ;;  %v1397_v58 = vpop.f32.mrb[42].mxu0  ;;  %v8672_v19 = vmov 0  }
 0x2ba   :  { %v1341_v61 = vpop.f32.mrb[39].mxu1  ;;  %2265 = vmatprep.subr.bf16.mxu0 %v7259_v47  ;;  %2394 = vmatprep.subr.bf16.mxu1 %v7096_v62  ;;  %v7282_v48 = vld [vmem:[%s8572_s3 + $0x174] ss:$8 sps:$4 sm:$0xff]   ;;  %v1398_v8 = vpop.f32.mrb[43].mxu0  ;;  %v7293_v58 = vld [vmem:[%s8572_s3 + $0x170] ss:$8 sps:$4 sm:$0xff]  }
 0x2bb   :  { %v7284_v55 = vmax.f32 %v1343_v60, %v1344_v49  ;;  %v7300_v49 = vld [vmem:[%s8572_s3 + $0x184] ss:$8 sps:$4 sm:$0xff]   ;;  %v7308_v61 = vld [vmem:[%s8572_s3 + $0x180] ss:$8 sps:$4 sm:$0xff]   ;;  %v4925_v8 = vld [vmem:[%s8572_s3 + $0x1b0] sm:$0x33] }
 0x2bc   :  { %5084 = vmatmul.mubr.msk.bf16.vlgmr.msra.gmra.mrb[56].mxu0 %vm1830_vm4, %v7275_v3  ;;  %v7330_v60 = vld [vmem:[%s8572_s3 + $0x1a4] ss:$8 sps:$4 sm:$0xff]  }
 0x2bd   :  { %8671 = vst [vmem:[#allocation30_spill] sm:$0xff] %v7284_v55  ;;  %2266 = vmatpush1.bf16.msra.mxu0 %v7273_v20  ;;  %2395 = vmatpush1.bf16.msra.mxu1 %v7110_v63  ;;  %v7340_v55 = vld [vmem:[%s8572_s3 + $0x1a0] ss:$8 sps:$4 sm:$0xff]  }
 0x2be   :  { %2267 = vmatprep.subr.bf16.mxu0 %v7282_v48  ;;  %2396 = vmatprep.subr.bf16.mxu1 %v7119_v4 }
 0x2bf   :  { %2297 = vmatprep.mubr.bf16.mxu0 %v8672_v19 }
 0x2c1   :  { %2268 = vmatpush1.bf16.msra.mxu0 %v7293_v58  ;;  %2397 = vmatpush1.bf16.msra.mxu1 %v7128_v14 }
 0x2c2   :  { %2269 = vmatprep.subr.bf16.mxu0 %v7300_v49  ;;  %2398 = vmatprep.subr.bf16.mxu1 %v7136_v21  ;;  %v5095_v21 = vcombine.low %v4925_v8, %v4925_v8 }
 0x2c5   :  { %2270 = vmatpush1.bf16.msra.mxu0 %v7308_v61  ;;  %2399 = vmatpush1.bf16.msra.mxu1 %v7146_v0  ;;  %v7346_v0 = vcombine.high %v4925_v8, %v4925_v8 }
 0x2c6   :  { %2271 = vmatprep.subr.bf16.mxu0 %v7315_v23  ;;  %5103 = vmatprep.subr.msk.bf16.mxu1 %vm1834_vm3, %v7152_v44  ;;  %v814_v44 = vadd.f32 %v6945_v54, %v6739_v56  ;;  %v7356_v56 = vsel %vm1834_vm3, %v5095_v21, 0 }
 0x2c9   :  { %2272 = vmatpush1.bf16.msra.mxu0 %v7322_v1  ;;  %2401 = vmatpush1.bf16.msra.mxu1 %v7162_v41  ;;  %v815_v41 = vmax.f32 %v814_v44, 0.0 }
 0x2ca   :  { %2273 = vmatprep.subr.bf16.mxu0 %v7330_v60  ;;  %2433 = vmatprep.subr.bf16.mxu1 %v7167_v33 }
 0x2cb   :  { %v7361_v8 = vpack.c.bf16 %v815_v41, %v815_v41 }
 0x2cc   :  { %5104 = vmatmul.mubr.msk.bf16.vlgmr.msra.gmra.mrb[56].mxu1 %vm1830_vm4, %v7275_v3 }
 0x2cd   :  { %2274 = vmatpush1.bf16.msra.mxu0 %v7340_v55  ;;  %2434 = vmatpush1.bf16.msra.mxu1 %v7175_v45  ;;  %8673 = vst [vmem:[#allocation31_spill] sm:$0xff] %v7361_v8 }
 0x2ce   :  { %5097 = vmatprep.subr.msk.bf16.mxu0 %vm1834_vm3, %v7346_v0  ;;  %2435 = vmatprep.subr.bf16.mxu1 %v7182_v35 }
 0x2cf   :  { %2465 = vmatprep.mubr.bf16.mxu1 %v8672_v19 }
 0x2d1   :  { %2276 = vmatpush1.bf16.msra.mxu0 %v7356_v56  ;;  %2436 = vmatpush1.bf16.msra.mxu1 %v7191_v5 }
 0x2d2   :  { %2437 = vmatprep.subr.bf16.mxu1 %v7198_v7  ;;  %2534 = vmatprep.subr.bf16.mxu0 %v6869_v9 }
 0x2d4   :  { %5098 = vmatmul.mubr.msk.bf16.vlgmr.msra.gmra.mrb[56].mxu0 %vm1830_vm4, %v7361_v8 }
 0x2d5   :  { %2438 = vmatpush1.bf16.msra.mxu1 %v7206_v10  ;;  %2535 = vmatpush1.bf16.msra.mxu0 %v6878_v15 }
 0x2d6   :  { %2439 = vmatprep.subr.bf16.mxu1 %v7213_v11  ;;  %2536 = vmatprep.subr.bf16.mxu0 %v6885_v17 }
 0x2d7   :  { %2566 = vmatprep.mubr.bf16.mxu0 %v8672_v19 }
 0x2d9   :  { %2440 = vmatpush1.bf16.msra.mxu1 %v7220_v59  ;;  %2537 = vmatpush1.bf16.msra.mxu0 %v6894_v57 }
 0x2da   :  { %2441 = vmatprep.subr.bf16.mxu1 %v7228_v53  ;;  %2538 = vmatprep.subr.bf16.mxu0 %v6901_v16 }
 0x2dd   :  { %2442 = vmatpush1.bf16.msra.mxu1 %v7238_v40  ;;  %2539 = vmatpush1.bf16.msra.mxu0 %v6911_v18 }
 0x2de   :  { %5105 = vmatprep.subr.msk.bf16.mxu1 %vm1834_vm3, %v7244_v13  ;;  %2540 = vmatprep.subr.bf16.mxu0 %v6918_v51 }
 0x2df   :  { %v1443_v21 = vpop.f32.mrb[40].mxu1  ;;  %v7381_v44 = vpop.f32.mrb[44].mxu0 }
 0x2e0   :  { %v1450_v41 = vmax.f32 %v7262_v26, %v1443_v21  ;;  %v1445_v59 = vpop.f32.mrb[41].mxu1  ;;  %v7384_v11 = vpop.f32.mrb[45].mxu0 }
 0x2e1   :  { %v1451_v53 = vmax.f32 %v7265_v28, %v1445_v59  ;;  %v1447_v10 = vpop.f32.mrb[42].mxu1  ;;  %2444 = vmatpush1.bf16.msra.mxu1 %v7254_v38  ;;  %2541 = vmatpush1.bf16.msra.mxu0 %v6925_v46  ;;  %v1503_v40 = vpop.f32.mrb[46].mxu0  ;;  %v920_v28 = vadd.f32 %v6945_v54, %v6792_v25  ;;  %v8675_v25 = vld [vmem:[#allocation19_spill] sm:$0xff]  ;;  %v8676_v59 = vld [vmem:[#allocation14_spill] sm:$0xff] }
 0x2e2   :  { %v1448_v7 = vpop.f32.mrb[43].mxu1  ;;  %2479 = vmatprep.subr.bf16.mxu1 %v7259_v47  ;;  %2542 = vmatprep.subr.bf16.mxu0 %v6932_v52  ;;  %v1504_v13 = vpop.f32.mrb[47].mxu0 }
 0x2e3   :  { %v7391_v5 = vmax.f32 %v1450_v41, %v1451_v53  ;;  %v921_v7 = vmax.f32 %v920_v28, 0.0  ;;  %v8677_v53 = vld [vmem:[#allocation15_spill] sm:$0xff] }
 0x2e4   :  { %5106 = vmatmul.mubr.msk.bf16.vlgmr.msra.gmra.mrb[56].mxu1 %vm1830_vm4, %v7361_v8 }
 0x2e5   :  { %8674 = vst [vmem:[#allocation32_spill] sm:$0xff] %v7391_v5  ;;  %2480 = vmatpush1.bf16.msra.mxu1 %v7273_v20  ;;  %2543 = vmatpush1.bf16.msra.mxu0 %v6953_v30  ;;  %v7425_v10 = vpack.c.bf16 %v921_v7, %v921_v7 }
 0x2e6   :  { %2481 = vmatprep.subr.bf16.mxu1 %v7282_v48  ;;  %5110 = vmatprep.subr.msk.bf16.mxu0 %vm1834_vm3, %v6959_v22 }
 0x2e7   :  { %2511 = vmatprep.mubr.bf16.mxu1 %v8672_v19 }
 0x2e9   :  { %2482 = vmatpush1.bf16.msra.mxu1 %v7293_v58  ;;  %2545 = vmatpush1.bf16.msra.mxu0 %v6969_v50 }
 0x2ea   :  { %2483 = vmatprep.subr.bf16.mxu1 %v7300_v49  ;;  %2575 = vmatprep.subr.bf16.mxu0 %v6974_v12 }
 0x2ec   :  { %5111 = vmatmul.mubr.msk.bf16.vlgmr.msra.gmra.mrb[60].mxu0 %vm1830_vm4, %v7275_v3 }
 0x2ed   :  { %2484 = vmatpush1.bf16.msra.mxu1 %v7308_v61  ;;  %2576 = vmatpush1.bf16.msra.mxu0 %v6981_v24 }
 0x2ee   :  { %2485 = vmatprep.subr.bf16.mxu1 %v7315_v23  ;;  %2577 = vmatprep.subr.bf16.mxu0 %v6990_v31 }
 0x2ef   :  { %2607 = vmatprep.mubr.bf16.mxu0 %v8672_v19 }
 0x2f1   :  { %2486 = vmatpush1.bf16.msra.mxu1 %v7322_v1  ;;  %2578 = vmatpush1.bf16.msra.mxu0 %v6999_v27 }
 0x2f2   :  { %2487 = vmatprep.subr.bf16.mxu1 %v7330_v60  ;;  %2579 = vmatprep.subr.bf16.mxu0 %v7006_v29 }
 0x2f5   :  { %2488 = vmatpush1.bf16.msra.mxu1 %v7340_v55  ;;  %2580 = vmatpush1.bf16.msra.mxu0 %v7014_v39 }
 0x2f6   :  { %5107 = vmatprep.subr.msk.bf16.mxu1 %vm1834_vm3, %v7346_v0  ;;  %2581 = vmatprep.subr.bf16.mxu0 %v7021_v42 }
 0x2f9   :  { %2490 = vmatpush1.bf16.msra.mxu1 %v7356_v56  ;;  %2582 = vmatpush1.bf16.msra.mxu0 %v7028_v43 }
 0x2fa   :  { %2583 = vmatprep.subr.bf16.mxu0 %v7035_v32  ;;  %2748 = vmatprep.subr.bf16.mxu1 %v6869_v9 }
 0x2fc   :  { %5108 = vmatmul.mubr.msk.bf16.vlgmr.msra.gmra.mrb[56].mxu1 %vm1830_vm4, %v7425_v10 }
 0x2fd   :  { %2584 = vmatpush1.bf16.msra.mxu0 %v7047_v2  ;;  %2749 = vmatpush1.bf16.msra.mxu1 %v6878_v15 }
 0x2fe   :  { %5112 = vmatprep.subr.msk.bf16.mxu0 %vm1834_vm3, %v7053_v34  ;;  %2750 = vmatprep.subr.bf16.mxu1 %v6885_v17 }
 0x2ff   :  { %2780 = vmatprep.mubr.bf16.mxu1 %v8672_v19 }
 0x301   :  { %2586 = vmatpush1.bf16.msra.mxu0 %v7061_v37  ;;  %2751 = vmatpush1.bf16.msra.mxu1 %v6894_v57 }
 0x302   :  { %2616 = vmatprep.subr.bf16.mxu0 %v7066_v36  ;;  %2752 = vmatprep.subr.bf16.mxu1 %v6901_v16 }
 0x304   :  { %5113 = vmatmul.mubr.msk.bf16.vlgmr.msra.gmra.mrb[60].mxu0 %vm1830_vm4, %v8675_v25 }
 0x305   :  { %2617 = vmatpush1.bf16.msra.mxu0 %v8676_v59  ;;  %2753 = vmatpush1.bf16.msra.mxu1 %v6911_v18 }
 0x306   :  { %2618 = vmatprep.subr.bf16.mxu0 %v8677_v53  ;;  %2754 = vmatprep.subr.bf16.mxu1 %v6918_v51 }
 0x307   :  { %v1549_v40 = vpop.f32.mrb[44].mxu1  ;;  %2648 = vmatprep.mubr.bf16.mxu0 %v8672_v19  ;;  %v7448_v13 = vpop.f32.mrb[48].mxu0 }
 0x308   :  { %v1556_v26 = vmax.f32 %v7381_v44, %v1549_v40  ;;  %v1551_v21 = vpop.f32.mrb[45].mxu1  ;;  %v7451_v41 = vpop.f32.mrb[49].mxu0  ;;  %v8682_v44 = vld [vmem:[#allocation21_spill] sm:$0xff]  ;;  %v8683_v40 = vld [vmem:[#allocation22_spill] sm:$0xff] }
 0x309   :  { %v1557_v28 = vmax.f32 %v7384_v11, %v1551_v21  ;;  %v1553_v7 = vpop.f32.mrb[46].mxu1  ;;  %2619 = vmatpush1.bf16.msra.mxu0 %v7089_v6  ;;  %2755 = vmatpush1.bf16.msra.mxu1 %v6925_v46  ;;  %v1610_v25 = vpop.f32.mrb[50].mxu0  ;;  %v8681_v11 = vld [vmem:[#allocation20_spill] sm:$0xff] }
 0x30a   :  { %v1554_v5 = vpop.f32.mrb[47].mxu1  ;;  %2620 = vmatprep.subr.bf16.mxu0 %v7096_v62  ;;  %2756 = vmatprep.subr.bf16.mxu1 %v6932_v52  ;;  %v1611_v51 = vpop.f32.mrb[51].mxu0  ;;  %v8685_v21 = vld [vmem:[#allocation24_spill] sm:$0xff]  ;;  %v8687_v7 = vld [vmem:[#allocation26_spill] sm:$0xff]  ;;  %v8688_v25 = vld [vmem:[#allocation27_spill] sm:$0xff] }
 0x30b   :  { %v7458_v18 = vmax.f32 %v1556_v26, %v1557_v28  ;;  %v8679_v5 = vld [vmem:[#allocation17_spill] sm:$0xff]  ;;  %v8680_v51 = vld [vmem:[#allocation18_spill] sm:$0xff]  ;;  %v8684_v26 = vld [vmem:[#allocation23_spill] sm:$0xff] }
 0x30c   :  { %v8686_v28 = vld [vmem:[#allocation25_spill] sm:$0xff] }
 0x30d   :  { %8678 = vst [vmem:[#allocation19_spill] sm:$0xff] %v7458_v18  ;;  %2621 = vmatpush1.bf16.msra.mxu0 %v7110_v63  ;;  %2757 = vmatpush1.bf16.msra.mxu1 %v6953_v30  ;;  %v8689_v18 = vld [vmem:[#allocation28_spill] sm:$0xff] }
 0x30e   :  { %2622 = vmatprep.subr.bf16.mxu0 %v7119_v4  ;;  %5120 = vmatprep.subr.msk.bf16.mxu1 %vm1834_vm3, %v6959_v22 }
 0x311   :  { %2623 = vmatpush1.bf16.msra.mxu0 %v7128_v14  ;;  %2759 = vmatpush1.bf16.msra.mxu1 %v6969_v50 }
 0x312   :  { %2624 = vmatprep.subr.bf16.mxu0 %v8679_v5  ;;  %2789 = vmatprep.subr.bf16.mxu1 %v6974_v12 }
 0x314   :  { %5121 = vmatmul.mubr.msk.bf16.vlgmr.msra.gmra.mrb[60].mxu1 %vm1830_vm4, %v7361_v8 }
 0x315   :  { %2625 = vmatpush1.bf16.msra.mxu0 %v8680_v51  ;;  %2790 = vmatpush1.bf16.msra.mxu1 %v6981_v24 }
 0x316   :  { %5114 = vmatprep.subr.msk.bf16.mxu0 %vm1834_vm3, %v8681_v11  ;;  %2791 = vmatprep.subr.bf16.mxu1 %v6990_v31 }
 0x317   :  { %2821 = vmatprep.mubr.bf16.mxu1 %v8672_v19 }
 0x319   :  { %2627 = vmatpush1.bf16.msra.mxu0 %v8682_v44  ;;  %2792 = vmatpush1.bf16.msra.mxu1 %v6999_v27 }
 0x31a   :  { %2659 = vmatprep.subr.bf16.mxu0 %v7167_v33  ;;  %2793 = vmatprep.subr.bf16.mxu1 %v7006_v29 }
 0x31c   :  { %5115 = vmatmul.mubr.msk.bf16.vlgmr.msra.gmra.mrb[60].mxu0 %vm1830_vm4, %v7361_v8  ;;  %v8690_v8 = vld [vmem:[#allocation29_spill] sm:$0xff] }
 0x31d   :  { %2660 = vmatpush1.bf16.msra.mxu0 %v7175_v45  ;;  %2794 = vmatpush1.bf16.msra.mxu1 %v7014_v39 }
 0x31e   :  { %2661 = vmatprep.subr.bf16.mxu0 %v7182_v35  ;;  %2795 = vmatprep.subr.bf16.mxu1 %v7021_v42 }
 0x31f   :  { %2691 = vmatprep.mubr.bf16.mxu0 %v8672_v19 }
 0x321   :  { %2662 = vmatpush1.bf16.msra.mxu0 %v8683_v40  ;;  %2796 = vmatpush1.bf16.msra.mxu1 %v7028_v43 }
 0x322   :  { %2663 = vmatprep.subr.bf16.mxu0 %v8684_v26  ;;  %2797 = vmatprep.subr.bf16.mxu1 %v7035_v32 }
 0x325   :  { %2664 = vmatpush1.bf16.msra.mxu0 %v8685_v21  ;;  %2798 = vmatpush1.bf16.msra.mxu1 %v7047_v2 }
 0x326   :  { %2665 = vmatprep.subr.bf16.mxu0 %v8686_v28  ;;  %5122 = vmatprep.subr.msk.bf16.mxu1 %vm1834_vm3, %v7053_v34 }
 0x329   :  { %2666 = vmatpush1.bf16.msra.mxu0 %v8687_v7  ;;  %2800 = vmatpush1.bf16.msra.mxu1 %v7061_v37 }
 0x32a   :  { %2667 = vmatprep.subr.bf16.mxu0 %v8688_v25  ;;  %2830 = vmatprep.subr.bf16.mxu1 %v7066_v36 }
 0x32c   :  { %5123 = vmatmul.mubr.msk.bf16.vlgmr.msra.gmra.mrb[60].mxu1 %vm1830_vm4, %v7275_v3 }
 0x32d   :  { %2668 = vmatpush1.bf16.msra.mxu0 %v8689_v18  ;;  %2831 = vmatpush1.bf16.msra.mxu1 %v8676_v59 }
 0x32e   :  { %5116 = vmatprep.subr.msk.bf16.mxu0 %vm1834_vm3, %v8690_v8  ;;  %2832 = vmatprep.subr.bf16.mxu1 %v8677_v53 }
 0x32f   :  { %v1656_v34 = vpop.f32.mrb[48].mxu1  ;;  %2862 = vmatprep.mubr.bf16.mxu1 %v8672_v19  ;;  %v7509_v37 = vpop.f32.mrb[52].mxu0 }
 0x330   :  { %v1663_v2 = vmax.f32 %v7448_v13, %v1656_v34  ;;  %v1658_v36 = vpop.f32.mrb[49].mxu1  ;;  %v7512_v32 = vpop.f32.mrb[53].mxu0 }
 0x331   :  { %v1664_v3 = vmax.f32 %v7451_v41, %v1658_v36  ;;  %v1660_v43 = vpop.f32.mrb[50].mxu1  ;;  %2670 = vmatpush1.bf16.msra.mxu0 %v7254_v38  ;;  %2833 = vmatpush1.bf16.msra.mxu1 %v7089_v6  ;;  %v1716_v59 = vpop.f32.mrb[54].mxu0  ;;  %v8693_v36 = vld [vmem:[#allocation3_spill] sm:$0xff] }
 0x332   :  { %v1661_v42 = vpop.f32.mrb[51].mxu1  ;;  %2705 = vmatprep.subr.bf16.mxu0 %v7259_v47  ;;  %2834 = vmatprep.subr.bf16.mxu1 %v7096_v62  ;;  %v1717_v53 = vpop.f32.mrb[55].mxu0  ;;  %v8694_v59 = vld [vmem:[#allocation4_spill] sm:$0xff] }
 0x333   :  { %v7519_v39 = vmax.f32 %v1663_v2, %v1664_v3  ;;  %v8692_v42 = vld [vmem:[#allocation2_spill] sm:$0xff] }
 0x334   :  { %5117 = vmatmul.mubr.msk.bf16.vlgmr.msra.gmra.mrb[60].mxu0 %vm1830_vm4, %v7425_v10  ;;  %v1027_v43 = vadd.f32 %v6945_v54, %v8692_v42 }
 0x335   :  { %8691 = vst [vmem:[#allocation17_spill] sm:$0xff] %v7519_v39  ;;  %2706 = vmatpush1.bf16.msra.mxu0 %v7273_v20  ;;  %2835 = vmatpush1.bf16.msra.mxu1 %v7110_v63 }
 0x336   :  { %2707 = vmatprep.subr.bf16.mxu0 %v7282_v48  ;;  %2836 = vmatprep.subr.bf16.mxu1 %v7119_v4  ;;  %v1028_v2 = vmax.f32 %v1027_v43, 0.0 }
 0x337   :  { %2737 = vmatprep.mubr.bf16.mxu0 %v8672_v19 }
 0x338   :  { %v7553_v34 = vpack.c.bf16 %v1028_v2, %v1028_v2 }
 0x339   :  { %2708 = vmatpush1.bf16.msra.mxu0 %v7293_v58  ;;  %2837 = vmatpush1.bf16.msra.mxu1 %v7128_v14 }
 0x33a   :  { %2709 = vmatprep.subr.bf16.mxu0 %v7300_v49  ;;  %2838 = vmatprep.subr.bf16.mxu1 %v8679_v5 }
 0x33d   :  { %2710 = vmatpush1.bf16.msra.mxu0 %v7308_v61  ;;  %2839 = vmatpush1.bf16.msra.mxu1 %v8680_v51 }
 0x33e   :  { %2711 = vmatprep.subr.bf16.mxu0 %v7315_v23  ;;  %5124 = vmatprep.subr.msk.bf16.mxu1 %vm1834_vm3, %v8681_v11 }
 0x341   :  { %2712 = vmatpush1.bf16.msra.mxu0 %v7322_v1  ;;  %2841 = vmatpush1.bf16.msra.mxu1 %v8682_v44 }
 0x342   :  { %2713 = vmatprep.subr.bf16.mxu0 %v7330_v60  ;;  %2873 = vmatprep.subr.bf16.mxu1 %v7167_v33 }
 0x344   :  { %5125 = vmatmul.mubr.msk.bf16.vlgmr.msra.gmra.mrb[60].mxu1 %vm1830_vm4, %v7425_v10 }
 0x345   :  { %2714 = vmatpush1.bf16.msra.mxu0 %v7340_v55  ;;  %2874 = vmatpush1.bf16.msra.mxu1 %v7175_v45 }
 0x346   :  { %5118 = vmatprep.subr.msk.bf16.mxu0 %vm1834_vm3, %v7346_v0  ;;  %2875 = vmatprep.subr.bf16.mxu1 %v7182_v35 }
 0x347   :  { %2905 = vmatprep.mubr.bf16.mxu1 %v8672_v19 }
 0x349   :  { %2716 = vmatpush1.bf16.msra.mxu0 %v7356_v56  ;;  %2876 = vmatpush1.bf16.msra.mxu1 %v8683_v40 }
 0x34a   :  { %2877 = vmatprep.subr.bf16.mxu1 %v8684_v26  ;;  %2968 = vmatprep.subr.bf16.mxu0 %v6869_v9 }
 0x34c   :  { %5119 = vmatmul.mubr.msk.bf16.vlgmr.msra.gmra.mrb[60].mxu0 %vm1830_vm4, %v7553_v34 }
 0x34d   :  { %2878 = vmatpush1.bf16.msra.mxu1 %v8685_v21  ;;  %2969 = vmatpush1.bf16.msra.mxu0 %v6878_v15 }
 0x34e   :  { %2879 = vmatprep.subr.bf16.mxu1 %v8686_v28  ;;  %2970 = vmatprep.subr.bf16.mxu0 %v6885_v17 }
 0x34f   :  { %3000 = vmatprep.mubr.bf16.mxu0 %v8672_v19 }
 0x351   :  { %2880 = vmatpush1.bf16.msra.mxu1 %v8687_v7  ;;  %2971 = vmatpush1.bf16.msra.mxu0 %v6894_v57 }
 0x352   :  { %2881 = vmatprep.subr.bf16.mxu1 %v8688_v25  ;;  %2972 = vmatprep.subr.bf16.mxu0 %v6901_v16 }
 0x355   :  { %2882 = vmatpush1.bf16.msra.mxu1 %v8689_v18  ;;  %2973 = vmatpush1.bf16.msra.mxu0 %v8693_v36 }
 0x356   :  { %5126 = vmatprep.subr.msk.bf16.mxu1 %vm1834_vm3, %v8690_v8  ;;  %2974 = vmatprep.subr.bf16.mxu0 %v8694_v59 }
 0x357   :  { %v1762_v53 = vpop.f32.mrb[52].mxu1 }
 0x358   :  { %v1769_v13 = vmax.f32 %v7509_v37, %v1762_v53  ;;  %v1764_v41 = vpop.f32.mrb[53].mxu1  ;;  %v8697_v53 = vld [vmem:[#allocation6_spill] sm:$0xff] }
 0x359   :  { %v1770_v3 = vmax.f32 %v7512_v32, %v1764_v41  ;;  %v1766_v42 = vpop.f32.mrb[54].mxu1  ;;  %2884 = vmatpush1.bf16.msra.mxu1 %v7254_v38  ;;  %2975 = vmatpush1.bf16.msra.mxu0 %v6925_v46  ;;  %v8696_v32 = vld [vmem:[#allocation5_spill] sm:$0xff]  ;;  %v8698_v41 = vld [vmem:[#allocation7_spill] sm:$0xff] }
 0x35a   :  { %v1767_v43 = vpop.f32.mrb[55].mxu1  ;;  %2919 = vmatprep.subr.bf16.mxu1 %v7259_v47  ;;  %2976 = vmatprep.subr.bf16.mxu0 %v6932_v52  ;;  %v1133_v37 = vadd.f32 %v6945_v54, %v8696_v32  ;;  %v8700_v54 = vld [vmem:[#allocation9_spill] sm:$0xff]  ;;  %v8702_v32 = vld [vmem:[#allocation11_spill] sm:$0xff] }
 0x35b   :  { %v7579_v2 = vmax.f32 %v1769_v13, %v1770_v3  ;;  %v8699_v3 = vld [vmem:[#allocation8_spill] sm:$0xff]  ;;  %v8701_v43 = vld [vmem:[#allocation10_spill] sm:$0xff] }
 0x35c   :  { %5127 = vmatmul.mubr.msk.bf16.vlgmr.msra.gmra.mrb[60].mxu1 %vm1830_vm4, %v7553_v34  ;;  %v1134_v13 = vmax.f32 %v1133_v37, 0.0  ;;  %v8703_v37 = vld [vmem:[#allocation12_spill] sm:$0xff] }
 0x35d   :  { %8695 = vst [vmem:[#allocation18_spill] sm:$0xff] %v7579_v2  ;;  %2920 = vmatpush1.bf16.msra.mxu1 %v7273_v20  ;;  %2977 = vmatpush1.bf16.msra.mxu0 %v6953_v30  ;;  %v8706_v2 = vld [vmem:[#allocation14_spill] sm:$0xff] }
 0x35e   :  { %2921 = vmatprep.subr.bf16.mxu1 %v7282_v48  ;;  %5130 = vmatprep.subr.msk.bf16.mxu0 %vm1834_vm3, %v6959_v22  ;;  %v7613_v42 = vpack.c.bf16 %v1134_v13, %v1134_v13  ;;  %v8704_v13 = vld [vmem:[#allocation13_spill] sm:$0xff] }
 0x35f   :  { %2951 = vmatprep.mubr.bf16.mxu1 %v8672_v19 }
 0x361   :  { %2922 = vmatpush1.bf16.msra.mxu1 %v7293_v58  ;;  %2979 = vmatpush1.bf16.msra.mxu0 %v6969_v50 }
 0x362   :  { %2923 = vmatprep.subr.bf16.mxu1 %v7300_v49  ;;  %3009 = vmatprep.subr.bf16.mxu0 %v6974_v12 }
 0x364   :  { %5131 = vmatmul.mubr.msk.bf16.vlgmr.msra.gmra.mrb[64].mxu0 %vm1830_vm4, %v7425_v10 }
 0x365   :  { %2924 = vmatpush1.bf16.msra.mxu1 %v7308_v61  ;;  %3010 = vmatpush1.bf16.msra.mxu0 %v6981_v24 }
 0x366   :  { %2925 = vmatprep.subr.bf16.mxu1 %v7315_v23  ;;  %3011 = vmatprep.subr.bf16.mxu0 %v6990_v31 }
 0x367   :  { %3041 = vmatprep.mubr.bf16.mxu0 %v8672_v19 }
 0x369   :  { %2926 = vmatpush1.bf16.msra.mxu1 %v7322_v1  ;;  %3012 = vmatpush1.bf16.msra.mxu0 %v6999_v27 }
 0x36a   :  { %2927 = vmatprep.subr.bf16.mxu1 %v7330_v60  ;;  %3013 = vmatprep.subr.bf16.mxu0 %v7006_v29 }
 0x36d   :  { %2928 = vmatpush1.bf16.msra.mxu1 %v7340_v55  ;;  %3014 = vmatpush1.bf16.msra.mxu0 %v8697_v53 }
 0x36e   :  { %5128 = vmatprep.subr.msk.bf16.mxu1 %vm1834_vm3, %v7346_v0  ;;  %3015 = vmatprep.subr.bf16.mxu0 %v8698_v41 }
 0x371   :  { %2930 = vmatpush1.bf16.msra.mxu1 %v7356_v56  ;;  %3016 = vmatpush1.bf16.msra.mxu0 %v8699_v3 }
 0x372   :  { %3017 = vmatprep.subr.bf16.mxu0 %v8700_v54  ;;  %3182 = vmatprep.subr.bf16.mxu1 %v6869_v9  ;;  %v8705_v9 = vld [vmem:[#allocation31_spill] sm:$0xff] }
 0x374   :  { %5129 = vmatmul.mubr.msk.bf16.vlgmr.msra.gmra.mrb[60].mxu1 %vm1830_vm4, %v7613_v42 }
 0x375   :  { %3018 = vmatpush1.bf16.msra.mxu0 %v8701_v43  ;;  %3183 = vmatpush1.bf16.msra.mxu1 %v6878_v15  ;;  %v8707_v15 = vld [vmem:[#allocation15_spill] sm:$0xff] }
 0x376   :  { %5132 = vmatprep.subr.msk.bf16.mxu0 %vm1834_vm3, %v8702_v32  ;;  %3184 = vmatprep.subr.bf16.mxu1 %v6885_v17 }
 0x377   :  { %3214 = vmatprep.mubr.bf16.mxu1 %v8672_v19 }
 0x379   :  { %3020 = vmatpush1.bf16.msra.mxu0 %v8703_v37  ;;  %3185 = vmatpush1.bf16.msra.mxu1 %v6894_v57 }
 0x37a   :  { %3050 = vmatprep.subr.bf16.mxu0 %v8704_v13  ;;  %3186 = vmatprep.subr.bf16.mxu1 %v6901_v16 }
 0x37c   :  { %5133 = vmatmul.mubr.msk.bf16.vlgmr.msra.gmra.mrb[64].mxu0 %vm1830_vm4, %v8705_v9  ;;  %v7911_v9 = vld [vmem:[%s8572_s3 + $0xb4] ss:$8 sps:$4 sm:$0xff]  }
 0x37d   :  { %3051 = vmatpush1.bf16.msra.mxu0 %v8706_v2  ;;  %3187 = vmatpush1.bf16.msra.mxu1 %v8693_v36  ;;  %8712 = vst [vmem:[#allocation22_spill] sm:$0xff] %v7911_v9 }
 0x37e   :  { %3052 = vmatprep.subr.bf16.mxu0 %v8707_v15  ;;  %3188 = vmatprep.subr.bf16.mxu1 %v8694_v59  ;;  %v7859_v59 = vld [vmem:[%s8572_s3 + $0x24] ss:$8 sps:$4 sm:$0xff]  }
 0x37f   :  { %3082 = vmatprep.mubr.bf16.mxu0 %v8672_v19 }
 0x381   :  { %3053 = vmatpush1.bf16.msra.mxu0 %v7089_v6  ;;  %3189 = vmatpush1.bf16.msra.mxu1 %v6925_v46 }
 0x382   :  { %3054 = vmatprep.subr.bf16.mxu0 %v7096_v62  ;;  %3190 = vmatprep.subr.bf16.mxu1 %v6932_v52  ;;  %v7718_v52 = vld [vmem:[%s8573_s2] ss:$0 sm:$0xff] }
 0x385   :  { %3055 = vmatpush1.bf16.msra.mxu0 %v7110_v63  ;;  %3191 = vmatpush1.bf16.msra.mxu1 %v6953_v30  ;;  %v8708_v30 = vld [vmem:[#allocation16_spill] sm:$0xff] }
 0x386   :  { %3056 = vmatprep.subr.bf16.mxu0 %v7119_v4  ;;  %5140 = vmatprep.subr.msk.bf16.mxu1 %vm1834_vm3, %v6959_v22 }
 0x389   :  { %3057 = vmatpush1.bf16.msra.mxu0 %v7128_v14  ;;  %3193 = vmatpush1.bf16.msra.mxu1 %v6969_v50 }
 0x38a   :  { %3058 = vmatprep.subr.bf16.mxu0 %v8679_v5  ;;  %3223 = vmatprep.subr.bf16.mxu1 %v6974_v12  ;;  %v1240_v12 = vadd.f32 %v7718_v52, %v8708_v30  ;;  %v7964_v30 = vld [vmem:[%s8572_s3 + $0xe0] ss:$8 sps:$4 sm:$0xff]  }
 0x38c   :  { %5141 = vmatmul.mubr.msk.bf16.vlgmr.msra.gmra.mrb[64].mxu1 %vm1830_vm4, %v7553_v34 }
 0x38d   :  { %3059 = vmatpush1.bf16.msra.mxu0 %v8680_v51  ;;  %3224 = vmatpush1.bf16.msra.mxu1 %v6981_v24  ;;  %v1241_v24 = vmax.f32 %v1240_v12, 0.0  ;;  %v7971_v12 = vld [vmem:[%s8572_s3 + $0xf4] ss:$8 sps:$4 sm:$0xff]  }
 0x38e   :  { %5134 = vmatprep.subr.msk.bf16.mxu0 %vm1834_vm3, %v8681_v11  ;;  %3225 = vmatprep.subr.bf16.mxu1 %v6990_v31 }
 0x38f   :  { %3255 = vmatprep.mubr.bf16.mxu1 %v8672_v19  ;;  %v7734_v31 = vpack.c.bf16 %v1241_v24, %v1241_v24  ;;  %v7980_v24 = vld [vmem:[%s8572_s3 + $0xf0] ss:$8 sps:$4 sm:$0xff]  }
 0x391   :  { %3061 = vmatpush1.bf16.msra.mxu0 %v8682_v44  ;;  %3226 = vmatpush1.bf16.msra.mxu1 %v6999_v27  ;;  %8709 = vst [vmem:[#allocation20_spill] sm:$0xff] %v7734_v31  ;;  %v7740_v27 = vld [vmem:[%s8572_s3 + $0x5c] ss:$8 sps:$4 sm:$0xff]  }
 0x392   :  { %3093 = vmatprep.subr.bf16.mxu0 %v7167_v33  ;;  %3227 = vmatprep.subr.bf16.mxu1 %v7006_v29  ;;  %v7749_v29 = vld [vmem:[%s8572_s3 + $0x58] ss:$8 sps:$4 sm:$0xff]  }
 0x394   :  { %5135 = vmatmul.mubr.msk.bf16.vlgmr.msra.gmra.mrb[64].mxu0 %vm1830_vm4, %v7553_v34 }
 0x395   :  { %3094 = vmatpush1.bf16.msra.mxu0 %v7175_v45  ;;  %3228 = vmatpush1.bf16.msra.mxu1 %v8697_v53 }
 0x396   :  { %3095 = vmatprep.subr.bf16.mxu0 %v7182_v35  ;;  %3229 = vmatprep.subr.bf16.mxu1 %v8698_v41  ;;  %v7874_v41 = vld [vmem:[%s8572_s3 + $0x34] ss:$8 sps:$4 sm:$0xff]  }
 0x397   :  { %3125 = vmatprep.mubr.bf16.mxu0 %v8672_v19 }
 0x399   :  { %3096 = vmatpush1.bf16.msra.mxu0 %v8683_v40  ;;  %3230 = vmatpush1.bf16.msra.mxu1 %v8699_v3  ;;  %v7881_v3 = vld [vmem:[%s8572_s3 + $0x30] ss:$8 sps:$4 sm:$0xff]  }
 0x39a   :  { %3097 = vmatprep.subr.bf16.mxu0 %v8684_v26  ;;  %3231 = vmatprep.subr.bf16.mxu1 %v8700_v54 }
 0x39d   :  { %3098 = vmatpush1.bf16.msra.mxu0 %v8685_v21  ;;  %3232 = vmatpush1.bf16.msra.mxu1 %v8701_v43  ;;  %v7889_v43 = vld [vmem:[%s8572_s3 + $0x44] ss:$8 sps:$4 sm:$0xff]  }
 0x39e   :  { %3099 = vmatprep.subr.bf16.mxu0 %v8686_v28  ;;  %5142 = vmatprep.subr.msk.bf16.mxu1 %vm1834_vm3, %v8702_v32 }
 0x3a1   :  { %3100 = vmatpush1.bf16.msra.mxu0 %v8687_v7  ;;  %3234 = vmatpush1.bf16.msra.mxu1 %v8703_v37 }
 0x3a2   :  { %3101 = vmatprep.subr.bf16.mxu0 %v8688_v25  ;;  %3264 = vmatprep.subr.bf16.mxu1 %v8704_v13  ;;  %v7898_v13 = vld [vmem:[%s8572_s3 + $0x40] ss:$8 sps:$4 sm:$0xff]  }
 0x3a4   :  { %5143 = vmatmul.mubr.msk.bf16.vlgmr.msra.gmra.mrb[64].mxu1 %vm1830_vm4, %v7425_v10 }
 0x3a5   :  { %3102 = vmatpush1.bf16.msra.mxu0 %v8689_v18  ;;  %3265 = vmatpush1.bf16.msra.mxu1 %v8706_v2  ;;  %v7866_v2 = vld [vmem:[%s8572_s3 + $0x20] ss:$8 sps:$4 sm:$0xff]  }
 0x3a6   :  { %5136 = vmatprep.subr.msk.bf16.mxu0 %vm1834_vm3, %v8690_v8  ;;  %3266 = vmatprep.subr.bf16.mxu1 %v8707_v15  ;;  %v7920_v15 = vld [vmem:[%s8572_s3 + $0xb0] ss:$8 sps:$4 sm:$0xff]  }
 0x3a7   :  { %v7688_v17 = vpop.f32.mrb[56].mxu0  ;;  %3296 = vmatprep.mubr.bf16.mxu1 %v8672_v19  ;;  %8713 = vst [vmem:[#allocation23_spill] sm:$0xff] %v7920_v15 }
 0x3a8   :  { %v7691_v57 = vpop.f32.mrb[57].mxu0 }
 0x3a9   :  { %v2303_v16 = vpop.f32.mrb[58].mxu0  ;;  %3104 = vmatpush1.bf16.msra.mxu0 %v7254_v38  ;;  %3267 = vmatpush1.bf16.msra.mxu1 %v7089_v6  ;;  %v7756_v6 = vld [vmem:[%s8572_s3 + $0x6c] ss:$8 sps:$4 sm:$0xff]  }
 0x3aa   :  { %v2304_v46 = vpop.f32.mrb[59].mxu0  ;;  %3139 = vmatprep.subr.bf16.mxu0 %v7259_v47  ;;  %3268 = vmatprep.subr.bf16.mxu1 %v7096_v62  ;;  %v7764_v62 = vld [vmem:[%s8572_s3 + $0x68] ss:$8 sps:$4 sm:$0xff]  }
 0x3ab   :  { %v7949_v16 = vld [vmem:[%s8572_s3 + $0xd0] ss:$8 sps:$4 sm:$0xff]   ;;  %v7956_v46 = vld [vmem:[%s8572_s3 + $0xe4] ss:$8 sps:$4 sm:$0xff]  }
 0x3ac   :  { %5137 = vmatmul.mubr.msk.bf16.vlgmr.msra.gmra.mrb[64].mxu0 %vm1830_vm4, %v7613_v42 }
 0x3ad   :  { %3140 = vmatpush1.bf16.msra.mxu0 %v7273_v20  ;;  %3269 = vmatpush1.bf16.msra.mxu1 %v7110_v63  ;;  %v7771_v63 = vld [vmem:[%s8572_s3 + $0x7c] ss:$8 sps:$4 sm:$0xff]  }
 0x3ae   :  { %3141 = vmatprep.subr.bf16.mxu0 %v7282_v48  ;;  %3270 = vmatprep.subr.bf16.mxu1 %v7119_v4  ;;  %v7778_v4 = vld [vmem:[%s8572_s3 + $0x78] ss:$8 sps:$4 sm:$0xff]  }
 0x3af   :  { %3171 = vmatprep.mubr.bf16.mxu0 %v8672_v19 }
 0x3b1   :  { %3142 = vmatpush1.bf16.msra.mxu0 %v7293_v58  ;;  %3271 = vmatpush1.bf16.msra.mxu1 %v7128_v14  ;;  %v7786_v14 = vld [vmem:[%s8572_s3 + $0x8c] ss:$8 sps:$4 sm:$0xff]  }
 0x3b2   :  { %3143 = vmatprep.subr.bf16.mxu0 %v7300_v49  ;;  %3272 = vmatprep.subr.bf16.mxu1 %v8679_v5  ;;  %v7795_v5 = vld [vmem:[%s8572_s3 + $0x88] ss:$8 sps:$4 sm:$0xff]  }
 0x3b5   :  { %3144 = vmatpush1.bf16.msra.mxu0 %v7308_v61  ;;  %3273 = vmatpush1.bf16.msra.mxu1 %v8680_v51 }
 0x3b6   :  { %3145 = vmatprep.subr.bf16.mxu0 %v7315_v23  ;;  %5144 = vmatprep.subr.msk.bf16.mxu1 %vm1834_vm3, %v8681_v11 }
 0x3b9   :  { %3146 = vmatpush1.bf16.msra.mxu0 %v7322_v1  ;;  %3275 = vmatpush1.bf16.msra.mxu1 %v8682_v44 }
 0x3ba   :  { %3147 = vmatprep.subr.bf16.mxu0 %v7330_v60  ;;  %3307 = vmatprep.subr.bf16.mxu1 %v7167_v33 }
 0x3bc   :  { %5145 = vmatmul.mubr.msk.bf16.vlgmr.msra.gmra.mrb[64].mxu1 %vm1830_vm4, %v7613_v42 }
 0x3bd   :  { %3148 = vmatpush1.bf16.msra.mxu0 %v7340_v55  ;;  %3308 = vmatpush1.bf16.msra.mxu1 %v7175_v45 }
 0x3be   :  { %5138 = vmatprep.subr.msk.bf16.mxu0 %vm1834_vm3, %v7346_v0  ;;  %3309 = vmatprep.subr.bf16.mxu1 %v7182_v35 }
 0x3bf   :  { %3339 = vmatprep.mubr.bf16.mxu1 %v8672_v19 }
 0x3c1   :  { %3150 = vmatpush1.bf16.msra.mxu0 %v7356_v56  ;;  %3310 = vmatpush1.bf16.msra.mxu1 %v8683_v40  ;;  %v7802_v40 = vld [vmem:[%s8572_s3 + $0x9c] ss:$8 sps:$4 sm:$0xff]  }
 0x3c2   :  { %3311 = vmatprep.subr.bf16.mxu1 %v8684_v26  ;;  %3402 = vmatprep.subr.bf16.mxu0 %v7740_v27 }
 0x3c4   :  { %5139 = vmatmul.mubr.msk.bf16.vlgmr.msra.gmra.mrb[64].mxu0 %vm1830_vm4, %v7734_v31 }
 0x3c5   :  { %3312 = vmatpush1.bf16.msra.mxu1 %v8685_v21  ;;  %3403 = vmatpush1.bf16.msra.mxu0 %v7749_v29  ;;  %v7813_v21 = vld [vmem:[%s8572_s3 + $0x98] ss:$8 sps:$4 sm:$0xff]  }
 0x3c6   :  { %3313 = vmatprep.subr.bf16.mxu1 %v8686_v28  ;;  %3404 = vmatprep.subr.bf16.mxu0 %v7756_v6  ;;  %v7842_v28 = vld [vmem:[%s8572_s3 + $0x14] ss:$8 sps:$4 sm:$0xff]  }
 0x3c7   :  { %3434 = vmatprep.mubr.bf16.mxu0 %v8672_v19 }
 0x3c9   :  { %3314 = vmatpush1.bf16.msra.mxu1 %v8687_v7  ;;  %3405 = vmatpush1.bf16.msra.mxu0 %v7764_v62  ;;  %v7850_v7 = vld [vmem:[%s8572_s3 + $0x10] ss:$8 sps:$4 sm:$0xff]  }
 0x3ca   :  { %3315 = vmatprep.subr.bf16.mxu1 %v8688_v25  ;;  %3406 = vmatprep.subr.bf16.mxu0 %v7771_v63  ;;  %v8711_v25 = vld [vmem:[#allocation30_spill] sm:$0xff] }
 0x3cb   :  { %v1346_v36 = vadd.f32 %v7718_v52, %v8711_v25  ;;  %v8038_v25 = vld [vmem:[%s8572_s3 + $0x13c] ss:$8 sps:$4 sm:$0xff]  }
 0x3cd   :  { %3316 = vmatpush1.bf16.msra.mxu1 %v8689_v18  ;;  %3407 = vmatpush1.bf16.msra.mxu0 %v7778_v4  ;;  %v1347_v53 = vmax.f32 %v1346_v36, 0.0  ;;  %v8046_v36 = vld [vmem:[%s8572_s3 + $0x138] ss:$8 sps:$4 sm:$0xff]  }
 0x3ce   :  { %5146 = vmatprep.subr.msk.bf16.mxu1 %vm1834_vm3, %v8690_v8  ;;  %3408 = vmatprep.subr.bf16.mxu0 %v7786_v14 }
 0x3cf   :  { %v2513_v33 = vpop.f32.mrb[56].mxu1  ;;  %v7884_v54 = vpack.c.bf16 %v1347_v53, %v1347_v53  ;;  %v8053_v53 = vld [vmem:[%s8572_s3 + $0x14c] ss:$8 sps:$4 sm:$0xff]  }
 0x3d0   :  { %v2522_v18 = vmax.f32 %v7688_v17, %v2513_v33  ;;  %v2515_v45 = vpop.f32.mrb[57].mxu1  ;;  %v7927_v17 = vld [vmem:[%s8572_s3 + $0xc4] ss:$8 sps:$4 sm:$0xff]  }
 0x3d1   :  { %v2523_v35 = vmax.f32 %v7691_v57, %v2515_v45  ;;  %v2517_v10 = vpop.f32.mrb[58].mxu1  ;;  %3318 = vmatpush1.bf16.msra.mxu1 %v7254_v38  ;;  %3409 = vmatpush1.bf16.msra.mxu0 %v7795_v5  ;;  %v7942_v57 = vld [vmem:[%s8572_s3 + $0xd4] ss:$8 sps:$4 sm:$0xff]  }
 0x3d2   :  { %v2518_v51 = vpop.f32.mrb[59].mxu1  ;;  %3353 = vmatprep.subr.bf16.mxu1 %v7259_v47  ;;  %3410 = vmatprep.subr.bf16.mxu0 %v7802_v40  ;;  %v7826_v47 = vld [vmem:[%s8572_s3 + $0x4] ss:$8 sps:$4 sm:$0xff]  }
 0x3d3   :  { %v7805_v26 = vmax.f32 %v2522_v18, %v2523_v35  ;;  %v7993_v33 = vld [vmem:[%s8572_s3 + $0x10c] ss:$8 sps:$4 sm:$0xff]   ;;  %v8002_v18 = vld [vmem:[%s8572_s3 + $0x108] ss:$8 sps:$4 sm:$0xff]   ;;  %v8009_v45 = vld [vmem:[%s8572_s3 + $0x11c] ss:$8 sps:$4 sm:$0xff]  }
 0x3d4   :  { %5147 = vmatmul.mubr.msk.bf16.vlgmr.msra.gmra.mrb[64].mxu1 %vm1830_vm4, %v7734_v31  ;;  %v8017_v35 = vld [vmem:[%s8572_s3 + $0x118] ss:$8 sps:$4 sm:$0xff]   ;;  %v8024_v10 = vld [vmem:[%s8572_s3 + $0x12c] ss:$8 sps:$4 sm:$0xff]   ;;  %v8031_v51 = vld [vmem:[%s8572_s3 + $0x128] ss:$8 sps:$4 sm:$0xff]  }
 0x3d5   :  { %8710 = vst [vmem:[#allocation21_spill] sm:$0xff] %v7805_v26  ;;  %3354 = vmatpush1.bf16.msra.mxu1 %v7273_v20  ;;  %3411 = vmatpush1.bf16.msra.mxu0 %v7813_v21  ;;  %v7835_v20 = vld [vmem:[%s8572_s3] ss:$8 sps:$4 sm:$0xff]  }
 0x3d6   :  { %3355 = vmatprep.subr.bf16.mxu1 %v7282_v48  ;;  %5150 = vmatprep.subr.msk.bf16.mxu0 %vm1834_vm3, %v6959_v22  ;;  %v8062_v26 = vld [vmem:[%s8572_s3 + $0x148] ss:$8 sps:$4 sm:$0xff]  }
 0x3d7   :  { %3385 = vmatprep.mubr.bf16.mxu1 %v8672_v19 }
 0x3d9   :  { %3356 = vmatpush1.bf16.msra.mxu1 %v7293_v58  ;;  %3413 = vmatpush1.bf16.msra.mxu0 %v6969_v50 }
 0x3da   :  { %3357 = vmatprep.subr.bf16.mxu1 %v7300_v49  ;;  %3443 = vmatprep.subr.bf16.mxu0 %v7826_v47 }
 0x3dc   :  { %5151 = vmatmul.mubr.msk.bf16.vlgmr.msra.gmra.mrb[68].mxu0 %vm1830_vm4, %v7613_v42 }
 0x3dd   :  { %3358 = vmatpush1.bf16.msra.mxu1 %v7308_v61  ;;  %3444 = vmatpush1.bf16.msra.mxu0 %v7835_v20 }
 0x3de   :  { %3359 = vmatprep.subr.bf16.mxu1 %v7315_v23  ;;  %3445 = vmatprep.subr.bf16.mxu0 %v7842_v28 }
 0x3df   :  { %3475 = vmatprep.mubr.bf16.mxu0 %v8672_v19 }
 0x3e1   :  { %3360 = vmatpush1.bf16.msra.mxu1 %v7322_v1  ;;  %3446 = vmatpush1.bf16.msra.mxu0 %v7850_v7 }
 0x3e2   :  { %3361 = vmatprep.subr.bf16.mxu1 %v7330_v60  ;;  %3447 = vmatprep.subr.bf16.mxu0 %v7859_v59 }
 0x3e5   :  { %3362 = vmatpush1.bf16.msra.mxu1 %v7340_v55  ;;  %3448 = vmatpush1.bf16.msra.mxu0 %v7866_v2 }
 0x3e6   :  { %5148 = vmatprep.subr.msk.bf16.mxu1 %vm1834_vm3, %v7346_v0  ;;  %3449 = vmatprep.subr.bf16.mxu0 %v7874_v41 }
 0x3e9   :  { %3364 = vmatpush1.bf16.msra.mxu1 %v7356_v56  ;;  %3450 = vmatpush1.bf16.msra.mxu0 %v7881_v3 }
 0x3ea   :  { %3451 = vmatprep.subr.bf16.mxu0 %v7889_v43  ;;  %3616 = vmatprep.subr.bf16.mxu1 %v7740_v27 }
 0x3ec   :  { %5149 = vmatmul.mubr.msk.bf16.vlgmr.msra.gmra.mrb[64].mxu1 %vm1830_vm4, %v7884_v54 }
 0x3ed   :  { %3452 = vmatpush1.bf16.msra.mxu0 %v7898_v13  ;;  %3617 = vmatpush1.bf16.msra.mxu1 %v7749_v29 }
 0x3ee   :  { %5152 = vmatprep.subr.msk.bf16.mxu0 %vm1834_vm3, %v8702_v32  ;;  %3618 = vmatprep.subr.bf16.mxu1 %v7756_v6 }
 0x3ef   :  { %3648 = vmatprep.mubr.bf16.mxu1 %v8672_v19 }
 0x3f1   :  { %3454 = vmatpush1.bf16.msra.mxu0 %v8703_v37  ;;  %3619 = vmatpush1.bf16.msra.mxu1 %v7764_v62 }
 0x3f2   :  { %3484 = vmatprep.subr.bf16.mxu0 %v7911_v9  ;;  %3620 = vmatprep.subr.bf16.mxu1 %v7771_v63 }
 0x3f4   :  { %5153 = vmatmul.mubr.msk.bf16.vlgmr.msra.gmra.mrb[68].mxu0 %vm1830_vm4, %v7553_v34  ;;  %v7935_v34 = vld [vmem:[%s8572_s3 + $0xc0] ss:$8 sps:$4 sm:$0xff]  }
 0x3f5   :  { %3485 = vmatpush1.bf16.msra.mxu0 %v7920_v15  ;;  %3621 = vmatpush1.bf16.msra.mxu1 %v7778_v4 }
 0x3f6   :  { %3486 = vmatprep.subr.bf16.mxu0 %v7927_v17  ;;  %3622 = vmatprep.subr.bf16.mxu1 %v7786_v14 }
 0x3f7   :  { %3516 = vmatprep.mubr.bf16.mxu0 %v8672_v19 }
 0x3f9   :  { %3487 = vmatpush1.bf16.msra.mxu0 %v7935_v34  ;;  %3623 = vmatpush1.bf16.msra.mxu1 %v7795_v5 }
 0x3fa   :  { %3488 = vmatprep.subr.bf16.mxu0 %v7942_v57  ;;  %3624 = vmatprep.subr.bf16.mxu1 %v7802_v40 }
 0x3fd   :  { %3489 = vmatpush1.bf16.msra.mxu0 %v7949_v16  ;;  %3625 = vmatpush1.bf16.msra.mxu1 %v7813_v21 }
 0x3fe   :  { %3490 = vmatprep.subr.bf16.mxu0 %v7956_v46  ;;  %5160 = vmatprep.subr.msk.bf16.mxu1 %vm1834_vm3, %v6959_v22 }
 0x401   :  { %3491 = vmatpush1.bf16.msra.mxu0 %v7964_v30  ;;  %3627 = vmatpush1.bf16.msra.mxu1 %v6969_v50 }
 0x402   :  { %3492 = vmatprep.subr.bf16.mxu0 %v7971_v12  ;;  %3657 = vmatprep.subr.bf16.mxu1 %v7826_v47 }
 0x404   :  { %5161 = vmatmul.mubr.msk.bf16.vlgmr.msra.gmra.mrb[68].mxu1 %vm1830_vm4, %v7734_v31 }
 0x405   :  { %3493 = vmatpush1.bf16.msra.mxu0 %v7980_v24  ;;  %3658 = vmatpush1.bf16.msra.mxu1 %v7835_v20 }
 0x406   :  { %5154 = vmatprep.subr.msk.bf16.mxu0 %vm1834_vm3, %v8681_v11  ;;  %3659 = vmatprep.subr.bf16.mxu1 %v7842_v28 }
 0x407   :  { %3689 = vmatprep.mubr.bf16.mxu1 %v8672_v19 }
 0x409   :  { %3495 = vmatpush1.bf16.msra.mxu0 %v8682_v44  ;;  %3660 = vmatpush1.bf16.msra.mxu1 %v7850_v7 }
 0x40a   :  { %3527 = vmatprep.subr.bf16.mxu0 %v7993_v33  ;;  %3661 = vmatprep.subr.bf16.mxu1 %v7859_v59 }
 0x40c   :  { %5155 = vmatmul.mubr.msk.bf16.vlgmr.msra.gmra.mrb[68].mxu0 %vm1830_vm4, %v7734_v31 }
 0x40d   :  { %3528 = vmatpush1.bf16.msra.mxu0 %v8002_v18  ;;  %3662 = vmatpush1.bf16.msra.mxu1 %v7866_v2 }
 0x40e   :  { %3529 = vmatprep.subr.bf16.mxu0 %v8009_v45  ;;  %3663 = vmatprep.subr.bf16.mxu1 %v7874_v41 }
 0x40f   :  { %3559 = vmatprep.mubr.bf16.mxu0 %v8672_v19 }
 0x411   :  { %3530 = vmatpush1.bf16.msra.mxu0 %v8017_v35  ;;  %3664 = vmatpush1.bf16.msra.mxu1 %v7881_v3 }
 0x412   :  { %3531 = vmatprep.subr.bf16.mxu0 %v8024_v10  ;;  %3665 = vmatprep.subr.bf16.mxu1 %v7889_v43 }
 0x415   :  { %3532 = vmatpush1.bf16.msra.mxu0 %v8031_v51  ;;  %3666 = vmatpush1.bf16.msra.mxu1 %v7898_v13 }
 0x416   :  { %3533 = vmatprep.subr.bf16.mxu0 %v8038_v25  ;;  %5162 = vmatprep.subr.msk.bf16.mxu1 %vm1834_vm3, %v8702_v32 }
 0x419   :  { %3534 = vmatpush1.bf16.msra.mxu0 %v8046_v36  ;;  %3668 = vmatpush1.bf16.msra.mxu1 %v8703_v37 }
 0x41a   :  { %3535 = vmatprep.subr.bf16.mxu0 %v8053_v53  ;;  %3698 = vmatprep.subr.bf16.mxu1 %v7911_v9 }
 0x41c   :  { %5163 = vmatmul.mubr.msk.bf16.vlgmr.msra.gmra.mrb[68].mxu1 %vm1830_vm4, %v7613_v42 }
 0x41d   :  { %3536 = vmatpush1.bf16.msra.mxu0 %v8062_v26  ;;  %3699 = vmatpush1.bf16.msra.mxu1 %v7920_v15  ;;  %v8079_v15 = vld [vmem:[%s8572_s3 + $0x164] ss:$8 sps:$4 sm:$0xff]  }
 0x41e   :  { %5156 = vmatprep.subr.msk.bf16.mxu0 %vm1834_vm3, %v8690_v8  ;;  %3700 = vmatprep.subr.bf16.mxu1 %v7927_v17 }
 0x41f   :  { %v8069_v39 = vpop.f32.mrb[60].mxu0  ;;  %3730 = vmatprep.mubr.bf16.mxu1 %v8672_v19 }
 0x420   :  { %v8072_v31 = vpop.f32.mrb[61].mxu0 }
 0x421   :  { %v2743_v42 = vpop.f32.mrb[62].mxu0  ;;  %3538 = vmatpush1.bf16.msra.mxu0 %v7254_v38  ;;  %3701 = vmatpush1.bf16.msra.mxu1 %v7935_v34 }
 0x422   :  { %v2744_v9 = vpop.f32.mrb[63].mxu0  ;;  %3573 = vmatprep.subr.bf16.mxu0 %v8079_v15  ;;  %3702 = vmatprep.subr.bf16.mxu1 %v7942_v57  ;;  %v8088_v42 = vld [vmem:[%s8572_s3 + $0x160] ss:$8 sps:$4 sm:$0xff]  }
 0x424   :  { %5157 = vmatmul.mubr.msk.bf16.vlgmr.msra.gmra.mrb[68].mxu0 %vm1830_vm4, %v7884_v54 }
 0x425   :  { %3574 = vmatpush1.bf16.msra.mxu0 %v8088_v42  ;;  %3703 = vmatpush1.bf16.msra.mxu1 %v7949_v16 }
 0x426   :  { %3575 = vmatprep.subr.bf16.mxu0 %v7282_v48  ;;  %3704 = vmatprep.subr.bf16.mxu1 %v7956_v46  ;;  %v8714_v48 = vld [vmem:[#allocation32_spill] sm:$0xff] }
 0x427   :  { %3605 = vmatprep.mubr.bf16.mxu0 %v8672_v19  ;;  %v1453_v9 = vadd.f32 %v7718_v52, %v8714_v48 }
 0x429   :  { %3576 = vmatpush1.bf16.msra.mxu0 %v7293_v58  ;;  %3705 = vmatpush1.bf16.msra.mxu1 %v7964_v30  ;;  %v1454_v58 = vmax.f32 %v1453_v9, 0.0 }
 0x42a   :  { %3577 = vmatprep.subr.bf16.mxu0 %v7300_v49  ;;  %3706 = vmatprep.subr.bf16.mxu1 %v7971_v12 }
 0x42b   :  { %v8120_v49 = vpack.c.bf16 %v1454_v58, %v1454_v58  ;;  %v8171_v58 = vld [vmem:[%s8572_s3 + $0x184] ss:$8 sps:$4 sm:$0xff]  }
 0x42d   :  { %3578 = vmatpush1.bf16.msra.mxu0 %v7308_v61  ;;  %3707 = vmatpush1.bf16.msra.mxu1 %v7980_v24 }
 0x42e   :  { %3579 = vmatprep.subr.bf16.mxu0 %v7315_v23  ;;  %5164 = vmatprep.subr.msk.bf16.mxu1 %vm1834_vm3, %v8681_v11 }
 0x431   :  { %3580 = vmatpush1.bf16.msra.mxu0 %v7322_v1  ;;  %3709 = vmatpush1.bf16.msra.mxu1 %v8682_v44 }
 0x432   :  { %3581 = vmatprep.subr.bf16.mxu0 %v7330_v60  ;;  %3741 = vmatprep.subr.bf16.mxu1 %v7993_v33 }
 0x434   :  { %5165 = vmatmul.mubr.msk.bf16.vlgmr.msra.gmra.mrb[68].mxu1 %vm1830_vm4, %v7884_v54 }
 0x435   :  { %3582 = vmatpush1.bf16.msra.mxu0 %v7340_v55  ;;  %3742 = vmatpush1.bf16.msra.mxu1 %v8002_v18 }
 0x436   :  { %5158 = vmatprep.subr.msk.bf16.mxu0 %vm1834_vm3, %v7346_v0  ;;  %3743 = vmatprep.subr.bf16.mxu1 %v8009_v45 }
 0x437   :  { %3773 = vmatprep.mubr.bf16.mxu1 %v8672_v19 }
 0x439   :  { %3584 = vmatpush1.bf16.msra.mxu0 %v7356_v56  ;;  %3744 = vmatpush1.bf16.msra.mxu1 %v8017_v35 }
 0x43a   :  { %3745 = vmatprep.subr.bf16.mxu1 %v8024_v10  ;;  %3836 = vmatprep.subr.bf16.mxu0 %v7740_v27 }
 0x43c   :  { %5159 = vmatmul.mubr.msk.bf16.vlgmr.msra.gmra.mrb[68].mxu0 %vm1830_vm4, %v8120_v49 }
 0x43d   :  { %3746 = vmatpush1.bf16.msra.mxu1 %v8031_v51  ;;  %3837 = vmatpush1.bf16.msra.mxu0 %v7749_v29 }
 0x43e   :  { %3747 = vmatprep.subr.bf16.mxu1 %v8038_v25  ;;  %3838 = vmatprep.subr.bf16.mxu0 %v7756_v6 }
 0x43f   :  { %3868 = vmatprep.mubr.bf16.mxu0 %v8672_v19 }
 0x441   :  { %3748 = vmatpush1.bf16.msra.mxu1 %v8046_v36  ;;  %3839 = vmatpush1.bf16.msra.mxu0 %v7764_v62 }
 0x442   :  { %3749 = vmatprep.subr.bf16.mxu1 %v8053_v53  ;;  %3840 = vmatprep.subr.bf16.mxu0 %v7771_v63 }
 0x445   :  { %3750 = vmatpush1.bf16.msra.mxu1 %v8062_v26  ;;  %3841 = vmatpush1.bf16.msra.mxu0 %v7778_v4 }
 0x446   :  { %5166 = vmatprep.subr.msk.bf16.mxu1 %vm1834_vm3, %v8690_v8  ;;  %3842 = vmatprep.subr.bf16.mxu0 %v7786_v14 }
 0x447   :  { %v2953_v55 = vpop.f32.mrb[60].mxu1 }
 0x448   :  { %v2962_v61 = vmax.f32 %v8069_v39, %v2953_v55  ;;  %v2955_v23 = vpop.f32.mrb[61].mxu1  ;;  %v8155_v39 = vld [vmem:[%s8572_s3 + $0x174] ss:$8 sps:$4 sm:$0xff]   ;;  %v8180_v55 = vld [vmem:[%s8572_s3 + $0x180] ss:$8 sps:$4 sm:$0xff]  }
 0x449   :  { %v2963_v1 = vmax.f32 %v8072_v31, %v2955_v23  ;;  %v2957_v60 = vpop.f32.mrb[62].mxu1  ;;  %3752 = vmatpush1.bf16.msra.mxu1 %v7254_v38  ;;  %3843 = vmatpush1.bf16.msra.mxu0 %v7795_v5  ;;  %v8164_v31 = vld [vmem:[%s8572_s3 + $0x170] ss:$8 sps:$4 sm:$0xff]  }
 0x44a   :  { %v2958_v48 = vpop.f32.mrb[63].mxu1  ;;  %3787 = vmatprep.subr.bf16.mxu1 %v8079_v15  ;;  %3844 = vmatprep.subr.bf16.mxu0 %v7802_v40  ;;  %v8195_v23 = vld [vmem:[%s8572_s3 + $0x190] ss:$8 sps:$4 sm:$0xff]  }
 0x44b   :  { %v8146_v9 = vmax.f32 %v2962_v61, %v2963_v1  ;;  %v8187_v61 = vld [vmem:[%s8572_s3 + $0x194] ss:$8 sps:$4 sm:$0xff]   ;;  %8716 = vst [vmem:[#allocation25_spill] sm:$0xff] %v8195_v23  ;;  %v8717_v1 = vld [vmem:[#allocation19_spill] sm:$0xff] }
 0x44c   :  { %5167 = vmatmul.mubr.msk.bf16.vlgmr.msra.gmra.mrb[68].mxu1 %vm1830_vm4, %v8120_v49  ;;  %v1559_v60 = vadd.f32 %v7718_v52, %v8717_v1  ;;  %v8204_v48 = vld [vmem:[%s8572_s3 + $0x1a4] ss:$8 sps:$4 sm:$0xff]  }
 0x44d   :  { %8715 = vst [vmem:[#allocation24_spill] sm:$0xff] %v8146_v9  ;;  %3788 = vmatpush1.bf16.msra.mxu1 %v8088_v42  ;;  %3845 = vmatpush1.bf16.msra.mxu0 %v7813_v21  ;;  %v8211_v9 = vld [vmem:[%s8572_s3 + $0x1a0] ss:$8 sps:$4 sm:$0xff]  }
 0x44e   :  { %3789 = vmatprep.subr.bf16.mxu1 %v8155_v39  ;;  %5170 = vmatprep.subr.msk.bf16.mxu0 %vm1834_vm3, %v6959_v22 }
 0x44f   :  { %3819 = vmatprep.mubr.bf16.mxu1 %v8672_v19 }
 0x451   :  { %3790 = vmatpush1.bf16.msra.mxu1 %v8164_v31  ;;  %3847 = vmatpush1.bf16.msra.mxu0 %v6969_v50 }
 0x452   :  { %3791 = vmatprep.subr.bf16.mxu1 %v8171_v58  ;;  %3877 = vmatprep.subr.bf16.mxu0 %v7826_v47 }
 0x454   :  { %5171 = vmatmul.mubr.msk.bf16.vlgmr.msra.gmra.mrb[72].mxu0 %vm1830_vm4, %v7884_v54 }
 0x455   :  { %3792 = vmatpush1.bf16.msra.mxu1 %v8180_v55  ;;  %3878 = vmatpush1.bf16.msra.mxu0 %v7835_v20 }
 0x456   :  { %3793 = vmatprep.subr.bf16.mxu1 %v8187_v61  ;;  %3879 = vmatprep.subr.bf16.mxu0 %v7842_v28 }
 0x457   :  { %3909 = vmatprep.mubr.bf16.mxu0 %v8672_v19 }
 0x459   :  { %3794 = vmatpush1.bf16.msra.mxu1 %v8195_v23  ;;  %3880 = vmatpush1.bf16.msra.mxu0 %v7850_v7  ;;  %v1560_v23 = vmax.f32 %v1559_v60, 0.0  ;;  %v8720_v60 = vld [vmem:[#allocation23_spill] sm:$0xff] }
 0x45a   :  { %3795 = vmatprep.subr.bf16.mxu1 %v8204_v48  ;;  %3881 = vmatprep.subr.bf16.mxu0 %v7859_v59 }
 0x45b   :  { %v8220_v1 = vpack.c.bf16 %v1560_v23, %v1560_v23  ;;  %v8718_v23 = vld [vmem:[#allocation22_spill] sm:$0xff] }
 0x45d   :  { %3796 = vmatpush1.bf16.msra.mxu1 %v8211_v9  ;;  %3882 = vmatpush1.bf16.msra.mxu0 %v7866_v2 }
 0x45e   :  { %5168 = vmatprep.subr.msk.bf16.mxu1 %vm1834_vm3, %v7346_v0  ;;  %3883 = vmatprep.subr.bf16.mxu0 %v7874_v41 }
 0x461   :  { %3798 = vmatpush1.bf16.msra.mxu1 %v7356_v56  ;;  %3884 = vmatpush1.bf16.msra.mxu0 %v7881_v3 }
 0x462   :  { %3885 = vmatprep.subr.bf16.mxu0 %v7889_v43  ;;  %4050 = vmatprep.subr.bf16.mxu1 %v7740_v27  ;;  %v8719_v27 = vld [vmem:[#allocation20_spill] sm:$0xff] }
 0x464   :  { %5169 = vmatmul.mubr.msk.bf16.vlgmr.msra.gmra.mrb[68].mxu1 %vm1830_vm4, %v8220_v1 }
 0x465   :  { %3886 = vmatpush1.bf16.msra.mxu0 %v7898_v13  ;;  %4051 = vmatpush1.bf16.msra.mxu1 %v7749_v29  ;;  %v8721_v29 = vld [vmem:[#allocation25_spill] sm:$0xff] }
 0x466   :  { %5172 = vmatprep.subr.msk.bf16.mxu0 %vm1834_vm3, %v8702_v32  ;;  %4052 = vmatprep.subr.bf16.mxu1 %v7756_v6  ;;  %v8722_v6 = vld [vmem:[#allocation17_spill] sm:$0xff] }
 0x467   :  { %4082 = vmatprep.mubr.bf16.mxu1 %v8672_v19 }
 0x469   :  { %3888 = vmatpush1.bf16.msra.mxu0 %v8703_v37  ;;  %4053 = vmatpush1.bf16.msra.mxu1 %v7764_v62  ;;  %v1666_v62 = vadd.f32 %v7718_v52, %v8722_v6 }
 0x46a   :  { %3918 = vmatprep.subr.bf16.mxu0 %v8718_v23  ;;  %4054 = vmatprep.subr.bf16.mxu1 %v7771_v63 }
 0x46b   :  { %v1667_v63 = vmax.f32 %v1666_v62, 0.0 }
 0x46c   :  { %5173 = vmatmul.mubr.msk.bf16.vlgmr.msra.gmra.mrb[72].mxu0 %vm1830_vm4, %v8719_v27 }
 0x46d   :  { %3919 = vmatpush1.bf16.msra.mxu0 %v8720_v60  ;;  %4055 = vmatpush1.bf16.msra.mxu1 %v7778_v4  ;;  %v5804_v4 = vmov 0.0  }
 0x46e   :  { %3920 = vmatprep.subr.bf16.mxu0 %v7927_v17  ;;  %4056 = vmatprep.subr.bf16.mxu1 %v7786_v14  ;;  %v5687_v14 = vld [vmem:[%s8574_s5 + $0x30] sm:$0xff]  }
 0x46f   :  { %3950 = vmatprep.mubr.bf16.mxu0 %v8672_v19 }
 0x471   :  { %3921 = vmatpush1.bf16.msra.mxu0 %v7935_v34  ;;  %4057 = vmatpush1.bf16.msra.mxu1 %v7795_v5  ;;  %v5688_v5 = vld [vmem:[%s8574_s5 + $0x38] sm:$0xff]  }
 0x472   :  { %3922 = vmatprep.subr.bf16.mxu0 %v7942_v57  ;;  %4058 = vmatprep.subr.bf16.mxu1 %v7802_v40  ;;  %v8359_v40 = vld [vmem:[%s8575_s4] ss:$0 sm:$0xff] }
 0x475   :  { %3923 = vmatpush1.bf16.msra.mxu0 %v7949_v16  ;;  %4059 = vmatpush1.bf16.msra.mxu1 %v7813_v21  ;;  %v5689_v21 = vld [vmem:[%s8574_s5 + $0x40] sm:$0xff]  }
 0x476   :  { %3924 = vmatprep.subr.bf16.mxu0 %v7956_v46  ;;  %5180 = vmatprep.subr.msk.bf16.mxu1 %vm1834_vm3, %v6959_v22 }
 0x479   :  { %3925 = vmatpush1.bf16.msra.mxu0 %v7964_v30  ;;  %4061 = vmatpush1.bf16.msra.mxu1 %v6969_v50 }
 0x47a   :  { %3926 = vmatprep.subr.bf16.mxu0 %v7971_v12  ;;  %4091 = vmatprep.subr.bf16.mxu1 %v7826_v47  ;;  %v8723_v47 = vld [vmem:[#allocation24_spill] sm:$0xff] }
 0x47c   :  { %5181 = vmatmul.mubr.msk.bf16.vlgmr.msra.gmra.mrb[72].mxu1 %vm1830_vm4, %v8120_v49 }
 0x47d   :  { %3927 = vmatpush1.bf16.msra.mxu0 %v7980_v24  ;;  %4092 = vmatpush1.bf16.msra.mxu1 %v7835_v20  ;;  %v2965_v20 = vadd.f32 %v8359_v40, %v8723_v47 }
 0x47e   :  { %5174 = vmatprep.subr.msk.bf16.mxu0 %vm1834_vm3, %v8681_v11  ;;  %4093 = vmatprep.subr.bf16.mxu1 %v7842_v28 }
 0x47f   :  { %4123 = vmatprep.mubr.bf16.mxu1 %v8672_v19 }
 0x481   :  { %3929 = vmatpush1.bf16.msra.mxu0 %v8682_v44  ;;  %4094 = vmatpush1.bf16.msra.mxu1 %v7850_v7 }
 0x482   :  { %3961 = vmatprep.subr.bf16.mxu0 %v7993_v33  ;;  %4095 = vmatprep.subr.bf16.mxu1 %v7859_v59 }
 0x484   :  { %5175 = vmatmul.mubr.msk.bf16.vlgmr.msra.gmra.mrb[72].mxu0 %vm1830_vm4, %v8120_v49  ;;  %v5705_v49 = vld [vmem:[%s8574_s5 + $0x98] sm:$0xff]  }
 0x485   :  { %3962 = vmatpush1.bf16.msra.mxu0 %v8002_v18  ;;  %4096 = vmatpush1.bf16.msra.mxu1 %v7866_v2 }
 0x486   :  { %3963 = vmatprep.subr.bf16.mxu0 %v8009_v45  ;;  %4097 = vmatprep.subr.bf16.mxu1 %v7874_v41  ;;  %v5690_v41 = vld [vmem:[%s8574_s5 + $0x48] sm:$0xff]  }
 0x487   :  { %3993 = vmatprep.mubr.bf16.mxu0 %v8672_v19 }
 0x489   :  { %3964 = vmatpush1.bf16.msra.mxu0 %v8017_v35  ;;  %4098 = vmatpush1.bf16.msra.mxu1 %v7881_v3  ;;  %v2966_v3 = vmax.f32 %v2965_v20, 0.0 }
 0x48a   :  { %3965 = vmatprep.subr.bf16.mxu0 %v8024_v10  ;;  %4099 = vmatprep.subr.bf16.mxu1 %v7889_v43 }
 0x48b   :  { %v2967_v43 = vpack.c.bf16 %v2966_v3, %v2966_v3  ;;  %v5716_v3 = vld [vmem:[%s8576_s7 + $0x28] sm:$0xff]  }
 0x48d   :  { %3966 = vmatpush1.bf16.msra.mxu0 %v8031_v51  ;;  %4100 = vmatpush1.bf16.msra.mxu1 %v7898_v13  ;;  %v5692_v13 = vld [vmem:[%s8574_s5 + $0x58] sm:$0xff]  }
 0x48e   :  { %3967 = vmatprep.subr.bf16.mxu0 %v8038_v25  ;;  %5182 = vmatprep.subr.msk.bf16.mxu1 %vm1834_vm3, %v8702_v32 }
 0x491   :  { %3968 = vmatpush1.bf16.msra.mxu0 %v8046_v36  ;;  %4102 = vmatpush1.bf16.msra.mxu1 %v8703_v37 }
 0x492   :  { %3969 = vmatprep.subr.bf16.mxu0 %v8053_v53  ;;  %4132 = vmatprep.subr.bf16.mxu1 %v8718_v23  ;;  %v5710_v23 = vld [vmem:[%s8574_s5 + $0xc0] sm:$0xff]  }
 0x494   :  { %5183 = vmatmul.mubr.msk.bf16.vlgmr.msra.gmra.mrb[72].mxu1 %vm1830_vm4, %v7884_v54 }
 0x495   :  { %3970 = vmatpush1.bf16.msra.mxu0 %v8062_v26  ;;  %4133 = vmatpush1.bf16.msra.mxu1 %v8720_v60 }
 0x496   :  { %5176 = vmatprep.subr.msk.bf16.mxu0 %vm1834_vm3, %v8690_v8  ;;  %4134 = vmatprep.subr.bf16.mxu1 %v7927_v17  ;;  %v8724_v17 = vld [vmem:[#allocation18_spill] sm:$0xff] }
 0x497   :  { %v8295_v22 = vpop.f32.mrb[64].mxu0  ;;  %4164 = vmatprep.mubr.bf16.mxu1 %v8672_v19 }
 0x498   :  { %v8298_v50 = vpop.f32.mrb[65].mxu0 }
 0x499   :  { %v3177_v32 = vpop.f32.mrb[66].mxu0  ;;  %3972 = vmatpush1.bf16.msra.mxu0 %v7254_v38  ;;  %4135 = vmatpush1.bf16.msra.mxu1 %v7935_v34  ;;  %v1772_v34 = vadd.f32 %v7718_v52, %v8724_v17  ;;  %v5696_v52 = vld [vmem:[%s8574_s5] sm:$0xff]  }
 0x49a   :  { %v3178_v37 = vpop.f32.mrb[67].mxu0  ;;  %4007 = vmatprep.subr.bf16.mxu0 %v8079_v15  ;;  %4136 = vmatprep.subr.bf16.mxu1 %v7942_v57 }
 0x49c   :  { %5177 = vmatmul.mubr.msk.bf16.vlgmr.msra.gmra.mrb[72].mxu0 %vm1830_vm4, %v8220_v1 }
 0x49d   :  { %4008 = vmatpush1.bf16.msra.mxu0 %v8088_v42  ;;  %4137 = vmatpush1.bf16.msra.mxu1 %v7949_v16  ;;  %v5695_v16 = vld [vmem:[%s8574_s5 + $0x70] sm:$0xff]  }
 0x49e   :  { %4009 = vmatprep.subr.bf16.mxu0 %v8155_v39  ;;  %4138 = vmatprep.subr.bf16.mxu1 %v7956_v46  ;;  %v1773_v46 = vmax.f32 %v1772_v34, 0.0 }
 0x49f   :  { %4039 = vmatprep.mubr.bf16.mxu0 %v8672_v19 }
 0x4a1   :  { %4010 = vmatpush1.bf16.msra.mxu0 %v8164_v31  ;;  %4139 = vmatpush1.bf16.msra.mxu1 %v7964_v30 }
 0x4a2   :  { %4011 = vmatprep.subr.bf16.mxu0 %v8171_v58  ;;  %4140 = vmatprep.subr.bf16.mxu1 %v7971_v12  ;;  %v1774_v12 = vpack.c.bf16 %v1773_v46, %v1773_v46 }
 0x4a5   :  { %4012 = vmatpush1.bf16.msra.mxu0 %v8180_v55  ;;  %4141 = vmatpush1.bf16.msra.mxu1 %v7980_v24 }
 0x4a6   :  { %4013 = vmatprep.subr.bf16.mxu0 %v8187_v61  ;;  %5184 = vmatprep.subr.msk.bf16.mxu1 %vm1834_vm3, %v8681_v11  ;;  %v5686_v11 = vld [vmem:[%s8574_s5 + $0x28] sm:$0xff]  }
 0x4a9   :  { %4014 = vmatpush1.bf16.msra.mxu0 %v8721_v29  ;;  %4143 = vmatpush1.bf16.msra.mxu1 %v8682_v44  ;;  %v1668_v44 = vpack.c.bf16 %v1667_v63, %v1667_v63 }
 0x4aa   :  { %4015 = vmatprep.subr.bf16.mxu0 %v8204_v48  ;;  %4175 = vmatprep.subr.bf16.mxu1 %v7993_v33  ;;  %v5699_v33 = vld [vmem:[%s8574_s5 + $0x18] sm:$0xff]  }
 0x4ac   :  { %5185 = vmatmul.mubr.msk.bf16.vlgmr.msra.gmra.mrb[72].mxu1 %vm1830_vm4, %v8220_v1  ;;  %v5709_v1 = vld [vmem:[%s8574_s5 + $0xb8] sm:$0xff]  }
 0x4ad   :  { %4016 = vmatpush1.bf16.msra.mxu0 %v8211_v9  ;;  %4176 = vmatpush1.bf16.msra.mxu1 %v8002_v18  ;;  %v8725_v18 = vld [vmem:[#allocation21_spill] sm:$0xff] }
 0x4ae   :  { %5178 = vmatprep.subr.msk.bf16.mxu0 %vm1834_vm3, %v7346_v0  ;;  %4177 = vmatprep.subr.bf16.mxu1 %v8009_v45  ;;  %v2531_v45 = vadd.f32 %v8359_v40, %v8725_v18 }
 0x4af   :  { %4207 = vmatprep.mubr.bf16.mxu1 %v8672_v19 }
 0x4b1   :  { %4018 = vmatpush1.bf16.msra.mxu0 %v7356_v56  ;;  %4178 = vmatpush1.bf16.msra.mxu1 %v8017_v35  ;;  %v5700_v35 = vld [vmem:[%s8574_s5 + $0x20] sm:$0xff]  }
 0x4b2   :  { %4179 = vmatprep.subr.bf16.mxu1 %v8024_v10  ;;  %5285 = vmatprep.subr.bf16.mxu0 %v5804_v4  ;;  %v2532_v10 = vmax.f32 %v2531_v45, 0.0  ;;  %v5717_v45 = vld [vmem:[%s8576_s7 + $0x30] sm:$0xff]  }
 0x4b4   :  { %5179 = vmatmul.mubr.msk.bf16.vlgmr.msra.gmra.mrb[72].mxu0 %vm1830_vm4, %v1668_v44 }
 0x4b5   :  { %4180 = vmatpush1.bf16.msra.mxu1 %v8031_v51  ;;  %5286 = vmatpush3.bf16.msra.mxu0 %v5686_v11  ;;  %v5701_v51 = vld [vmem:[%s8574_s5 + $0x78] sm:$0xff]  }
 0x4b6   :  { %4181 = vmatprep.subr.bf16.mxu1 %v8038_v25  ;;  %5287 = vmatprep.subr.bf16.mxu0 %v5804_v4  ;;  %v2533_v25 = vpack.c.bf16 %v2532_v10, %v2532_v10 }
 0x4b7   :  { %5295 = vmatprep.mubr.msk.bf16.mxu0 %vm5805_vm5, %v5804_v4 }
 0x4b9   :  { %4182 = vmatpush1.bf16.msra.mxu1 %v8046_v36  ;;  %5288 = vmatpush3.bf16.msra.mxu0 %v5687_v14  ;;  %v5702_v36 = vld [vmem:[%s8574_s5 + $0x80] sm:$0xff]  }
 0x4ba   :  { %4183 = vmatprep.subr.bf16.mxu1 %v8053_v53  ;;  %5289 = vmatprep.subr.bf16.mxu0 %v5804_v4  ;;  %v5703_v53 = vld [vmem:[%s8574_s5 + $0x88] sm:$0xff]  }
 0x4bd   :  { %4184 = vmatpush1.bf16.msra.mxu1 %v8062_v26  ;;  %5290 = vmatpush3.bf16.msra.mxu0 %v5688_v5 }
 0x4be   :  { %5186 = vmatprep.subr.msk.bf16.mxu1 %vm1834_vm3, %v8690_v8  ;;  %5291 = vmatprep.subr.bf16.mxu0 %v5804_v4 }
 0x4bf   :  { %v3387_v28 = vpop.f32.mrb[64].mxu1 }
 0x4c0   :  { %v3396_v7 = vmax.f32 %v8295_v22, %v3387_v28  ;;  %v3389_v59 = vpop.f32.mrb[65].mxu1  ;;  %v5712_v28 = vld [vmem:[%s8576_s7 + $0x8] sm:$0xff]  }
 0x4c1   :  { %v3397_v2 = vmax.f32 %v8298_v50, %v3389_v59  ;;  %v3391_v26 = vpop.f32.mrb[66].mxu1  ;;  %4186 = vmatpush1.bf16.msra.mxu1 %v7254_v38  ;;  %5292 = vmatpush3.bf16.msra.mxu0 %v5689_v21  ;;  %v5691_v38 = vld [vmem:[%s8574_s5 + $0x50] sm:$0xff]   ;;  %v5711_v21 = vld [vmem:[%s8576_s7] sm:$0xff]  }
 0x4c2   :  { %v3392_v54 = vpop.f32.mrb[67].mxu1  ;;  %4221 = vmatprep.subr.bf16.mxu1 %v8079_v15  ;;  %5293 = vmatprep.subr.bf16.mxu0 %v5804_v4  ;;  %v5694_v15 = vld [vmem:[%s8574_s5 + $0x68] sm:$0xff]   ;;  %v5714_v26 = vld [vmem:[%s8576_s7 + $0x18] sm:$0xff]  }
 0x4c3   :  { %v3398_v8 = vmax.f32 %v3396_v7, %v3397_v2  ;;  %v5713_v2 = vld [vmem:[%s8576_s7 + $0x10] sm:$0xff]  }
 0x4c4   :  { %5187 = vmatmul.mubr.msk.bf16.vlgmr.msra.gmra.mrb[72].mxu1 %vm1830_vm4, %v1668_v44 }
 0x4c5   :  { %4222 = vmatpush1.bf16.msra.mxu1 %v8088_v42  ;;  %5294 = vmatpush3.bf16.msra.mxu0 %v5690_v41  ;;  %v3399_v57 = vadd.f32 %v8359_v40, %v3398_v8  ;;  %v5704_v42 = vld [vmem:[%s8574_s5 + $0x90] sm:$0xff]   ;;  %v5715_v41 = vld [vmem:[%s8576_s7 + $0x20] sm:$0xff]  }
 0x4c6   :  { %4223 = vmatprep.subr.bf16.mxu1 %v8155_v39  ;;  %5313 = vmatprep.subr.bf16.mxu0 %v5804_v4 }
 0x4c7   :  { %4253 = vmatprep.mubr.bf16.mxu1 %v8672_v19  ;;  %v5693_v19 = vld [vmem:[%s8574_s5 + $0x60] sm:$0xff]   ;;  %v3400_v30 = vmax.f32 %v3399_v57, 0.0 }
 0x4c8   :  { %5296 = vmatmul.mubr.msk.bf16.vlgmr.msra.gmra.mrb[76].mxu0 %vm4300_vm6, %v2967_v43 }
 0x4c9   :  { %4224 = vmatpush1.bf16.msra.mxu1 %v8164_v31  ;;  %5314 = vmatpush3.bf16.msra.mxu0 %v5691_v38  ;;  %v3401_v24 = vpack.c.bf16 %v3400_v30, %v3400_v30 }
 0x4ca   :  { %4225 = vmatprep.subr.bf16.mxu1 %v8171_v58  ;;  %5315 = vmatprep.subr.bf16.mxu0 %v5804_v4 }
 0x4cb   :  { %5323 = vmatprep.mubr.msk.bf16.mxu0 %vm5805_vm5, %v5804_v4 }
 0x4cd   :  { %4226 = vmatpush1.bf16.msra.mxu1 %v8180_v55  ;;  %5316 = vmatpush3.bf16.msra.mxu0 %v5692_v13  ;;  %v5706_v55 = vld [vmem:[%s8574_s5 + $0xa0] sm:$0xff]  }
 0x4ce   :  { %4227 = vmatprep.subr.bf16.mxu1 %v8187_v61  ;;  %5317 = vmatprep.subr.bf16.mxu0 %v5804_v4  ;;  %v5707_v61 = vld [vmem:[%s8574_s5 + $0xa8] sm:$0xff]  }
 0x4d1   :  { %4228 = vmatpush1.bf16.msra.mxu1 %v8721_v29  ;;  %5318 = vmatpush3.bf16.msra.mxu0 %v5693_v19 }
 0x4d2   :  { %4229 = vmatprep.subr.bf16.mxu1 %v8204_v48  ;;  %5319 = vmatprep.subr.bf16.mxu0 %v5804_v4  ;;  %v5708_v48 = vld [vmem:[%s8574_s5 + $0xb0] sm:$0xff]  }
 0x4d5   :  { %4230 = vmatpush1.bf16.msra.mxu1 %v8211_v9  ;;  %5320 = vmatpush3.bf16.msra.mxu0 %v5694_v15 }
 0x4d6   :  { %5188 = vmatprep.subr.msk.bf16.mxu1 %vm1834_vm3, %v7346_v0  ;;  %5321 = vmatprep.subr.bf16.mxu0 %v5804_v4  ;;  %v5697_v0 = vld [vmem:[%s8574_s5 + $0x8] sm:$0xff]  }
 0x4d9   :  { %4232 = vmatpush1.bf16.msra.mxu1 %v7356_v56  ;;  %5322 = vmatpush3.bf16.msra.mxu0 %v5695_v16  ;;  %v5698_v56 = vld [vmem:[%s8574_s5 + $0x10] sm:$0xff]  }
 0x4da   :  { %5299 = vmatprep.subr.bf16.mxu1 %v5804_v4  ;;  %5341 = vmatprep.subr.bf16.mxu0 %v5804_v4 }
 0x4dc   :  { %5189 = vmatmul.mubr.msk.bf16.vlgmr.msra.gmra.mrb[72].mxu1 %vm1830_vm4, %v1774_v12  ;;  %5324 = vmatmul.mubr.msk.bf16.vlgmr.msra.gmra.mrb[80].mxu0 %vm4300_vm6, %v3401_v24 }
 0x4dd   :  { %5300 = vmatpush3.bf16.msra.mxu1 %v5696_v52  ;;  %5309 = vmatprep.mubr.msk.bf16.mxu1 %vm5805_vm5, %v5804_v4 }
 0x4de   :  { %5301 = vmatprep.subr.bf16.mxu1 %v5804_v4  ;;  %5351 = vmatprep.mubr.msk.bf16.mxu0 %vm5805_vm5, %v5804_v4 }
 0x4df   :  { %5342 = vmatpush3.bf16.msra.mxu0 %v5706_v55 }
 0x4e0   :  { %5343 = vmatprep.subr.bf16.mxu0 %v5804_v4 }
 0x4e1   :  { %5302 = vmatpush3.bf16.msra.mxu1 %v5697_v0 }
 0x4e2   :  { %5303 = vmatprep.subr.bf16.mxu1 %v5804_v4 }
 0x4e3   :  { %5344 = vmatpush3.bf16.msra.mxu0 %v5707_v61 }
 0x4e4   :  { %5345 = vmatprep.subr.bf16.mxu0 %v5804_v4 }
 0x4e5   :  { %5304 = vmatpush3.bf16.msra.mxu1 %v5698_v56 }
 0x4e6   :  { %5305 = vmatprep.subr.bf16.mxu1 %v5804_v4 }
 0x4e7   :  { %5346 = vmatpush3.bf16.msra.mxu0 %v5708_v48 }
 0x4e8   :  { %5347 = vmatprep.subr.bf16.mxu0 %v5804_v4 }
 0x4e9   :  { %5306 = vmatpush3.bf16.msra.mxu1 %v5699_v33 }
 0x4ea   :  { %5307 = vmatprep.subr.bf16.mxu1 %v5804_v4 }
 0x4eb   :  { %5348 = vmatpush3.bf16.msra.mxu0 %v5709_v1 }
 0x4ec   :  { %5349 = vmatprep.subr.bf16.mxu0 %v5804_v4 }
 0x4ed   :  { %5308 = vmatpush3.bf16.msra.mxu1 %v5700_v35 }
 0x4ee   :  { %5327 = vmatprep.subr.bf16.mxu1 %v5804_v4 }
 0x4ef   :  { %5350 = vmatpush3.bf16.msra.mxu0 %v5710_v23 }
 0x4f0   :  { %5310 = vmatmul.mubr.msk.bf16.vlgmr.msra.gmra.mrb[76].mxu1 %vm4300_vm6, %v2533_v25  ;;  %5375 = vmatprep.subr.bf16.mxu0 %v5804_v4 }
 0x4f1   :  { %5328 = vmatpush3.bf16.msra.mxu1 %v5701_v51  ;;  %5337 = vmatprep.mubr.msk.bf16.mxu1 %vm5805_vm5, %v5804_v4 }
 0x4f2   :  { %5329 = vmatprep.subr.bf16.mxu1 %v5804_v4 }
 0x4f5   :  { %5330 = vmatpush3.bf16.msra.mxu1 %v5702_v36 }
 0x4f6   :  { %5331 = vmatprep.subr.bf16.mxu1 %v5804_v4 }
 0x4f9   :  { %5332 = vmatpush3.bf16.msra.mxu1 %v5703_v53  ;;  %v5719_v53 = vld [vmem:[%s8577_s9] sm:$0xff]  }
 0x4fa   :  { %5333 = vmatprep.subr.bf16.mxu1 %v5804_v4 }
 0x4fd   :  { %5334 = vmatpush3.bf16.msra.mxu1 %v5704_v42 }
 0x4fe   :  { %5335 = vmatprep.subr.bf16.mxu1 %v5804_v4 }
 0x501   :  { %5336 = vmatpush3.bf16.msra.mxu1 %v5705_v49  ;;  %v5720_v49 = vld [vmem:[%s8577_s9 + $0x8] sm:$0xff]  }
 0x502   :  { %5355 = vmatprep.subr.bf16.mxu1 %v5804_v4 }
 0x50f   :  { %v3607_v9 = vpop.f32.mrb[68].mxu0 }
 0x510   :  { %v3609_v39 = vpop.f32.mrb[69].mxu0 }
 0x511   :  { %v3611_v31 = vpop.f32.mrb[70].mxu0 }
 0x512   :  { %v3612_v58 = vpop.f32.mrb[71].mxu0 }
 0x513   :  { %v5220_v58 = vld [vmem:[%s8578_s6] ss:$0 sm:$0xff] }
 0x537   :  { %v3821_v27 = vpop.f32.mrb[68].mxu1 }
 0x538   :  { %v3830_v60 = vmax.f32 %v3607_v9, %v3821_v27  ;;  %v3823_v22 = vpop.f32.mrb[69].mxu1  ;;  %v5721_v9 = vld [vmem:[%s8577_s9 + $0x10] sm:$0xff]  }
 0x539   :  { %v3831_v50 = vmax.f32 %v3609_v39, %v3823_v22  ;;  %v3825_v32 = vpop.f32.mrb[70].mxu1  ;;  %v5722_v39 = vld [vmem:[%s8577_s9 + $0x18] sm:$0xff]   ;;  %v5723_v22 = vld [vmem:[%s8577_s9 + $0x20] sm:$0xff]  }
 0x53a   :  { %v3826_v37 = vpop.f32.mrb[71].mxu1 }
 0x53b   :  { %v3832_v29 = vmax.f32 %v3830_v60, %v3831_v50  ;;  %v5724_v50 = vld [vmem:[%s8577_s9 + $0x28] ss:$0 sps:$4 sm:$0x33]   ;;  %v5221_v37 = vld [vmem:[%s8579_s8] ss:$0 sm:$0xff] }
 0x53c   :  { %v4821_v32 = vsel %vm1834_vm3, %v5724_v50, 0 }
 0x53d   :  { %v3833_v6 = vadd.f32 %v8359_v40, %v3832_v29 }
 0x53f   :  { %v3834_v62 = vmax.f32 %v3833_v6, 0.0 }
 0x541   :  { %v3835_v63 = vpack.c.bf16 %v3834_v62, %v3834_v62 }
 0x543   :  { %5338 = vmatmul.mubr.msk.bf16.vlgmr.msra.gmra.mrb[80].mxu1 %vm4300_vm6, %v3835_v63 }
 0x544   :  { %5371 = vmatprep.mubr.msk.bf16.mxu1 %vm5805_vm5, %v5804_v4  ;;  %5356 = vmatpush3.bf16.msra.mxu1 %v5711_v21 }
 0x545   :  { %5357 = vmatprep.subr.bf16.mxu1 %v5804_v4 }
 0x548   :  { %5358 = vmatpush3.bf16.msra.mxu1 %v5712_v28 }
 0x549   :  { %5359 = vmatprep.subr.bf16.mxu1 %v5804_v4 }
 0x54c   :  { %5360 = vmatpush3.bf16.msra.mxu1 %v5713_v2 }
 0x54d   :  { %5361 = vmatprep.subr.bf16.mxu1 %v5804_v4 }
 0x550   :  { %5362 = vmatpush3.bf16.msra.mxu1 %v5714_v26 }
 0x551   :  { %5363 = vmatprep.subr.bf16.mxu1 %v5804_v4 }
 0x554   :  { %5364 = vmatpush3.bf16.msra.mxu1 %v5715_v41 }
 0x555   :  { %5365 = vmatprep.subr.bf16.mxu1 %v5804_v4 }
 0x558   :  { %5366 = vmatpush3.bf16.msra.mxu1 %v5716_v3 }
 0x559   :  { %5367 = vmatprep.subr.bf16.mxu1 %v5804_v4 }
 0x55c   :  { %5368 = vmatpush3.bf16.msra.mxu1 %v5717_v45 }
 0x55d   :  { %5369 = vmatprep.subr.bf16.mxu1 %v5804_v4 }
 0x587   :  { %v4041_v11 = vpop.f32.mrb[72].mxu0 }
 0x588   :  { %v4043_v44 = vpop.f32.mrb[73].mxu0 }
 0x589   :  { %v4045_v14 = vpop.f32.mrb[74].mxu0 }
 0x58a   :  { %v4046_v5 = vpop.f32.mrb[75].mxu0 }
 0x59b   :  { %v4338_v47 = vpop.f32.mrb[76].mxu0 }
 0x59c   :  { %v5297_v20 = vpop.f32.mrb[77].mxu0 }
 0x59d   :  { %v4341_v7 = vpop.f32.mrb[78].mxu0 }
 0x59e   :  { %v5298_v59 = vpop.f32.mrb[79].mxu0 }
 0x5af   :  { %v4255_v54 = vpop.f32.mrb[72].mxu1  ;;  %v4484_v8 = vpop.f32.mrb[80].mxu0 }
 0x5b0   :  { %v4264_v38 = vmax.f32 %v4041_v11, %v4255_v54  ;;  %v4257_v43 = vpop.f32.mrb[73].mxu1  ;;  %v5325_v13 = vpop.f32.mrb[81].mxu0 }
 0x5b1   :  { %v4265_v19 = vmax.f32 %v4043_v44, %v4257_v43  ;;  %v4259_v15 = vpop.f32.mrb[74].mxu1  ;;  %v4487_v17 = vpop.f32.mrb[82].mxu0 }
 0x5b2   :  { %v4260_v34 = vpop.f32.mrb[75].mxu1  ;;  %v5326_v57 = vpop.f32.mrb[83].mxu0 }
 0x5b3   :  { %v4266_v16 = vmax.f32 %v4264_v38, %v4265_v19 }
 0x5b5   :  { %v4267_v46 = vadd.f32 %v8359_v40, %v4266_v16  ;;  %v5718_v40 = vld [vmem:[%s8576_s7 + $0x38] ss:$0 sps:$4 sm:$0xff]  }
 0x5b6   :  { %v4722_v35 = vsel %vm4720_vm7, %v5718_v40, 0 }
 0x5b7   :  { %v4268_v30 = vmax.f32 %v4267_v46, 0.0  ;;  %5370 = vmatpush3.bf16.msra.mxu1 %v4722_v35 }
 0x5b9   :  { %v4269_v52 = vpack.c.bf16 %v4268_v30, %v4268_v30 }
 0x5bb   :  { %5352 = vmatmul.mubr.msk.bf16.vlgmr.msra.gmra.mrb[84].mxu0 %vm4300_vm6, %v4269_v52 }
 0x5bc   :  { %5387 = vmatprep.mubr.msk.bf16.mxu0 %vm5805_vm5, %v5804_v4  ;;  %5376 = vmatpush3.bf16.msra.mxu0 %v5719_v53 }
 0x5bd   :  { %5377 = vmatprep.subr.bf16.mxu0 %v5804_v4 }
 0x5c0   :  { %5378 = vmatpush3.bf16.msra.mxu0 %v5720_v49 }
 0x5c1   :  { %5379 = vmatprep.subr.bf16.mxu0 %v5804_v4 }
 0x5c3   :  { %v4411_v12 = vpop.f32.mrb[76].mxu1 }
 0x5c4   :  { %v4412_v24 = vadd.f32 %v4411_v12, %v4338_v47  ;;  %v5311_v0 = vpop.f32.mrb[77].mxu1  ;;  %5380 = vmatpush3.bf16.msra.mxu0 %v5721_v9 }
 0x5c5   :  { %v4414_v56 = vpop.f32.mrb[78].mxu1  ;;  %5381 = vmatprep.subr.bf16.mxu0 %v5804_v4 }
 0x5c6   :  { %v5312_v33 = vpop.f32.mrb[79].mxu1  ;;  %v4490_v18 = vadd.f32 %v4484_v8, %v4412_v24 }
 0x5c8   :  { %5382 = vmatpush3.bf16.msra.mxu0 %v5722_v39 }
 0x5c9   :  { %5383 = vmatprep.subr.bf16.mxu0 %v5804_v4 }
 0x5cc   :  { %5384 = vmatpush3.bf16.msra.mxu0 %v5723_v22 }
 0x5cd   :  { %5385 = vmatprep.subr.bf16.mxu0 %v5804_v4  ;;  %v5231_v4 = vld [vmem:[%s8580_s10] ss:$0 sm:$0xff] }
 0x5d0   :  { %5386 = vmatpush3.bf16.msra.mxu0 %v4821_v32 }
 0x616   :  { %v4558_v10 = vpop.f32.mrb[80].mxu1 }
 0x617   :  { %v4564_v51 = vadd.f32 %v4558_v10, %v4490_v18  ;;  %v5339_v25 = vpop.f32.mrb[81].mxu1 }
 0x618   :  { %v4561_v36 = vpop.f32.mrb[82].mxu1 }
 0x619   :  { %v5340_v42 = vpop.f32.mrb[83].mxu1 }
 0x68e   :  { %v4632_v31 = vpop.f32.mrb[84].mxu0 }
 0x68f   :  { %v4638_v55 = vadd.f32 %v4632_v31, %v4564_v51  ;;  %v5353_v61 = vpop.f32.mrb[85].mxu0 }
 0x690   :  { %v4635_v48 = vpop.f32.mrb[86].mxu0 }
 0x691   :  { %v4646_v1 = vadd.f32 %v5220_v58, %v4638_v55  ;;  %v5354_v23 = vpop.f32.mrb[87].mxu0 }
 0x693   :  { %v4647_v27 = vmax.f32 %v4646_v1, 0.0 }
 0x695   :  { %v4648_v60 = vpack.c.bf16 %v4647_v27, %v4647_v27 }
 0x697   :  { %5372 = vmatmul.mubr.msk.bf16.vlgmr.msra.gmra.mrb[84].mxu1 %vm4716_vm8, %v4648_v60 }
 0x76a   :  { %v4758_v29 = vpop.f32.mrb[84].mxu1 }
 0x76b   :  { %v4759_v6 = vadd.f32 %v5221_v37, %v4758_v29  ;;  %v5373_v62 = vpop.f32.mrb[85].mxu1 }
 0x76c   :  { %v4761_v63 = vpop.f32.mrb[86].mxu1 }
 0x76d   :  { %v4764_v11 = vmax.f32 %v4759_v6, 0.0  ;;  %v5374_v44 = vpop.f32.mrb[87].mxu1 }
 0x76f   :  { %v4765_v14 = vpack.c.bf16 %v4764_v11, %v4764_v11 }
 0x771   :  { %5388 = vmatmul.mubr.msk.bf16.vlgmr.msra.gmra.mrb[88].mxu0 %vm1830_vm4, %v4765_v14 }
 0x844   :  { %v4857_v5 = vpop.f32.mrb[88].mxu0 }
 0x845   :  { %v4858_v21 = vadd.f32 %v5231_v4, %v4857_v5  ;;  %v5389_v47 = vpop.f32.mrb[89].mxu0 }
 0x846   :  { %v4860_v20 = vpop.f32.mrb[90].mxu0 }
 0x847   :  { %v5390_v28 = vpop.f32.mrb[91].mxu0  ;;  %v4864_v7 = vsel %vm4863_vm9, %v4858_v21, -inf }
 0x848   :  { %4865 = vmax.xlane.f32.xlu0 %v4864_v7 }
 0x8d5   :  { %v4866_v59 = vpop.xlane.xlu0 %4865 }
 0x8d6   :  { %v4867_v2 = vsub.f32 %v4858_v21, %v4866_v59 }
 0x8d8   :  { %v4868_v26 = vmul.f32 1.442695, %v4867_v2 }
 0x8da   :  { %5725 = vpow2.f32 %v4868_v26 }
 0x8e4   :  { %v5726_v41 = vpop.eup %5725 }
 0x8e5   :  { %v4870_v3 = vsel %vm4863_vm9, %v5726_v41, 0.0 }
 0x8e6   :  { %4871 = vadd.xlane.f32.xlu1 %v4870_v3 }
 0x973   :  { %v4872_v54 = vpop.xlane.xlu1 %4871 }
 0x974   :  { %5727 = vlog2.f32 %v4872_v54 }
 0x97e   :  { %v5728_v8 = vpop.eup %5727 }
 0x97f   :  { %v4874_v38 = vmul.f32 0.6931472, %v5728_v8 }
 0x981   :  { %v4875_v43 = vadd.f32 %v4874_v38, %v4866_v59 }
 0x983   :  { %v4876_v13 = vsub.f32 %v4858_v21, %v4875_v43 }
 0x985   :  { %4877 = vst.msk [vmem:[%s8581_s11] sm:$0xff] %vm4863_vm9, %v4876_v13 }

</bundles_post_ra>
